<compile_context>
chip_gen: v6e
topology: v6e:2x2x1
jax: 0.10.0
libtpu: 0.0.40
codegen_flags: <defaults>
</compile_context>

<pallas_src>
import jax
import jax.numpy as jnp
from jax.experimental import pallas as pl
from jax.experimental.pallas import tpu as pltpu

D_MODEL = 128
D_LATENT = 4
N_CLASSES = 20
OUT_W = 128      # lane-dense packed output width (z0 lanes 0:4, logits lanes 4:24)
IN_W = 8         # packed input width (z lanes 0:4, valid mask lane 4)
TM_MAX = 2048    # row-tile cap (sweepable 1024-2048); VMEM use stays ~1.3 MB
NEG_BIG = -1e9


def protein_diff_kernel(zm_ref,
                        w1_ref, b1_ref, w2_ref, b2_ref, w3_ref, b3_ref,
                        wc1_ref, bc1_ref, wc2_ref, bc2_ref, neg_ref,
                        out_ref):
    z = zm_ref[:, 0:D_LATENT]                       # (TM, 4) f32 white-noise latent
    mask = zm_ref[:, D_LATENT:D_LATENT + 1]         # (TM, 1) f32 validity mask

    # ---- denoiser layer 1 (K=4): VPU broadcast-FMAs (skip an MXU push/pop trip)
    h = b1_ref[...] + z[:, 0:1] * w1_ref[0:1, :]
    for k in range(1, D_LATENT):
        h = h + z[:, k:k + 1] * w1_ref[k:k + 1, :]
    h = jnp.maximum(h, 0.0)

    # ---- denoiser layer 2 (K=128): MXU, bf16 operands / f32 accumulation
    h = jnp.dot(h.astype(jnp.bfloat16), w2_ref[...],
                preferred_element_type=jnp.float32)
    h = jnp.maximum(h + b2_ref[...], 0.0)

    # ---- eps head (K=128 -> 4): MXU
    eps = jnp.dot(h.astype(jnp.bfloat16), w3_ref[...],
                  preferred_element_type=jnp.float32) + b3_ref[...]

    z0 = (z - eps) * mask                           # (TM, 4) masked denoised latent

    # ---- classifier layer 1 (K=4): VPU broadcast-FMAs
    c = bc1_ref[...] + z0[:, 0:1] * wc1_ref[0:1, :]
    for k in range(1, D_LATENT):
        c = c + z0[:, k:k + 1] * wc1_ref[k:k + 1, :]
    c = jnp.maximum(c, 0.0)

    # ---- classifier layer 2 (K=128): MXU; wc2/bc2 pre-padded so real logits
    # land in lanes [D_LATENT, D_LATENT + N_CLASSES), everything else exactly 0.
    logits = jnp.dot(c.astype(jnp.bfloat16), wc2_ref[...],
                     preferred_element_type=jnp.float32) + bc2_ref[...]

    # Valid rows keep logits; invalid rows get NEG_BIG on the logit lanes only
    # (neg_ref is a precomputed host constant -> no per-step iota/compare).
    slab = jnp.where(mask > 0.0, logits, neg_ref[...])
    out_ref[...] = slab.astype(out_ref.dtype)
    # z0 into lanes [0, D_LATENT): in-VMEM sub-store; the HBM-facing out_spec
    # stays full 128-lane width, so the writeback DMA is unmasked.
    out_ref[:, 0:D_LATENT] = z0.astype(out_ref.dtype)


def init_params(key):
    ks = jax.random.split(key, 10)
    scale = 0.05
    return {
        "w1": jax.random.normal(ks[0], (D_LATENT, D_MODEL), jnp.float32) * scale,
        "b1": jnp.zeros((1, D_MODEL), jnp.float32),
        "w2": jax.random.normal(ks[1], (D_MODEL, D_MODEL), jnp.float32) * scale,
        "b2": jnp.zeros((1, D_MODEL), jnp.float32),
        "w3": jax.random.normal(ks[2], (D_MODEL, D_LATENT), jnp.float32) * scale,
        "b3": jnp.zeros((1, D_LATENT), jnp.float32),
        "wc1": jax.random.normal(ks[3], (D_LATENT, D_MODEL), jnp.float32) * scale,
        "bc1": jnp.zeros((1, D_MODEL), jnp.float32),
        "wc2": jax.random.normal(ks[4], (D_MODEL, N_CLASSES), jnp.float32) * scale,
        "bc2": jnp.zeros((1, N_CLASSES), jnp.float32),
    }


def timestep_embedding(t, dim=D_MODEL):
    half = dim // 2
    freqs = jnp.exp(-jnp.log(10000.0) * jnp.arange(half, dtype=jnp.float32) / half)
    ang = t * freqs
    return jnp.concatenate([jnp.sin(ang), jnp.cos(ang)])[None, :]  # (1, dim)


def _round_up(x, m):
    return ((x + m - 1) // m) * m


def _choose_tm(M):
    # Aim for >= 2 grid steps when there is enough work (v7x has 2 TCs/chip),
    # while capping the tile at TM_MAX and keeping it a multiple of 256.
    tm = _round_up(max((M + 1) // 2, 8), 256)
    return max(256, min(TM_MAX, tm))


def protein_diff_forward(C, L, params, atom_mask=None, valid_mask=None,
                         temp=1e-6, key=None):
    """Inference: white-noise latent -> single denoise step -> classifier logits."""
    B, N = L.shape
    M = B * N
    tm = _choose_tm(M)
    M_pad = _round_up(M, tm)
    if valid_mask is None:
        valid_mask = jnp.ones((B, N), jnp.float32)
    if key is None:
        key = jax.random.PRNGKey(42)

    # White-noise starting latent + mask packed lane-dense into a single
    # (M_pad, 8) input: z in lanes 0:4, mask in lane 4. Padded rows are zero
    # (mask 0 -> inert) and sliced off afterwards.
    z = jax.random.normal(key, (M, D_LATENT), jnp.float32)
    zm = jnp.zeros((M_pad, IN_W), jnp.float32)
    zm = zm.at[:M, :D_LATENT].set(z)
    zm = zm.at[:M, D_LATENT].set(valid_mask.reshape(M).astype(jnp.float32))

    # Host-side prep: fold the constant (single-step, t=1) time embedding into
    # b1, pad the classifier head lane-dense, cast MXU weights to bf16, and
    # precompute the invalid-row logit penalty lane vector.
    temb = timestep_embedding(jnp.float32(1.0))
    b1_eff = params["b1"] + temb
    wc2p = jnp.zeros((D_MODEL, OUT_W), jnp.float32)
    wc2p = wc2p.at[:, D_LATENT:D_LATENT + N_CLASSES].set(params["wc2"])
    bc2p = jnp.zeros((1, OUT_W), jnp.float32)
    bc2p = bc2p.at[:, D_LATENT:D_LATENT + N_CLASSES].set(params["bc2"])
    neg = jnp.zeros((1, OUT_W), jnp.float32)
    neg = neg.at[:, D_LATENT:D_LATENT + N_CLASSES].set(NEG_BIG)

    w2 = params["w2"].astype(jnp.bfloat16)
    w3 = params["w3"].astype(jnp.bfloat16)
    wc2p = wc2p.astype(jnp.bfloat16)

    full = lambda shape: pl.BlockSpec(shape, lambda i: (0, 0))

    grid_spec = pltpu.PrefetchScalarGridSpec(
        num_scalar_prefetch=0,
        grid=(M_pad // tm,),
        in_specs=[
            pl.BlockSpec((tm, IN_W), lambda i: (i, 0)),       # packed z + mask
            full((D_LATENT, D_MODEL)), full((1, D_MODEL)),    # w1 (f32, VPU), b1+temb
            full((D_MODEL, D_MODEL)), full((1, D_MODEL)),     # w2 (bf16), b2
            full((D_MODEL, D_LATENT)), full((1, D_LATENT)),   # w3 (bf16), b3
            full((D_LATENT, D_MODEL)), full((1, D_MODEL)),    # wc1 (f32, VPU), bc1
            full((D_MODEL, OUT_W)), full((1, OUT_W)),         # wc2 (bf16, padded), bc2
            full((1, OUT_W)),                                 # invalid-row logit penalty
        ],
        out_specs=pl.BlockSpec((tm, OUT_W), lambda i: (i, 0)),
    )

    # Advisory cost: 3 MXU + 2 VPU "matmuls" per row; skinny f32 in, bf16 slab out.
    flops = 2 * M_pad * (2 * D_MODEL * D_MODEL
                         + D_MODEL * D_LATENT
                         + 2 * D_LATENT * D_MODEL)
    bytes_accessed = (M_pad * (IN_W * 4 + OUT_W * 2)
                      + 2 * D_MODEL * D_MODEL * 2 + D_MODEL * OUT_W * 2
                      + 2 * D_LATENT * D_MODEL * 4 + 8 * D_MODEL * 4)

    out = pl.pallas_call(
        protein_diff_kernel,
        out_shape=jax.ShapeDtypeStruct((M_pad, OUT_W), jnp.bfloat16),
        grid_spec=grid_spec,
        compiler_params=pltpu.CompilerParams(
            dimension_semantics=("parallel",)),
        cost_estimate=pl.CostEstimate(flops=flops, transcendentals=0,
                                      bytes_accessed=bytes_accessed),
    )(zm,
      params["w1"], b1_eff, w2, params["b2"], w3, params["b3"],
      params["wc1"], params["bc1"], wc2p, bc2p, neg)

    z0 = out[:M, :D_LATENT].astype(jnp.float32).reshape(B, N, D_LATENT)
    logits = out[:M, D_LATENT:D_LATENT + N_CLASSES].astype(jnp.float32)
    logits = logits.reshape(B, N, N_CLASSES)
    return logits, z0


if __name__ == "__main__":
    key = jax.random.PRNGKey(0)
    k_c, k_m, k_p, k_z = jax.random.split(key, 4)

    B, N = 2, 8
    C = jax.random.normal(k_c, (B, N, 4, 3), jnp.float32)        # backbone coords
    L = jax.random.randint(k_m, (B, N), 0, N_CLASSES)            # residue labels
    atom_mask = jnp.ones((B, N, 4), jnp.float32)
    valid_mask = jnp.ones((B, N), jnp.float32).at[1, 6:].set(0.0)

    params = init_params(k_p)

    logits, z0 = protein_diff_forward(C, L, params,
                                      atom_mask=atom_mask,
                                      valid_mask=valid_mask,
                                      temp=1e-6, key=k_z)
    logits = jax.block_until_ready(logits)
    z0 = jax.block_until_ready(z0)

    assert logits.shape == (B, N, N_CLASSES)
    assert z0.shape == (B, N, D_LATENT)
    assert bool(jnp.all(jnp.isfinite(z0)))
    # masked-out residues must have suppressed logits
    assert bool(jnp.all(logits[1, 6:] < -1e8))
    print("KERNEL_OK")
</pallas_src>

<mosaic_0001>
module attributes {stable_mosaic.version = 11 : i64} {
  func.func @protein_diff_kernel(%arg0: i32, %arg1: memref<256x8xf32, #tpu.memory_space<vmem>>, %arg2: memref<4x128xf32, #tpu.memory_space<vmem>>, %arg3: memref<1x128xf32, #tpu.memory_space<vmem>>, %arg4: memref<128x128xbf16, #tpu.memory_space<vmem>>, %arg5: memref<1x128xf32, #tpu.memory_space<vmem>>, %arg6: memref<128x4xbf16, #tpu.memory_space<vmem>>, %arg7: memref<1x4xf32, #tpu.memory_space<vmem>>, %arg8: memref<4x128xf32, #tpu.memory_space<vmem>>, %arg9: memref<1x128xf32, #tpu.memory_space<vmem>>, %arg10: memref<128x128xbf16, #tpu.memory_space<vmem>>, %arg11: memref<1x128xf32, #tpu.memory_space<vmem>>, %arg12: memref<1x128xf32, #tpu.memory_space<vmem>>, %arg13: memref<256x128xbf16, #tpu.memory_space<vmem>>) attributes {dimension_semantics = [#tpu.dimension_semantics<parallel>], iteration_bounds = array<i64: 1>, scalar_prefetch = 0 : i64, scratch_operands = 0 : i64, tpu.core_type = #tpu.core_type<tc>, window_params = [{transform_indices = @transform_0, window_bounds = array<i64: 256, 8>}, {pipeline_mode = #tpu.pipeline_mode<synchronous>, transform_indices = @transform_1, window_bounds = array<i64: 4, 128>}, {pipeline_mode = #tpu.pipeline_mode<synchronous>, transform_indices = @transform_2, window_bounds = array<i64: 1, 128>}, {pipeline_mode = #tpu.pipeline_mode<synchronous>, transform_indices = @transform_3, window_bounds = array<i64: 128, 128>}, {pipeline_mode = #tpu.pipeline_mode<synchronous>, transform_indices = @transform_4, window_bounds = array<i64: 1, 128>}, {pipeline_mode = #tpu.pipeline_mode<synchronous>, transform_indices = @transform_5, window_bounds = array<i64: 128, 4>}, {pipeline_mode = #tpu.pipeline_mode<synchronous>, transform_indices = @transform_6, window_bounds = array<i64: 1, 4>}, {pipeline_mode = #tpu.pipeline_mode<synchronous>, transform_indices = @transform_7, window_bounds = array<i64: 4, 128>}, {pipeline_mode = #tpu.pipeline_mode<synchronous>, transform_indices = @transform_8, window_bounds = array<i64: 1, 128>}, {pipeline_mode = #tpu.pipeline_mode<synchronous>, transform_indices = @transform_9, window_bounds = array<i64: 128, 128>}, {pipeline_mode = #tpu.pipeline_mode<synchronous>, transform_indices = @transform_10, window_bounds = array<i64: 1, 128>}, {pipeline_mode = #tpu.pipeline_mode<synchronous>, transform_indices = @transform_11, window_bounds = array<i64: 1, 128>}, {transform_indices = @transform_12, window_bounds = array<i64: 256, 128>}]} {
    %c0 = arith.constant 0 : index
    %c0_0 = arith.constant 0 : index
    %0 = vector.load %arg1[%c0, %c0_0] : memref<256x8xf32, #tpu.memory_space<vmem>>, vector<256x4xf32>
    %c0_1 = arith.constant 0 : index
    %c4 = arith.constant 4 : index
    %1 = vector.load %arg1[%c0_1, %c4] : memref<256x8xf32, #tpu.memory_space<vmem>>, vector<256x1xf32>
    %c0_2 = arith.constant 0 : index
    %c0_3 = arith.constant 0 : index
    %2 = vector.load %arg3[%c0_2, %c0_3] : memref<1x128xf32, #tpu.memory_space<vmem>>, vector<1x128xf32>
    %3 = vector.extract_strided_slice %0 {offsets = [0, 0], sizes = [256, 1], strides = [1, 1]} : vector<256x4xf32> to vector<256x1xf32>
    %c0_4 = arith.constant 0 : index
    %c0_5 = arith.constant 0 : index
    %4 = vector.load %arg2[%c0_4, %c0_5] : memref<4x128xf32, #tpu.memory_space<vmem>>, vector<1x128xf32>
    %5 = vector.broadcast %3 : vector<256x1xf32> to vector<256x128xf32>
    %6 = vector.broadcast %4 : vector<1x128xf32> to vector<256x128xf32>
    %7 = arith.mulf %5, %6 : vector<256x128xf32>
    %8 = vector.broadcast %2 : vector<1x128xf32> to vector<256x128xf32>
    %9 = arith.addf %8, %7 : vector<256x128xf32>
    %10 = vector.extract_strided_slice %0 {offsets = [0, 1], sizes = [256, 1], strides = [1, 1]} : vector<256x4xf32> to vector<256x1xf32>
    %c1 = arith.constant 1 : index
    %c0_6 = arith.constant 0 : index
    %11 = vector.load %arg2[%c1, %c0_6] : memref<4x128xf32, #tpu.memory_space<vmem>>, vector<1x128xf32>
    %12 = vector.broadcast %10 : vector<256x1xf32> to vector<256x128xf32>
    %13 = vector.broadcast %11 : vector<1x128xf32> to vector<256x128xf32>
    %14 = arith.mulf %12, %13 : vector<256x128xf32>
    %15 = arith.addf %9, %14 : vector<256x128xf32>
    %16 = vector.extract_strided_slice %0 {offsets = [0, 2], sizes = [256, 1], strides = [1, 1]} : vector<256x4xf32> to vector<256x1xf32>
    %c2 = arith.constant 2 : index
    %c0_7 = arith.constant 0 : index
    %17 = vector.load %arg2[%c2, %c0_7] : memref<4x128xf32, #tpu.memory_space<vmem>>, vector<1x128xf32>
    %18 = vector.broadcast %16 : vector<256x1xf32> to vector<256x128xf32>
    %19 = vector.broadcast %17 : vector<1x128xf32> to vector<256x128xf32>
    %20 = arith.mulf %18, %19 : vector<256x128xf32>
    %21 = arith.addf %15, %20 : vector<256x128xf32>
    %22 = vector.extract_strided_slice %0 {offsets = [0, 3], sizes = [256, 1], strides = [1, 1]} : vector<256x4xf32> to vector<256x1xf32>
    %c3 = arith.constant 3 : index
    %c0_8 = arith.constant 0 : index
    %23 = vector.load %arg2[%c3, %c0_8] : memref<4x128xf32, #tpu.memory_space<vmem>>, vector<1x128xf32>
    %24 = vector.broadcast %22 : vector<256x1xf32> to vector<256x128xf32>
    %25 = vector.broadcast %23 : vector<1x128xf32> to vector<256x128xf32>
    %26 = arith.mulf %24, %25 : vector<256x128xf32>
    %27 = arith.addf %21, %26 : vector<256x128xf32>
    %cst = arith.constant 0.000000e+00 : f32
    %28 = vector.broadcast %cst : f32 to vector<256x128xf32>
    %29 = arith.maximumf %27, %28 : vector<256x128xf32>
    %30 = arith.truncf %29 : vector<256x128xf32> to vector<256x128xbf16>
    %c0_9 = arith.constant 0 : index
    %c0_10 = arith.constant 0 : index
    %31 = vector.load %arg4[%c0_9, %c0_10] : memref<128x128xbf16, #tpu.memory_space<vmem>>, vector<128x128xbf16>
    %cst_11 = arith.constant dense<0.000000e+00> : vector<256x128xf32>
    %32 = tpu.matmul %30, %31, %cst_11 {dimension_numbers = #tpu.dot_dimension_numbers<[1], [0], [0], [1], [0, 0, 1, 1], [], []>} : vector<256x128xbf16>, vector<128x128xbf16>, vector<256x128xf32> -> vector<256x128xf32>
    %c0_12 = arith.constant 0 : index
    %c0_13 = arith.constant 0 : index
    %33 = vector.load %arg5[%c0_12, %c0_13] : memref<1x128xf32, #tpu.memory_space<vmem>>, vector<1x128xf32>
    %34 = vector.broadcast %33 : vector<1x128xf32> to vector<256x128xf32>
    %35 = arith.addf %32, %34 : vector<256x128xf32>
    %cst_14 = arith.constant 0.000000e+00 : f32
    %36 = vector.broadcast %cst_14 : f32 to vector<256x128xf32>
    %37 = arith.maximumf %35, %36 : vector<256x128xf32>
    %38 = arith.truncf %37 : vector<256x128xf32> to vector<256x128xbf16>
    %c0_15 = arith.constant 0 : index
    %c0_16 = arith.constant 0 : index
    %39 = vector.load %arg6[%c0_15, %c0_16] : memref<128x4xbf16, #tpu.memory_space<vmem>>, vector<128x4xbf16>
    %cst_17 = arith.constant dense<0.000000e+00> : vector<256x4xf32>
    %40 = tpu.matmul %38, %39, %cst_17 {dimension_numbers = #tpu.dot_dimension_numbers<[1], [0], [0], [1], [0, 0, 1, 1], [], []>} : vector<256x128xbf16>, vector<128x4xbf16>, vector<256x4xf32> -> vector<256x4xf32>
    %c0_18 = arith.constant 0 : index
    %c0_19 = arith.constant 0 : index
    %41 = vector.load %arg7[%c0_18, %c0_19] : memref<1x4xf32, #tpu.memory_space<vmem>>, vector<1x4xf32>
    %42 = vector.broadcast %41 : vector<1x4xf32> to vector<256x4xf32>
    %43 = arith.addf %40, %42 : vector<256x4xf32>
    %44 = arith.subf %0, %43 : vector<256x4xf32>
    %45 = vector.broadcast %1 : vector<256x1xf32> to vector<256x4xf32>
    %46 = arith.mulf %44, %45 : vector<256x4xf32>
    %c0_20 = arith.constant 0 : index
    %c0_21 = arith.constant 0 : index
    %47 = vector.load %arg9[%c0_20, %c0_21] : memref<1x128xf32, #tpu.memory_space<vmem>>, vector<1x128xf32>
    %48 = vector.extract_strided_slice %46 {offsets = [0, 0], sizes = [256, 1], strides = [1, 1]} : vector<256x4xf32> to vector<256x1xf32>
    %c0_22 = arith.constant 0 : index
    %c0_23 = arith.constant 0 : index
    %49 = vector.load %arg8[%c0_22, %c0_23] : memref<4x128xf32, #tpu.memory_space<vmem>>, vector<1x128xf32>
    %50 = vector.broadcast %48 : vector<256x1xf32> to vector<256x128xf32>
    %51 = vector.broadcast %49 : vector<1x128xf32> to vector<256x128xf32>
    %52 = arith.mulf %50, %51 : vector<256x128xf32>
    %53 = vector.broadcast %47 : vector<1x128xf32> to vector<256x128xf32>
    %54 = arith.addf %53, %52 : vector<256x128xf32>
    %55 = vector.extract_strided_slice %46 {offsets = [0, 1], sizes = [256, 1], strides = [1, 1]} : vector<256x4xf32> to vector<256x1xf32>
    %c1_24 = arith.constant 1 : index
    %c0_25 = arith.constant 0 : index
    %56 = vector.load %arg8[%c1_24, %c0_25] : memref<4x128xf32, #tpu.memory_space<vmem>>, vector<1x128xf32>
    %57 = vector.broadcast %55 : vector<256x1xf32> to vector<256x128xf32>
    %58 = vector.broadcast %56 : vector<1x128xf32> to vector<256x128xf32>
    %59 = arith.mulf %57, %58 : vector<256x128xf32>
    %60 = arith.addf %54, %59 : vector<256x128xf32>
    %61 = vector.extract_strided_slice %46 {offsets = [0, 2], sizes = [256, 1], strides = [1, 1]} : vector<256x4xf32> to vector<256x1xf32>
    %c2_26 = arith.constant 2 : index
    %c0_27 = arith.constant 0 : index
    %62 = vector.load %arg8[%c2_26, %c0_27] : memref<4x128xf32, #tpu.memory_space<vmem>>, vector<1x128xf32>
    %63 = vector.broadcast %61 : vector<256x1xf32> to vector<256x128xf32>
    %64 = vector.broadcast %62 : vector<1x128xf32> to vector<256x128xf32>
    %65 = arith.mulf %63, %64 : vector<256x128xf32>
    %66 = arith.addf %60, %65 : vector<256x128xf32>
    %67 = vector.extract_strided_slice %46 {offsets = [0, 3], sizes = [256, 1], strides = [1, 1]} : vector<256x4xf32> to vector<256x1xf32>
    %c3_28 = arith.constant 3 : index
    %c0_29 = arith.constant 0 : index
    %68 = vector.load %arg8[%c3_28, %c0_29] : memref<4x128xf32, #tpu.memory_space<vmem>>, vector<1x128xf32>
    %69 = vector.broadcast %67 : vector<256x1xf32> to vector<256x128xf32>
    %70 = vector.broadcast %68 : vector<1x128xf32> to vector<256x128xf32>
    %71 = arith.mulf %69, %70 : vector<256x128xf32>
    %72 = arith.addf %66, %71 : vector<256x128xf32>
    %cst_30 = arith.constant 0.000000e+00 : f32
    %73 = vector.broadcast %cst_30 : f32 to vector<256x128xf32>
    %74 = arith.maximumf %72, %73 : vector<256x128xf32>
    %75 = arith.truncf %74 : vector<256x128xf32> to vector<256x128xbf16>
    %c0_31 = arith.constant 0 : index
    %c0_32 = arith.constant 0 : index
    %76 = vector.load %arg10[%c0_31, %c0_32] : memref<128x128xbf16, #tpu.memory_space<vmem>>, vector<128x128xbf16>
    %cst_33 = arith.constant dense<0.000000e+00> : vector<256x128xf32>
    %77 = tpu.matmul %75, %76, %cst_33 {dimension_numbers = #tpu.dot_dimension_numbers<[1], [0], [0], [1], [0, 0, 1, 1], [], []>} : vector<256x128xbf16>, vector<128x128xbf16>, vector<256x128xf32> -> vector<256x128xf32>
    %c0_34 = arith.constant 0 : index
    %c0_35 = arith.constant 0 : index
    %78 = vector.load %arg11[%c0_34, %c0_35] : memref<1x128xf32, #tpu.memory_space<vmem>>, vector<1x128xf32>
    %79 = vector.broadcast %78 : vector<1x128xf32> to vector<256x128xf32>
    %80 = arith.addf %77, %79 : vector<256x128xf32>
    %cst_36 = arith.constant 0.000000e+00 : f32
    %81 = vector.broadcast %cst_36 : f32 to vector<256x1xf32>
    %82 = arith.cmpf ogt, %1, %81 : vector<256x1xf32>
    %c0_37 = arith.constant 0 : index
    %c0_38 = arith.constant 0 : index
    %83 = vector.load %arg12[%c0_37, %c0_38] : memref<1x128xf32, #tpu.memory_space<vmem>>, vector<1x128xf32>
    %84 = vector.shape_cast %82 : vector<256x1xi1> to vector<256x1xi1>
    %85 = vector.broadcast %84 : vector<256x1xi1> to vector<256x128xi1>
    %86 = vector.shape_cast %83 : vector<1x128xf32> to vector<1x128xf32>
    %87 = vector.broadcast %86 : vector<1x128xf32> to vector<256x128xf32>
    %88 = arith.select %85, %80, %87 : vector<256x128xi1>, vector<256x128xf32>
    %89 = arith.truncf %88 : vector<256x128xf32> to vector<256x128xbf16>
    %c0_39 = arith.constant 0 : index
    %c0_40 = arith.constant 0 : index
    %90 = vector.load %arg13[%c0_39, %c0_40] : memref<256x128xbf16, #tpu.memory_space<vmem>>, vector<256x128xbf16>
    tpu.vector_store %arg13[%c0_39, %c0_40], %89 {strides = array<i32>} : memref<256x128xbf16, #tpu.memory_space<vmem>>, vector<256x128xbf16>,
    %91 = arith.truncf %46 : vector<256x4xf32> to vector<256x4xbf16>
    %c0_41 = arith.constant 0 : index
    %c0_42 = arith.constant 0 : index
    %92 = vector.load %arg13[%c0_41, %c0_42] : memref<256x128xbf16, #tpu.memory_space<vmem>>, vector<256x4xbf16>
    tpu.vector_store %arg13[%c0_41, %c0_42], %91 {strides = array<i32>} : memref<256x128xbf16, #tpu.memory_space<vmem>>, vector<256x4xbf16>,
    return
  }
  func.func @transform_0(%arg0: i32) -> (i32, i32) {
    %c0_i32 = arith.constant 0 : i32
    %c0_i32_0 = arith.constant 0 : i32
    return %arg0, %c0_i32 : i32, i32
  }
  func.func @transform_1(%arg0: i32) -> (i32, i32) {
    %c0_i32 = arith.constant 0 : i32
    %c0_i32_0 = arith.constant 0 : i32
    %c0_i32_1 = arith.constant 0 : i32
    return %c0_i32, %c0_i32_0 : i32, i32
  }
  func.func @transform_2(%arg0: i32) -> (i32, i32) {
    %c0_i32 = arith.constant 0 : i32
    %c0_i32_0 = arith.constant 0 : i32
    %c0_i32_1 = arith.constant 0 : i32
    return %c0_i32, %c0_i32_0 : i32, i32
  }
  func.func @transform_3(%arg0: i32) -> (i32, i32) {
    %c0_i32 = arith.constant 0 : i32
    %c0_i32_0 = arith.constant 0 : i32
    %c0_i32_1 = arith.constant 0 : i32
    return %c0_i32, %c0_i32_0 : i32, i32
  }
  func.func @transform_4(%arg0: i32) -> (i32, i32) {
    %c0_i32 = arith.constant 0 : i32
    %c0_i32_0 = arith.constant 0 : i32
    %c0_i32_1 = arith.constant 0 : i32
    return %c0_i32, %c0_i32_0 : i32, i32
  }
  func.func @transform_5(%arg0: i32) -> (i32, i32) {
    %c0_i32 = arith.constant 0 : i32
    %c0_i32_0 = arith.constant 0 : i32
    %c0_i32_1 = arith.constant 0 : i32
    return %c0_i32, %c0_i32_0 : i32, i32
  }
  func.func @transform_6(%arg0: i32) -> (i32, i32) {
    %c0_i32 = arith.constant 0 : i32
    %c0_i32_0 = arith.constant 0 : i32
    %c0_i32_1 = arith.constant 0 : i32
    return %c0_i32, %c0_i32_0 : i32, i32
  }
  func.func @transform_7(%arg0: i32) -> (i32, i32) {
    %c0_i32 = arith.constant 0 : i32
    %c0_i32_0 = arith.constant 0 : i32
    %c0_i32_1 = arith.constant 0 : i32
    return %c0_i32, %c0_i32_0 : i32, i32
  }
  func.func @transform_8(%arg0: i32) -> (i32, i32) {
    %c0_i32 = arith.constant 0 : i32
    %c0_i32_0 = arith.constant 0 : i32
    %c0_i32_1 = arith.constant 0 : i32
    return %c0_i32, %c0_i32_0 : i32, i32
  }
  func.func @transform_9(%arg0: i32) -> (i32, i32) {
    %c0_i32 = arith.constant 0 : i32
    %c0_i32_0 = arith.constant 0 : i32
    %c0_i32_1 = arith.constant 0 : i32
    return %c0_i32, %c0_i32_0 : i32, i32
  }
  func.func @transform_10(%arg0: i32) -> (i32, i32) {
    %c0_i32 = arith.constant 0 : i32
    %c0_i32_0 = arith.constant 0 : i32
    %c0_i32_1 = arith.constant 0 : i32
    return %c0_i32, %c0_i32_0 : i32, i32
  }
  func.func @transform_11(%arg0: i32) -> (i32, i32) {
    %c0_i32 = arith.constant 0 : i32
    %c0_i32_0 = arith.constant 0 : i32
    %c0_i32_1 = arith.constant 0 : i32
    return %c0_i32, %c0_i32_0 : i32, i32
  }
  func.func @transform_12(%arg0: i32) -> (i32, i32) {
    %c0_i32 = arith.constant 0 : i32
    %c0_i32_0 = arith.constant 0 : i32
    return %arg0, %c0_i32 : i32, i32
  }
}

</mosaic_0001>

<bundles_post_ra>
// kernel: tpu_custom_call.1
= control target key start
LH: loop header
LB: loop body
LE: loop exit
PB: predicated region body
PF: predicated region fallthrough
CT: control target
= control target key end

     0   :  { %v6351_v2 = vmov 0   ;;  %s6334_s0 = inlined_call_operand.vmem [shape: f32[256,8], index: 0, kind: input, shape index: {}]   ;;  %s6335_s1 = inlined_call_operand.vmem [shape: f32[4,128], index: 1, kind: input, shape index: {}]   ;;  %s6336_s2 = inlined_call_operand.vmem [shape: f32[1,128], index: 2, kind: input, shape index: {}]   ;;  %s6337_s3 = inlined_call_operand.vmem [shape: bf16[128,128], index: 3, kind: input, shape index: {}]   ;;  %s6338_s4 = inlined_call_operand.vmem [shape: f32[1,128], index: 4, kind: input, shape index: {}]   ;;  %s6339_s5 = inlined_call_operand.vmem [shape: bf16[128,4], index: 5, kind: input, shape index: {}]   ;;  %s6340_s6 = inlined_call_operand.vmem [shape: f32[1,4], index: 6, kind: input, shape index: {}]   ;;  %s6341_s7 = inlined_call_operand.vmem [shape: f32[4,128], index: 7, kind: input, shape index: {}]   ;;  %s6342_s8 = inlined_call_operand.vmem [shape: f32[1,128], index: 8, kind: input, shape index: {}]   ;;  %s6343_s9 = inlined_call_operand.vmem [shape: bf16[128,128], index: 9, kind: input, shape index: {}]   ;;  %s6344_s10 = inlined_call_operand.vmem [shape: f32[1,128], index: 10, kind: input, shape index: {}]   ;;  %s6345_s11 = inlined_call_operand.vmem [shape: f32[1,128], index: 11, kind: input, shape index: {}]   ;;  %s6346_s12 = inlined_call_operand.hbm [shape: bf16[256,128], index: 12, kind: output, shape index: {}]  }
   0x1   :  { %v4149_v0 = vld [vmem:[%s6334_s0 + $0x10] sm:$0xff]  ;;  %v4154_v1 = vld [vmem:[%s6334_s0] sm:$0xff]  ;;  %3831 = vset.pattern.permute.xlu1 %v6351_v2  ;;  %3830 = vset.pattern.permute.xlu0 %v6351_v2  ;;  %v4163_v3 = vld [vmem:[%s6334_s0 + $0x18] sm:$0xff] }
   0x2   :  { %89 = vperm.xlu1 %3831, %v4149_v0   ;;  %79 = vperm.xlu0 %3830, %v4154_v1   ;;  %v4168_v4 = vld [vmem:[%s6334_s0 + $0x8] sm:$0xff]  ;;  %v4180_v6 = vld [vmem:[%s6334_s0 + $0x20] sm:$0xff]  ;;  %v4187_v7 = vld [vmem:[%s6334_s0 + $0x38] sm:$0xff] }
   0x3   :  { %v4175_v5 = vld [vmem:[%s6334_s0 + $0x28] sm:$0xff]  ;;  %v4192_v8 = vld [vmem:[%s6334_s0 + $0x30] sm:$0xff]  ;;  %v4202_v10 = vld [vmem:[%s6334_s0 + $0x40] sm:$0xff] }
   0x4   :  { %v4197_v9 = vld [vmem:[%s6334_s0 + $0x48] sm:$0xff]  ;;  %v4209_v11 = vld [vmem:[%s6334_s0 + $0x58] sm:$0xff]  ;;  %v4214_v12 = vld [vmem:[%s6334_s0 + $0x50] sm:$0xff] }
   0x5   :  { %v4221_v13 = vld [vmem:[%s6334_s0 + $0x68] sm:$0xff]  ;;  %v4226_v14 = vld [vmem:[%s6334_s0 + $0x60] sm:$0xff]  ;;  %v4233_v15 = vld [vmem:[%s6334_s0 + $0x78] sm:$0xff] }
   0x6   :  { %94 = vperm.xlu1 %3831, %v4163_v3   ;;  %84 = vperm.xlu0 %3830, %v4168_v4   ;;  %v4240_v16 = vld [vmem:[%s6334_s0 + $0x70] sm:$0xff] }
   0xa   :  { %104 = vperm.xlu1 %3831, %v4175_v5   ;;  %99 = vperm.xlu0 %3830, %v4180_v6  }
   0xe   :  { %114 = vperm.xlu1 %3831, %v4187_v7   ;;  %109 = vperm.xlu0 %3830, %v4192_v8  }
  0x12   :  { %124 = vperm.xlu1 %3831, %v4197_v9   ;;  %119 = vperm.xlu0 %3830, %v4202_v10  }
  0x16   :  { %134 = vperm.xlu1 %3831, %v4209_v11   ;;  %129 = vperm.xlu0 %3830, %v4214_v12  }
  0x1a   :  { %144 = vperm.xlu1 %3831, %v4221_v13   ;;  %139 = vperm.xlu0 %3830, %v4226_v14  }
  0x1b   :  { %17 = vsyncpa [#allocation3], 0  ;;  %v4247_v17 = vld [vmem:[%s6334_s0 + $0x88] sm:$0xff]  ;;  %v4252_v18 = vld [vmem:[%s6334_s0 + $0x80] sm:$0xff]  ;;  %v6349_v33 = vmov 1   ;;  %v6347_v38 = vmov 2  }
  0x1c   :  { %v4259_v19 = vld [vmem:[%s6334_s0 + $0x98] sm:$0xff]  ;;  %v4264_v20 = vld [vmem:[%s6334_s0 + $0x90] sm:$0xff]  ;;  %v4271_v21 = vld [vmem:[%s6334_s0 + $0xa8] sm:$0xff] }
  0x1d   :  { %v4276_v22 = vld [vmem:[%s6334_s0 + $0xa0] sm:$0xff]  ;;  %v4283_v23 = vld [vmem:[%s6334_s0 + $0xb8] sm:$0xff]  ;;  %v4288_v24 = vld [vmem:[%s6334_s0 + $0xb0] sm:$0xff] }
  0x1e   :  { %154 = vperm.xlu1 %3831, %v4233_v15   ;;  %149 = vperm.xlu0 %3830, %v4240_v16   ;;  %v4295_v25 = vld [vmem:[%s6334_s0 + $0xc8] sm:$0xff]  ;;  %v4300_v26 = vld [vmem:[%s6334_s0 + $0xc0] sm:$0xff]  ;;  %v4307_v27 = vld [vmem:[%s6334_s0 + $0xd8] sm:$0xff] }
  0x1f   :  { %v4312_v28 = vld [vmem:[%s6334_s0 + $0xd0] sm:$0xff]  ;;  %v4319_v29 = vld [vmem:[%s6334_s0 + $0xe8] sm:$0xff]  ;;  %v4324_v30 = vld [vmem:[%s6334_s0 + $0xe0] sm:$0xff] }
  0x20   :  { %v4331_v31 = vld [vmem:[%s6334_s0 + $0xf8] sm:$0xff]  ;;  %v4336_v32 = vld [vmem:[%s6334_s0 + $0xf0] sm:$0xff] }
  0x21   :  { %v3957_v61 = vld [vmem:[%s6337_s3 + $0x38] sm:$0xff]  }
  0x22   :  { %164 = vperm.xlu1 %3831, %v4247_v17   ;;  %159 = vperm.xlu0 %3830, %v4252_v18  }
  0x23   :  { %3662 = vmatprep.subr.bf16.mxu0 %v3957_v61  ;;  %3806 = vmatprep.subr.bf16.mxu1 %v3957_v61 }
  0x24   :  { %3663 = vmatpush3.bf16.msra.mxu0 %v3957_v61  ;;  %3814 = vmatpush3.bf16.msra.mxu1 %v3957_v61  ;;  %v3959_v61 = vld [vmem:[%s6337_s3 + $0x28] sm:$0xff]  }
  0x26   :  { %174 = vperm.xlu1 %3831, %v4259_v19   ;;  %169 = vperm.xlu0 %3830, %v4264_v20  }
  0x2a   :  { %184 = vperm.xlu1 %3831, %v4271_v21   ;;  %179 = vperm.xlu0 %3830, %v4276_v22  }
  0x2e   :  { %194 = vperm.xlu1 %3831, %v4283_v23   ;;  %189 = vperm.xlu0 %3830, %v4288_v24  }
  0x32   :  { %204 = vperm.xlu1 %3831, %v4295_v25   ;;  %199 = vperm.xlu0 %3830, %v4300_v26  }
  0x36   :  { %214 = vperm.xlu1 %3831, %v4307_v27   ;;  %209 = vperm.xlu0 %3830, %v4312_v28  }
  0x3a   :  { %224 = vperm.xlu1 %3831, %v4319_v29   ;;  %219 = vperm.xlu0 %3830, %v4324_v30  }
  0x3e   :  { %234 = vperm.xlu1 %3831, %v4331_v31   ;;  %229 = vperm.xlu0 %3830, %v4336_v32  }
  0x42   :  { %3833 = vset.pattern.permute.xlu1 %v6349_v33  ;;  %3832 = vset.pattern.permute.xlu0 %v6349_v33 }
  0x43   :  { %317 = vperm.xlu1 %3833, %v4168_v4   ;;  %313 = vperm.xlu0 %3832, %v4154_v1  }
  0x47   :  { %321 = vperm.xlu1 %3833, %v4149_v0   ;;  %325 = vperm.xlu0 %3832, %v4163_v3  }
  0x4b   :  { %329 = vperm.xlu1 %3833, %v4180_v6   ;;  %333 = vperm.xlu0 %3832, %v4175_v5  }
  0x4f   :  { %337 = vperm.xlu1 %3833, %v4192_v8   ;;  %341 = vperm.xlu0 %3832, %v4187_v7  }
  0x53   :  { %345 = vperm.xlu1 %3833, %v4202_v10   ;;  %349 = vperm.xlu0 %3832, %v4197_v9  }
  0x57   :  { %353 = vperm.xlu1 %3833, %v4214_v12   ;;  %357 = vperm.xlu0 %3832, %v4209_v11  }
  0x5b   :  { %361 = vperm.xlu1 %3833, %v4226_v14   ;;  %365 = vperm.xlu0 %3832, %v4221_v13  }
  0x5f   :  { %369 = vperm.xlu1 %3833, %v4240_v16   ;;  %373 = vperm.xlu0 %3832, %v4233_v15  }
  0x63   :  { %377 = vperm.xlu1 %3833, %v4252_v18   ;;  %381 = vperm.xlu0 %3832, %v4247_v17  }
  0x67   :  { %385 = vperm.xlu1 %3833, %v4264_v20   ;;  %389 = vperm.xlu0 %3832, %v4259_v19  }
  0x6b   :  { %393 = vperm.xlu1 %3833, %v4276_v22   ;;  %397 = vperm.xlu0 %3832, %v4271_v21  }
  0x6f   :  { %401 = vperm.xlu1 %3833, %v4288_v24   ;;  %405 = vperm.xlu0 %3832, %v4283_v23  }
  0x73   :  { %409 = vperm.xlu1 %3833, %v4300_v26   ;;  %413 = vperm.xlu0 %3832, %v4295_v25  }
  0x77   :  { %417 = vperm.xlu1 %3833, %v4312_v28   ;;  %421 = vperm.xlu0 %3832, %v4307_v27  }
  0x7b   :  { %425 = vperm.xlu1 %3833, %v4324_v30   ;;  %429 = vperm.xlu0 %3832, %v4319_v29  }
  0x7d   :  { %v4372_v34 = vpop.permute.xlu1 %89  ;;  %v4374_v35 = vpop.permute.xlu0 %79 }
  0x7f   :  { %433 = vperm.xlu1 %3833, %v4336_v32   ;;  %437 = vperm.xlu0 %3832, %v4331_v31  }
  0x81   :  { %v4378_v36 = vpop.permute.xlu1 %94  ;;  %v4380_v37 = vpop.permute.xlu0 %84 }
  0x83   :  { %3834 = vset.pattern.permute.xlu1 %v6347_v38  ;;  %3835 = vset.pattern.permute.xlu0 %v6347_v38  ;;  %v3958_v38 = vld [vmem:[%s6337_s3 + $0x30] sm:$0xff]  }
  0x84   :  { %510 = vperm.xlu1 %3834, %v4154_v1   ;;  %514 = vperm.xlu0 %3835, %v4168_v4  }
  0x85   :  { %v4386_v39 = vpop.permute.xlu1 %104  ;;  %v4388_v40 = vpop.permute.xlu0 %99  ;;  %3664 = vmatprep.subr.bf16.mxu0 %v3958_v38  ;;  %3807 = vmatprep.subr.bf16.mxu1 %v3958_v38 }
  0x86   :  { %3665 = vmatpush3.bf16.msra.mxu0 %v3958_v38  ;;  %3815 = vmatpush3.bf16.msra.mxu1 %v3958_v38  ;;  %v3960_v38 = vld [vmem:[%s6337_s3 + $0x20] sm:$0xff]  }
  0x87   :  { %3666 = vmatprep.subr.bf16.mxu0 %v3959_v61  ;;  %3808 = vmatprep.subr.bf16.mxu1 %v3959_v61 }
  0x88   :  { %518 = vperm.xlu1 %3834, %v4149_v0   ;;  %526 = vperm.xlu0 %3835, %v4180_v6  }
  0x89   :  { %v4392_v41 = vpop.permute.xlu1 %114  ;;  %v4394_v42 = vpop.permute.xlu0 %109 }
  0x8a   :  { %3667 = vmatpush3.bf16.msra.mxu0 %v3959_v61  ;;  %3816 = vmatpush3.bf16.msra.mxu1 %v3959_v61  ;;  %v3961_v61 = vld [vmem:[%s6337_s3 + $0x18] sm:$0xff]  }
  0x8b   :  { %3668 = vmatprep.subr.bf16.mxu0 %v3960_v38  ;;  %3809 = vmatprep.subr.bf16.mxu1 %v3960_v38 }
  0x8c   :  { %522 = vperm.xlu1 %3834, %v4163_v3   ;;  %534 = vperm.xlu0 %3835, %v4192_v8  }
  0x8d   :  { %v4398_v43 = vpop.permute.xlu1 %124  ;;  %v4400_v44 = vpop.permute.xlu0 %119 }
  0x8e   :  { %3669 = vmatpush3.bf16.msra.mxu0 %v3960_v38  ;;  %3817 = vmatpush3.bf16.msra.mxu1 %v3960_v38  ;;  %v3962_v38 = vld [vmem:[%s6337_s3 + $0x10] sm:$0xff]  }
  0x8f   :  { %3670 = vmatprep.subr.bf16.mxu0 %v3961_v61  ;;  %3810 = vmatprep.subr.bf16.mxu1 %v3961_v61 }
  0x90   :  { %530 = vperm.xlu1 %3834, %v4175_v5   ;;  %542 = vperm.xlu0 %3835, %v4202_v10  }
  0x91   :  { %v4404_v45 = vpop.permute.xlu1 %134  ;;  %v4406_v46 = vpop.permute.xlu0 %129 }
  0x92   :  { %3671 = vmatpush3.bf16.msra.mxu0 %v3961_v61  ;;  %3818 = vmatpush3.bf16.msra.mxu1 %v3961_v61 }
  0x93   :  { %3672 = vmatprep.subr.bf16.mxu0 %v3962_v38  ;;  %3811 = vmatprep.subr.bf16.mxu1 %v3962_v38 }
  0x94   :  { %538 = vperm.xlu1 %3834, %v4187_v7   ;;  %550 = vperm.xlu0 %3835, %v4214_v12  }
  0x95   :  { %v4410_v47 = vpop.permute.xlu1 %144  ;;  %v4412_v48 = vpop.permute.xlu0 %139 }
  0x96   :  { %3673 = vmatpush3.bf16.msra.mxu0 %v3962_v38  ;;  %3819 = vmatpush3.bf16.msra.mxu1 %v3962_v38 }
  0x98   :  { %546 = vperm.xlu1 %3834, %v4197_v9   ;;  %558 = vperm.xlu0 %3835, %v4226_v14  }
  0x99   :  { %v4416_v49 = vpop.permute.xlu1 %154  ;;  %v4418_v50 = vpop.permute.xlu0 %149 }
  0x9c   :  { %554 = vperm.xlu1 %3834, %v4209_v11   ;;  %566 = vperm.xlu0 %3835, %v4240_v16  }
  0x9d   :  { %v4422_v51 = vpop.permute.xlu1 %164  ;;  %v4424_v52 = vpop.permute.xlu0 %159 }
  0xa0   :  { %562 = vperm.xlu1 %3834, %v4221_v13   ;;  %574 = vperm.xlu0 %3835, %v4252_v18  }
  0xa1   :  { %v4428_v53 = vpop.permute.xlu1 %174  ;;  %v4430_v54 = vpop.permute.xlu0 %169 }
  0xa4   :  { %570 = vperm.xlu1 %3834, %v4233_v15   ;;  %582 = vperm.xlu0 %3835, %v4264_v20  }
  0xa5   :  { %v4434_v55 = vpop.permute.xlu1 %184  ;;  %v4436_v56 = vpop.permute.xlu0 %179 }
  0xa8   :  { %578 = vperm.xlu1 %3834, %v4247_v17   ;;  %590 = vperm.xlu0 %3835, %v4276_v22  }
  0xa9   :  { %v4440_v57 = vpop.permute.xlu1 %194  ;;  %v4442_v58 = vpop.permute.xlu0 %189 }
  0xac   :  { %586 = vperm.xlu1 %3834, %v4259_v19   ;;  %598 = vperm.xlu0 %3835, %v4288_v24  }
  0xad   :  { %v4446_v59 = vpop.permute.xlu1 %204  ;;  %v4448_v60 = vpop.permute.xlu0 %199 }
  0xae   :  { %6371 = vst [vmem:[#allocation5_spill] sm:$0xff] %v4446_v59  ;;  %6372 = vst [vmem:[#allocation6_spill] sm:$0xff] %v4448_v60  ;;  %v3963_v59 = vld [vmem:[%s6337_s3 + $0x8] sm:$0xff]  }
  0xaf   :  { %3674 = vmatprep.subr.bf16.mxu0 %v3963_v59  ;;  %3812 = vmatprep.subr.bf16.mxu1 %v3963_v59 }
  0xb0   :  { %594 = vperm.xlu1 %3834, %v4271_v21   ;;  %606 = vperm.xlu0 %3835, %v4300_v26  }
  0xb1   :  { %v4455_v62 = vpop.permute.xlu1 %214  ;;  %v4457_v63 = vpop.permute.xlu0 %209  ;;  %3675 = vmatpush3.bf16.msra.mxu0 %v3963_v59  ;;  %3820 = vmatpush3.bf16.msra.mxu1 %v3963_v59 }
  0xb2   :  { %6373 = vst [vmem:[#allocation7_spill] sm:$0xff] %v4455_v62  ;;  %6374 = vst [vmem:[#allocation8_spill] sm:$0xff] %v4457_v63 }
  0xb4   :  { %602 = vperm.xlu1 %3834, %v4283_v23   ;;  %614 = vperm.xlu0 %3835, %v4312_v28  }
  0xb5   :  { %v4464_v33 = vpop.permute.xlu1 %224  ;;  %v4466_v2 = vpop.permute.xlu0 %219 }
  0xb6   :  { %6375 = vst [vmem:[#allocation9_spill] sm:$0xff] %v4464_v33  ;;  %6376 = vst [vmem:[#allocation10_spill] sm:$0xff] %v4466_v2 }
  0xb8   :  { %610 = vperm.xlu1 %3834, %v4295_v25   ;;  %622 = vperm.xlu0 %3835, %v4324_v30  }
  0xb9   :  { %v4473_v63 = vpop.permute.xlu1 %234  ;;  %v4475_v62 = vpop.permute.xlu0 %229 }
  0xba   :  { %6377 = vst [vmem:[#allocation11_spill] sm:$0xff] %v4473_v63  ;;  %6378 = vst [vmem:[#allocation12_spill] sm:$0xff] %v4475_v62  ;;  %v6353_v62 = vmov 3  }
  0xbc   :  { %618 = vperm.xlu1 %3834, %v4307_v27   ;;  %630 = vperm.xlu0 %3835, %v4336_v32  }
  0xbe   :  { %v4482_v2 = vpop.permute.xlu1 %317  ;;  %v4484_v33 = vpop.permute.xlu0 %313 }
  0xc0   :  { %626 = vperm.xlu1 %3834, %v4319_v29   ;;  %3836 = vset.pattern.permute.xlu0 %v6353_v62 }
  0xc1   :  { %707 = vperm.xlu0 %3836, %v4154_v1  }
  0xc2   :  { %v4492_v63 = vpop.permute.xlu1 %321  ;;  %v4494_v60 = vpop.permute.xlu0 %325 }
  0xc3   :  { %6379 = vst [vmem:[#allocation13_spill] sm:$0xff] %v4492_v63  ;;  %v6381_v63 = vmov 3  }
  0xc4   :  { %634 = vperm.xlu1 %3834, %v4331_v31  }
  0xc5   :  { %719 = vperm.xlu0 %3836, %v4163_v3  }
  0xc6   :  { %v4501_v62 = vpop.permute.xlu1 %329  ;;  %v4503_v1 = vpop.permute.xlu0 %333 }
  0xc7   :  { %6380 = vst [vmem:[#allocation14_spill] sm:$0xff] %v4501_v62  ;;  %v3964_v62 = vld [vmem:[%s6337_s3] sm:$0xff]  }
  0xc8   :  { %3837 = vset.pattern.permute.xlu1 %v6381_v63  ;;  %3676 = vmatprep.subr.bf16.mxu0 %v3964_v62 }
  0xc9   :  { %711 = vperm.xlu1 %3837, %v4168_v4   ;;  %727 = vperm.xlu0 %3836, %v4175_v5  }
  0xca   :  { %v4511_v61 = vpop.permute.xlu1 %337  ;;  %v4513_v3 = vpop.permute.xlu0 %341  ;;  %3813 = vmatprep.subr.bf16.mxu1 %v3964_v62  ;;  %3677 = vmatpush3.bf16.msra.mxu0 %v3964_v62 }
  0xcb   :  { %3821 = vmatpush3.bf16.msra.mxu1 %v3964_v62 }
  0xcd   :  { %715 = vperm.xlu1 %3837, %v4149_v0   ;;  %735 = vperm.xlu0 %3836, %v4187_v7  }
  0xce   :  { %v4520_v38 = vpop.permute.xlu1 %345  ;;  %v4522_v4 = vpop.permute.xlu0 %349 }
  0xd1   :  { %723 = vperm.xlu1 %3837, %v4180_v6   ;;  %743 = vperm.xlu0 %3836, %v4197_v9  }
  0xd2   :  { %v4526_v5 = vpop.permute.xlu1 %353  ;;  %v4528_v63 = vpop.permute.xlu0 %357 }
  0xd5   :  { %731 = vperm.xlu1 %3837, %v4192_v8   ;;  %751 = vperm.xlu0 %3836, %v4209_v11  }
  0xd6   :  { %v4532_v0 = vpop.permute.xlu1 %361  ;;  %v4534_v7 = vpop.permute.xlu0 %365 }
  0xd9   :  { %739 = vperm.xlu1 %3837, %v4202_v10   ;;  %759 = vperm.xlu0 %3836, %v4221_v13  }
  0xda   :  { %v4538_v59 = vpop.permute.xlu1 %369  ;;  %v4540_v6 = vpop.permute.xlu0 %373 }
  0xdd   :  { %747 = vperm.xlu1 %3837, %v4214_v12   ;;  %767 = vperm.xlu0 %3836, %v4233_v15  }
  0xde   :  { %v4544_v9 = vpop.permute.xlu1 %377  ;;  %v4546_v8 = vpop.permute.xlu0 %381 }
  0xdf   :  { %6382 = vst [vmem:[#allocation15_spill] sm:$0xff] %v4544_v9  ;;  %6383 = vst [vmem:[#allocation16_spill] sm:$0xff] %v4546_v8 }
  0xe1   :  { %755 = vperm.xlu1 %3837, %v4226_v14   ;;  %775 = vperm.xlu0 %3836, %v4247_v17  }
  0xe2   :  { %v4550_v11 = vpop.permute.xlu1 %385  ;;  %v4552_v10 = vpop.permute.xlu0 %389 }
  0xe3   :  { %6384 = vst [vmem:[#allocation17_spill] sm:$0xff] %v4550_v11  ;;  %6385 = vst [vmem:[#allocation18_spill] sm:$0xff] %v4552_v10 }
  0xe5   :  { %763 = vperm.xlu1 %3837, %v4240_v16   ;;  %783 = vperm.xlu0 %3836, %v4259_v19  }
  0xe6   :  { %v4556_v13 = vpop.permute.xlu1 %393  ;;  %v4558_v12 = vpop.permute.xlu0 %397 }
  0xe7   :  { %6386 = vst [vmem:[#allocation19_spill] sm:$0xff] %v4556_v13  ;;  %6387 = vst [vmem:[#allocation20_spill] sm:$0xff] %v4558_v12 }
  0xe9   :  { %771 = vperm.xlu1 %3837, %v4252_v18   ;;  %791 = vperm.xlu0 %3836, %v4271_v21  }
  0xea   :  { %v4562_v15 = vpop.permute.xlu1 %401  ;;  %v4564_v14 = vpop.permute.xlu0 %405 }
  0xeb   :  { %6388 = vst [vmem:[#allocation21_spill] sm:$0xff] %v4562_v15  ;;  %6389 = vst [vmem:[#allocation22_spill] sm:$0xff] %v4564_v14 }
  0xed   :  { %779 = vperm.xlu1 %3837, %v4264_v20   ;;  %799 = vperm.xlu0 %3836, %v4283_v23  }
  0xee   :  { %v4568_v17 = vpop.permute.xlu1 %409  ;;  %v4570_v16 = vpop.permute.xlu0 %413 }
  0xef   :  { %6390 = vst [vmem:[#allocation23_spill] sm:$0xff] %v4568_v17  ;;  %6391 = vst [vmem:[#allocation24_spill] sm:$0xff] %v4570_v16 }
  0xf1   :  { %787 = vperm.xlu1 %3837, %v4276_v22   ;;  %807 = vperm.xlu0 %3836, %v4295_v25  }
  0xf2   :  { %v4574_v19 = vpop.permute.xlu1 %417  ;;  %v4576_v18 = vpop.permute.xlu0 %421 }
  0xf3   :  { %6392 = vst [vmem:[#allocation25_spill] sm:$0xff] %v4574_v19  ;;  %6393 = vst [vmem:[#allocation26_spill] sm:$0xff] %v4576_v18 }
  0xf5   :  { %795 = vperm.xlu1 %3837, %v4288_v24   ;;  %815 = vperm.xlu0 %3836, %v4307_v27  }
  0xf6   :  { %v4580_v21 = vpop.permute.xlu1 %425  ;;  %v4582_v20 = vpop.permute.xlu0 %429 }
  0xf7   :  { %6394 = vst [vmem:[#allocation27_spill] sm:$0xff] %v4580_v21  ;;  %6395 = vst [vmem:[#allocation28_spill] sm:$0xff] %v4582_v20 }
  0xf9   :  { %803 = vperm.xlu1 %3837, %v4300_v26   ;;  %823 = vperm.xlu0 %3836, %v4319_v29  }
  0xfa   :  { %v4586_v23 = vpop.permute.xlu1 %433  ;;  %v4588_v22 = vpop.permute.xlu0 %437 }
  0xfb   :  { %6396 = vst [vmem:[#allocation29_spill] sm:$0xff] %v4586_v23  ;;  %6397 = vst [vmem:[#allocation30_spill] sm:$0xff] %v4588_v22 }
  0xfd   :  { %811 = vperm.xlu1 %3837, %v4312_v28   ;;  %831 = vperm.xlu0 %3836, %v4331_v31   ;;  %v4609_v28 = vld [vmem:[%s6339_s5 + $0x38] sm:$0xff]  }
  0xfe   :  { %6398 = vst [vmem:[#allocation31_spill] sm:$0xff] %v4609_v28  ;;  %3710 = vmatprep.subr.bf16.mxu1 %v4609_v28 }
  0xff   :  { %v4592_v25 = vpop.permute.xlu1 %510  ;;  %v4594_v24 = vpop.permute.xlu0 %514 }
 0x101   :  { %819 = vperm.xlu1 %3837, %v4324_v30  }
 0x103   :  { %v4597_v27 = vpop.permute.xlu1 %518  ;;  %v4599_v62 = vpop.permute.xlu0 %526 }
 0x105   :  { %827 = vperm.xlu1 %3837, %v4336_v32  }
 0x107   :  { %v4602_v26 = vpop.permute.xlu1 %522  ;;  %v4604_v29 = vpop.permute.xlu0 %534 }
 0x10b   :  { %v4611_v31 = vpop.permute.xlu1 %530  ;;  %v4613_v23 = vpop.permute.xlu0 %542 }
 0x10f   :  { %v4616_v30 = vpop.permute.xlu1 %538  ;;  %v4618_v22 = vpop.permute.xlu0 %550 }
 0x113   :  { %v4620_v32 = vpop.permute.xlu1 %546  ;;  %v4622_v21 = vpop.permute.xlu0 %558 }
 0x117   :  { %v4624_v20 = vpop.permute.xlu1 %554  ;;  %v4626_v19 = vpop.permute.xlu0 %566 }
 0x118   :  { %6399 = vst [vmem:[#allocation32_spill] sm:$0xff] %v4626_v19 }
 0x11b   :  { %v4628_v18 = vpop.permute.xlu1 %562  ;;  %v4630_v17 = vpop.permute.xlu0 %574 }
 0x11c   :  { %6400 = vst [vmem:[#allocation33_spill] sm:$0xff] %v4630_v17 }
 0x11f   :  { %v4632_v16 = vpop.permute.xlu1 %570  ;;  %v4634_v15 = vpop.permute.xlu0 %582 }
 0x120   :  { %6401 = vst [vmem:[#allocation34_spill] sm:$0xff] %v4632_v16  ;;  %6402 = vst [vmem:[#allocation35_spill] sm:$0xff] %v4634_v15  ;;  %v4655_v15 = vld [vmem:[%s6335_s1] ss:$0 sm:$0xff] }
 0x121   :  { %v259_v16 = vmul.f32 %v4655_v15, %v4430_v54 }
 0x123   :  { %v4636_v28 = vpop.permute.xlu1 %578  ;;  %v4638_v14 = vpop.permute.xlu0 %590 }
 0x124   :  { %6403 = vst [vmem:[#allocation36_spill] sm:$0xff] %v4636_v28  ;;  %6404 = vst [vmem:[#allocation37_spill] sm:$0xff] %v4638_v14  ;;  %v243_v14 = vmul.f32 %v4655_v15, %v4372_v34  ;;  %v246_v34 = vmul.f32 %v4655_v15, %v4386_v39 }
 0x127   :  { %v4640_v13 = vpop.permute.xlu1 %586  ;;  %v4642_v12 = vpop.permute.xlu0 %598 }
 0x128   :  { %6405 = vst [vmem:[#allocation38_spill] sm:$0xff] %v4640_v13  ;;  %6406 = vst [vmem:[#allocation39_spill] sm:$0xff] %v4642_v12  ;;  %v244_v12 = vmul.f32 %v4655_v15, %v4378_v36  ;;  %v250_v36 = vmul.f32 %v4655_v15, %v4398_v43  ;;  %v254_v43 = vmul.f32 %v4655_v15, %v4410_v47 }
 0x12b   :  { %v4644_v11 = vpop.permute.xlu1 %594  ;;  %v4646_v10 = vpop.permute.xlu0 %606 }
 0x12c   :  { %6407 = vst [vmem:[#allocation40_spill] sm:$0xff] %v4644_v11  ;;  %6408 = vst [vmem:[#allocation41_spill] sm:$0xff] %v4646_v10  ;;  %v4666_v10 = vld [vmem:[%s6336_s2] ss:$0 sm:$0xff]  ;;  %v248_v11 = vmul.f32 %v4655_v15, %v4392_v41  ;;  %v252_v41 = vmul.f32 %v4655_v15, %v4404_v45  ;;  %v255_v45 = vmul.f32 %v4655_v15, %v4418_v50 }
 0x12e   :  { %v4718_v47 = vadd.f32 %v4666_v10, %v248_v11  ;;  %v257_v11 = vmul.f32 %v4655_v15, %v4424_v52 }
 0x12f   :  { %v4648_v9 = vpop.permute.xlu1 %602  ;;  %v4650_v19 = vpop.permute.xlu0 %614 }
 0x130   :  { %6409 = vst [vmem:[#allocation42_spill] sm:$0xff] %v4648_v9  ;;  %6410 = vst [vmem:[#allocation43_spill] sm:$0xff] %v4650_v19  ;;  %v241_v19 = vmul.f32 %v4655_v15, %v4374_v35  ;;  %v242_v9 = vmul.f32 %v4655_v15, %v4380_v37  ;;  %v247_v35 = vmul.f32 %v4655_v15, %v4394_v42 }
 0x131   :  { %v251_v42 = vmul.f32 %v4655_v15, %v4406_v46  ;;  %v4715_v46 = vld [vmem:[%s6335_s1 + $0x1] ss:$0 sm:$0xff] }
 0x132   :  { %v279_v39 = vadd.f32 %v4666_v10, %v241_v19  ;;  %v280_v8 = vadd.f32 %v4666_v10, %v242_v9  ;;  %v284_v19 = vadd.f32 %v4666_v10, %v246_v34  ;;  %v4724_v9 = vadd.f32 %v4666_v10, %v250_v36  ;;  %v4743_v36 = vld [vmem:[%s6335_s1 + $0x2] ss:$0 sm:$0xff] }
 0x133   :  { %v4659_v17 = vpop.permute.xlu1 %610  ;;  %v4661_v13 = vpop.permute.xlu0 %622  ;;  %v4734_v34 = vadd.f32 %v4666_v10, %v252_v41  ;;  %v444_v52 = vmul.f32 %v4715_v46, %v4484_v33  ;;  %v261_v33 = vmul.f32 %v4655_v15, %v4436_v56  ;;  %v641_v54 = vmul.f32 %v4743_v36, %v4592_v25 }
 0x134   :  { %6411 = vst [vmem:[#allocation44_spill] sm:$0xff] %v4659_v17  ;;  %6412 = vst [vmem:[#allocation45_spill] sm:$0xff] %v4661_v13  ;;  %v245_v13 = vmul.f32 %v4655_v15, %v4388_v40  ;;  %v4679_v17 = vadd.f32 %v4666_v10, %v243_v14  ;;  %v282_v40 = vadd.f32 %v4666_v10, %v244_v12 }
 0x135   :  { %v249_v14 = vmul.f32 %v4655_v15, %v4400_v44  ;;  %v256_v44 = vmul.f32 %v4655_v15, %v4416_v49  ;;  %v258_v49 = vmul.f32 %v4655_v15, %v4422_v51  ;;  %v447_v56 = vmul.f32 %v4715_v46, %v4494_v60 }
 0x136   :  { %v4706_v12 = vadd.f32 %v4666_v10, %v245_v13  ;;  %v642_v25 = vmul.f32 %v4743_v36, %v4594_v24  ;;  %v644_v60 = vmul.f32 %v4743_v36, %v4602_v26  ;;  %v449_v24 = vmul.f32 %v4715_v46, %v4503_v1  ;;  %v6425_v1 = vld [vmem:[#allocation5_spill] sm:$0xff] }
 0x137   :  { %v4687_v28 = vpop.permute.xlu1 %618  ;;  %v4689_v37 = vpop.permute.xlu0 %630  ;;  %v4731_v50 = vadd.f32 %v4666_v10, %v249_v14  ;;  %v4749_v14 = vadd.f32 %v4666_v10, %v254_v43  ;;  %v4772_v43 = vadd.f32 %v4666_v10, %v258_v49  ;;  %v264_v49 = vmul.f32 %v4655_v15, %v4440_v57  ;;  %v6423_v57 = vld [vmem:[#allocation13_spill] sm:$0xff] }
 0x138   :  { %6413 = vst [vmem:[#allocation46_spill] sm:$0xff] %v4687_v28  ;;  %6414 = vst [vmem:[#allocation47_spill] sm:$0xff] %v4689_v37  ;;  %v253_v37 = vmul.f32 %v4655_v15, %v4412_v48  ;;  %v4721_v48 = vadd.f32 %v4666_v10, %v247_v35  ;;  %v260_v35 = vmul.f32 %v4655_v15, %v4428_v53 }
 0x139   :  { %v4757_v53 = vadd.f32 %v4666_v10, %v256_v44  ;;  %v4760_v28 = vadd.f32 %v4666_v10, %v255_v45  ;;  %6418 = vst [vmem:[#allocation51_spill] sm:$0xff] %v4772_v43  ;;  %v445_v44 = vmul.f32 %v4715_v46, %v4482_v2  ;;  %v263_v2 = vmul.f32 %v4655_v15, %v4442_v58 }
 0x13a   :  { %v4752_v41 = vadd.f32 %v4666_v10, %v253_v37  ;;  %v4769_v37 = vld [vmem:[%s6335_s1 + $0x3] ss:$0 sm:$0xff]  ;;  %v4808_v58 = vadd.f32 %v4666_v10, %v261_v33 }
 0x13b   :  { %v4728_v13 = vpop.permute.xlu1 %626  ;;  %6416 = vst [vmem:[#allocation49_spill] sm:$0xff] %v4757_v53  ;;  %6417 = vst [vmem:[#allocation50_spill] sm:$0xff] %v4760_v28  ;;  %v4786_v28 = vadd.f32 %v4666_v10, %v260_v35  ;;  %v476_v53 = vadd.f32 %v444_v52, %v279_v39  ;;  %v477_v39 = vadd.f32 %v445_v44, %v280_v8 }
 0x13c   :  { %6415 = vst [vmem:[#allocation48_spill] sm:$0xff] %v4728_v13  ;;  %v708_v51 = vpop.permute.xlu0 %707  ;;  %v4746_v13 = vadd.f32 %v4666_v10, %v251_v42  ;;  %v262_v42 = vmul.f32 %v4655_v15, %v4434_v55  ;;  %v4783_v55 = vadd.f32 %v4666_v10, %v257_v11  ;;  %v479_v52 = vadd.f32 %v447_v56, %v282_v40  ;;  %v6426_v40 = vld [vmem:[#allocation14_spill] sm:$0xff] }
 0x13d   :  { %6420 = vst [vmem:[#allocation53_spill] sm:$0xff] %v4786_v28  ;;  %v838_v11 = vmul.f32 %v4769_v37, %v708_v51  ;;  %v446_v28 = vmul.f32 %v4715_v46, %v6423_v57  ;;  %v673_v51 = vadd.f32 %v641_v54, %v476_v53  ;;  %v4819_v26 = vadd.f32 %v4666_v10, %v263_v2  ;;  %v6427_v56 = vld [vmem:[#allocation6_spill] sm:$0xff] }
 0x13e   :  { %v4801_v35 = vadd.f32 %v4666_v10, %v262_v42  ;;  %v643_v42 = vmul.f32 %v4743_v36, %v4597_v27  ;;  %v674_v33 = vadd.f32 %v642_v25, %v477_v39  ;;  %v266_v53 = vmul.f32 %v4655_v15, %v6425_v1 }
 0x13f   :  { %v4780_v45 = vpop.permute.xlu1 %634  ;;  %v870_v44 = vadd.f32 %v838_v11, %v673_v51  ;;  %v478_v54 = vadd.f32 %v446_v28, %v4679_v17  ;;  %v676_v27 = vadd.f32 %v644_v60, %v479_v52  ;;  %v646_v2 = vmul.f32 %v4743_v36, %v4611_v31 }
 0x140   :  { %6419 = vst [vmem:[#allocation52_spill] sm:$0xff] %v4780_v45  ;;  %v720_v43 = vpop.permute.xlu0 %719  ;;  %v4798_v45 = vadd.f32 %v4666_v10, %v259_v16  ;;  %6422 = vst [vmem:[#allocation55_spill] sm:$0xff] %v4801_v35  ;;  %v4813_v16 = vadd.f32 %v4666_v10, %v264_v49  ;;  %v448_v49 = vmul.f32 %v4715_v46, %v6426_v40 }
 0x141   :  { %v841_v57 = vmul.f32 %v4769_v37, %v720_v43  ;;  %v265_v43 = vmul.f32 %v4655_v15, %v6427_v56  ;;  %v451_v11 = vmul.f32 %v4715_v46, %v4513_v3  ;;  %v645_v39 = vmul.f32 %v4743_v36, %v4599_v62 }
 0x142   :  { %6421 = vst [vmem:[#allocation54_spill] sm:$0xff] %v4798_v45  ;;  %6424 = vst [vmem:[#allocation13_spill] sm:$0xff] %v4813_v16  ;;  %v481_v16 = vadd.f32 %v449_v24, %v284_v19  ;;  %v902_v1 = vmax.f32 %v870_v44, 0.0  ;;  %v4838_v24 = vadd.f32 %v4666_v10, %v266_v53  ;;  %v480_v31 = vadd.f32 %v448_v49, %v4706_v12 }
 0x143   :  { %v873_v17 = vadd.f32 %v841_v57, %v676_v27  ;;  %v450_v3 = vmul.f32 %v4715_v46, %v4511_v61  ;;  %v453_v62 = vmul.f32 %v4715_v46, %v4522_v4  ;;  %v648_v57 = vmul.f32 %v4743_v36, %v4616_v30 }
 0x144   :  { %v712_v35 = vpop.permute.xlu1 %711  ;;  %v728_v45 = vpop.permute.xlu0 %727  ;;  %v677_v44 = vadd.f32 %v645_v39, %v480_v31  ;;  %v647_v53 = vmul.f32 %v4743_v36, %v4604_v29  ;;  %v4853_v30 = vadd.f32 %v4666_v10, %v265_v43  ;;  %v650_v29 = vmul.f32 %v4743_v36, %v4620_v32 }
 0x145   :  { %v839_v8 = vmul.f32 %v4769_v37, %v712_v35  ;;  %v675_v35 = vadd.f32 %v643_v42, %v478_v54  ;;  %v843_v60 = vmul.f32 %v4769_v37, %v728_v45  ;;  %v678_v42 = vadd.f32 %v646_v2, %v481_v16 }
 0x146   :  { %v905_v54 = vmax.f32 %v873_v17, 0.0  ;;  %v482_v16 = vadd.f32 %v450_v3, %v4721_v48  ;;  %v485_v56 = vadd.f32 %v453_v62, %v4724_v9  ;;  %v649_v43 = vmul.f32 %v4743_v36, %v4613_v23  ;;  %v6428_v23 = vld [vmem:[#allocation7_spill] sm:$0xff] }
 0x147   :  { %v871_v25 = vadd.f32 %v839_v8, %v674_v33  ;;  %v483_v8 = vadd.f32 %v451_v11, %v4718_v47  ;;  %v875_v49 = vadd.f32 %v843_v60, %v678_v42  ;;  %v452_v47 = vmul.f32 %v4715_v46, %v4520_v38 }
 0x148   :  { %v716_v28 = vpop.permute.xlu1 %715  ;;  %v736_v51 = vpop.permute.xlu0 %735  ;;  %v679_v39 = vadd.f32 %v647_v53, %v482_v16  ;;  %v652_v31 = vmul.f32 %v4743_v36, %v4624_v20 }
 0x149   :  { %v840_v52 = vmul.f32 %v4769_v37, %v716_v28  ;;  %v903_v19 = vmax.f32 %v871_v25, 0.0  ;;  %v845_v27 = vmul.f32 %v4769_v37, %v736_v51  ;;  %v680_v2 = vadd.f32 %v648_v57, %v483_v8 }
 0x14a   :  { %v907_v38 = vmax.f32 %v875_v49, 0.0  ;;  %v484_v9 = vadd.f32 %v452_v47, %v4731_v50  ;;  %v651_v50 = vmul.f32 %v4743_v36, %v4618_v22  ;;  %v654_v49 = vmul.f32 %v4743_v36, %v4628_v18 }
 0x14b   :  { %v872_v45 = vadd.f32 %v840_v52, %v675_v35  ;;  %v934_v33 = vpack.c.bf16 %v903_v19, %v902_v1  ;;  %v455_v35 = vmul.f32 %v4715_v46, %v4528_v63  ;;  %v877_v51 = vadd.f32 %v845_v27, %v680_v2 }
 0x14c   :  { %v724_v12 = vpop.permute.xlu1 %723  ;;  %v744_v40 = vpop.permute.xlu0 %743  ;;  %v454_v52 = vmul.f32 %v4715_v46, %v4526_v5  ;;  %v457_v63 = vmul.f32 %v4715_v46, %v4534_v7  ;;  %v682_v1 = vadd.f32 %v650_v29, %v485_v56  ;;  %v268_v19 = vmul.f32 %v4655_v15, %v6428_v23 }
 0x14d   :  { %v904_v61 = vmax.f32 %v872_v45, 0.0  ;;  %v842_v4 = vmul.f32 %v4769_v37, %v724_v12  ;;  %3678 = vmatprep.mubr.bf16.mxu0 %v934_v33  ;;  %v847_v48 = vmul.f32 %v4769_v37, %v744_v40  ;;  %v487_v42 = vadd.f32 %v455_v35, %v4734_v34  ;;  %v6430_v35 = vld [vmem:[#allocation34_spill] sm:$0xff] }
 0x14e   :  { %v681_v57 = vadd.f32 %v649_v43, %v484_v9  ;;  %v909_v8 = vmax.f32 %v877_v51, 0.0  ;;  %v486_v12 = vadd.f32 %v454_v52, %v4746_v13  ;;  %v456_v34 = vmul.f32 %v4715_v46, %v4532_v0 }
 0x14f   :  { %v874_v25 = vadd.f32 %v842_v4, %v677_v44  ;;  %v935_v11 = vpack.c.bf16 %v905_v54, %v904_v61  ;;  %v879_v45 = vadd.f32 %v847_v48, %v682_v1  ;;  %v6429_v54 = vld [vmem:[#allocation8_spill] sm:$0xff]  ;;  %v489_v22 = vadd.f32 %v457_v63, %v4749_v14 }
 0x150   :  { %v732_v17 = vpop.permute.xlu1 %731  ;;  %v752_v28 = vpop.permute.xlu0 %751  ;;  %v267_v20 = vmul.f32 %v4655_v15, %v6429_v54  ;;  %v684_v40 = vadd.f32 %v652_v31, %v487_v42  ;;  %v459_v4 = vmul.f32 %v4715_v46, %v4540_v6  ;;  %v683_v16 = vadd.f32 %v651_v50, %v486_v12  ;;  %v6435_v42 = vld [vmem:[#allocation15_spill] sm:$0xff] }
 0x151   :  { %v906_v60 = vmax.f32 %v874_v25, 0.0  ;;  %v844_v32 = vmul.f32 %v4769_v37, %v732_v17  ;;  %3679 = vmatmul.mubr.bf16.vlgmr.msra.gmra.mxu0 %v935_v11  ;;  %v849_v44 = vmul.f32 %v4769_v37, %v752_v28  ;;  %v653_v47 = vmul.f32 %v4743_v36, %v4622_v21 }
 0x152   :  { %v911_v29 = vmax.f32 %v879_v45, 0.0  ;;  %v4896_v18 = vadd.f32 %v4666_v10, %v268_v19  ;;  %v488_v11 = vadd.f32 %v456_v34, %v4752_v41  ;;  %v458_v6 = vmul.f32 %v4715_v46, %v4538_v59  ;;  %v6436_v45 = vld [vmem:[#allocation51_spill] sm:$0xff]  ;;  %v6439_v34 = vld [vmem:[#allocation33_spill] sm:$0xff] }
 0x153   :  { %v876_v3 = vadd.f32 %v844_v32, %v679_v39  ;;  %v936_v62 = vpack.c.bf16 %v907_v38, %v906_v60  ;;  %v881_v2 = vadd.f32 %v849_v44, %v684_v40  ;;  %v656_v21 = vmul.f32 %v4743_v36, %v6430_v35  ;;  %v6431_v39 = vld [vmem:[#allocation16_spill] sm:$0xff]  ;;  %v6432_v38 = vld [vmem:[#allocation49_spill] sm:$0xff] }
 0x154   :  { %v740_v5 = vpop.permute.xlu1 %739  ;;  %v760_v33 = vpop.permute.xlu0 %759  ;;  %v461_v43 = vmul.f32 %v4715_v46, %v6431_v39  ;;  %v686_v48 = vadd.f32 %v654_v49, %v489_v22  ;;  %v491_v51 = vadd.f32 %v459_v4, %v6432_v38  ;;  %v685_v60 = vadd.f32 %v653_v47, %v488_v11  ;;  %v6433_v32 = vld [vmem:[#allocation32_spill] sm:$0xff]  ;;  %v6440_v47 = vld [vmem:[#allocation9_spill] sm:$0xff]  ;;  %v6443_v11 = vld [vmem:[#allocation38_spill] sm:$0xff] }
 0x155   :  { %v908_v7 = vmax.f32 %v876_v3, 0.0  ;;  %v846_v53 = vmul.f32 %v4769_v37, %v740_v5  ;;  %3682 = vmatprep.mubr.bf16.mxu0 %v936_v62  ;;  %v851_v14 = vmul.f32 %v4769_v37, %v760_v33  ;;  %v655_v9 = vmul.f32 %v4743_v36, %v6433_v32  ;;  %v6434_v3 = vld [vmem:[#allocation50_spill] sm:$0xff]  ;;  %v6437_v33 = vld [vmem:[#allocation36_spill] sm:$0xff]  ;;  %v6444_v39 = vld [vmem:[#allocation53_spill] sm:$0xff] }
 0x156   :  { %v913_v59 = vmax.f32 %v881_v2, 0.0  ;;  %v4911_v31 = vadd.f32 %v4666_v10, %v267_v20  ;;  %v490_v62 = vadd.f32 %v458_v6, %v6434_v3  ;;  %v688_v50 = vadd.f32 %v656_v21, %v491_v51  ;;  %v6449_v3 = vld [vmem:[#allocation40_spill] sm:$0xff] }
 0x157   :  { %v878_v61 = vadd.f32 %v846_v53, %v681_v57  ;;  %v937_v27 = vpack.c.bf16 %v909_v8, %v908_v7  ;;  %v883_v1 = vadd.f32 %v851_v14, %v686_v48  ;;  %v460_v57 = vmul.f32 %v4715_v46, %v6435_v42  ;;  %v6438_v53 = vld [vmem:[#allocation18_spill] sm:$0xff]  ;;  %v6450_v42 = vld [vmem:[#allocation55_spill] sm:$0xff] }
 0x158   :  { %v748_v13 = vpop.permute.xlu1 %747  ;;  %v768_v56 = vpop.permute.xlu0 %767  ;;  %v493_v5 = vadd.f32 %v461_v43, %v6436_v45  ;;  %v658_v8 = vmul.f32 %v4743_v36, %v6437_v33  ;;  %v463_v54 = vmul.f32 %v4715_v46, %v6438_v53  ;;  %v687_v12 = vadd.f32 %v655_v9, %v490_v62  ;;  %v6451_v33 = vld [vmem:[#allocation22_spill] sm:$0xff] }
 0x159   :  { %v910_v0 = vmax.f32 %v878_v61, 0.0  ;;  %v848_v25 = vmul.f32 %v4769_v37, %v748_v13  ;;  %3683 = vmatmul.mubr.bf16.gmra.mxu0 %v937_v27  ;;  %v853_v41 = vmul.f32 %v4769_v37, %v768_v56  ;;  %v657_v20 = vmul.f32 %v4743_v36, %v6439_v34  ;;  %v6441_v56 = vld [vmem:[#allocation17_spill] sm:$0xff] }
 0x15a   :  { %v915_v61 = vmax.f32 %v883_v1, 0.0  ;;  %v492_v13 = vadd.f32 %v460_v57, %v4783_v55  ;;  %v462_v2 = vmul.f32 %v4715_v46, %v6441_v56  ;;  %v660_v6 = vmul.f32 %v4743_v36, %v6443_v11  ;;  %v6456_v11 = vld [vmem:[#allocation13_spill] sm:$0xff] }
 0x15b   :  { %v880_v17 = vadd.f32 %v848_v25, %v683_v16  ;;  %v938_v28 = vpack.c.bf16 %v911_v29, %v910_v0  ;;  %v885_v22 = vadd.f32 %v853_v41, %v688_v50  ;;  %v270_v29 = vmul.f32 %v4655_v15, %v6440_v47  ;;  %v6442_v0 = vld [vmem:[#allocation20_spill] sm:$0xff] }
 0x15c   :  { %v756_v52 = vpop.permute.xlu1 %755  ;;  %v776_v63 = vpop.permute.xlu0 %775  ;;  %v465_v14 = vmul.f32 %v4715_v46, %v6442_v0  ;;  %v690_v25 = vadd.f32 %v658_v8, %v493_v5  ;;  %v495_v43 = vadd.f32 %v463_v54, %v6444_v39  ;;  %v689_v48 = vadd.f32 %v657_v20, %v492_v13 }
 0x15d   :  { %v912_v23 = vmax.f32 %v880_v17, 0.0  ;;  %v850_v19 = vmul.f32 %v4769_v37, %v756_v52  ;;  %3686 = vmatprep.mubr.bf16.mxu0 %v938_v28  ;;  %v855_v4 = vmul.f32 %v4769_v37, %v776_v63  ;;  %v6445_v17 = vld [vmem:[#allocation35_spill] sm:$0xff]  ;;  %v917_v38 = vmax.f32 %v885_v22, 0.0  ;;  %v6446_v52 = vld [vmem:[#allocation10_spill] sm:$0xff] }
 0x15e   :  { %v659_v28 = vmul.f32 %v4743_v36, %v6445_v17  ;;  %v269_v63 = vmul.f32 %v4655_v15, %v6446_v52  ;;  %v662_v62 = vmul.f32 %v4743_v36, %v6449_v3  ;;  %v497_v57 = vadd.f32 %v465_v14, %v6450_v42  ;;  %v6459_v52 = vld [vmem:[#allocation44_spill] sm:$0xff]  ;;  %v6460_v3 = vld [vmem:[#allocation26_spill] sm:$0xff] }
 0x15f   :  { %v882_v7 = vadd.f32 %v850_v19, %v685_v60  ;;  %v939_v44 = vpack.c.bf16 %v913_v59, %v912_v23  ;;  %v887_v41 = vadd.f32 %v855_v4, %v690_v25  ;;  %v6447_v59 = vld [vmem:[#allocation54_spill] sm:$0xff]  ;;  %v6448_v23 = vld [vmem:[#allocation19_spill] sm:$0xff]  ;;  %v692_v50 = vadd.f32 %v660_v6, %v495_v43 }
 0x160   :  { %v764_v40 = vpop.permute.xlu1 %763  ;;  %v784_v49 = vpop.permute.xlu0 %783  ;;  %v494_v1 = vadd.f32 %v462_v2, %v6447_v59  ;;  %v464_v19 = vmul.f32 %v4715_v46, %v6448_v23  ;;  %v467_v8 = vmul.f32 %v4715_v46, %v6451_v33  ;;  %v694_v13 = vadd.f32 %v662_v62, %v497_v57  ;;  %v6455_v2 = vld [vmem:[#allocation42_spill] sm:$0xff] }
 0x161   :  { %v914_v27 = vmax.f32 %v882_v7, 0.0  ;;  %v852_v16 = vmul.f32 %v4769_v37, %v764_v40  ;;  %3687 = vmatmul.mubr.bf16.gmra.mxu0 %v939_v44  ;;  %v857_v32 = vmul.f32 %v4769_v37, %v784_v49  ;;  %v6452_v44 = vld [vmem:[#allocation37_spill] sm:$0xff]  ;;  %v919_v49 = vmax.f32 %v887_v41, 0.0 }
 0x162   :  { %v691_v7 = vadd.f32 %v659_v28, %v494_v1  ;;  %v661_v53 = vmul.f32 %v4743_v36, %v6452_v44  ;;  %v308_v56 = vadd.f32 %v4666_v10, %v270_v29  ;;  %v664_v0 = vmul.f32 %v4743_v36, %v6455_v2 }
 0x163   :  { %v884_v35 = vadd.f32 %v852_v16, %v687_v12  ;;  %v940_v21 = vpack.c.bf16 %v915_v61, %v914_v27  ;;  %v889_v20 = vadd.f32 %v857_v32, %v692_v50  ;;  %v496_v61 = vadd.f32 %v464_v19, %v4808_v58  ;;  %v6453_v27 = vld [vmem:[#allocation21_spill] sm:$0xff]  ;;  %v6454_v16 = vld [vmem:[#allocation24_spill] sm:$0xff]  ;;  %v3966_v19 = vld [vmem:[%s6339_s5 + $0x30] sm:$0xff]  }
 0x164   :  { %v772_v55 = vpop.permute.xlu1 %771  ;;  %v792_v51 = vpop.permute.xlu0 %791  ;;  %v466_v4 = vmul.f32 %v4715_v46, %v6453_v27  ;;  %v469_v47 = vmul.f32 %v4715_v46, %v6454_v16  ;;  %v499_v6 = vadd.f32 %v467_v8, %v6456_v11  ;;  %v666_v59 = vmul.f32 %v4743_v36, %v6459_v52  ;;  %v3967_v16 = vld [vmem:[%s6339_s5 + $0x28] sm:$0xff]  }
 0x165   :  { %v916_v60 = vmax.f32 %v884_v35, 0.0  ;;  %v854_v9 = vmul.f32 %v4769_v37, %v772_v55  ;;  %3690 = vmatprep.mubr.bf16.mxu0 %v940_v21  ;;  %v859_v54 = vmul.f32 %v4769_v37, %v792_v51  ;;  %v693_v35 = vadd.f32 %v661_v53, %v496_v61  ;;  %v6457_v21 = vld [vmem:[#allocation39_spill] sm:$0xff] }
 0x166   :  { %v663_v58 = vmul.f32 %v4743_v36, %v6457_v21  ;;  %v921_v17 = vmax.f32 %v889_v20, 0.0  ;;  %v4967_v55 = vadd.f32 %v4666_v10, %v269_v63  ;;  %v498_v51 = vadd.f32 %v466_v4, %v4819_v26  ;;  %v6461_v26 = vld [vmem:[#allocation41_spill] sm:$0xff] }
 0x167   :  { %v941_v45 = vpack.c.bf16 %v917_v38, %v916_v60  ;;  %v886_v5 = vadd.f32 %v854_v9, %v689_v48  ;;  %v891_v39 = vadd.f32 %v859_v54, %v694_v13  ;;  %v6458_v60 = vld [vmem:[#allocation23_spill] sm:$0xff]  ;;  %v501_v9 = vadd.f32 %v469_v47, %v4838_v24  ;;  %v6463_v54 = vld [vmem:[#allocation25_spill] sm:$0xff] }
 0x168   :  { %v780_v12 = vpop.permute.xlu1 %779  ;;  %v800_v34 = vpop.permute.xlu0 %799  ;;  %v468_v32 = vmul.f32 %v4715_v46, %v6458_v60  ;;  %v696_v41 = vadd.f32 %v664_v0, %v499_v6  ;;  %v471_v63 = vmul.f32 %v4715_v46, %v6460_v3  ;;  %v695_v62 = vadd.f32 %v663_v58, %v498_v51  ;;  %v6467_v13 = vld [vmem:[#allocation43_spill] sm:$0xff]  ;;  %v6468_v58 = vld [vmem:[#allocation12_spill] sm:$0xff] }
 0x169   :  { %v856_v22 = vmul.f32 %v4769_v37, %v780_v12  ;;  %3691 = vmatmul.mubr.bf16.gmra.mxu0 %v941_v45  ;;  %v918_v40 = vmax.f32 %v886_v5, 0.0  ;;  %v861_v38 = vmul.f32 %v4769_v37, %v800_v34  ;;  %v665_v42 = vmul.f32 %v4743_v36, %v6461_v26  ;;  %v6464_v34 = vld [vmem:[#allocation46_spill] sm:$0xff] }
 0x16a   :  { %v923_v57 = vmax.f32 %v891_v39, 0.0  ;;  %v500_v53 = vadd.f32 %v468_v32, %v4853_v30  ;;  %v470_v12 = vmul.f32 %v4715_v46, %v6463_v54  ;;  %v668_v20 = vmul.f32 %v4743_v36, %v6464_v34  ;;  %v3968_v32 = vld [vmem:[%s6339_s5 + $0x20] sm:$0xff]  }
 0x16b   :  { %v888_v14 = vadd.f32 %v856_v22, %v691_v7  ;;  %v942_v25 = vpack.c.bf16 %v919_v49, %v918_v40  ;;  %v893_v45 = vadd.f32 %v861_v38, %v696_v41  ;;  %v6462_v7 = vld [vmem:[#allocation11_spill] sm:$0xff]  ;;  %v6466_v40 = vld [vmem:[#allocation28_spill] sm:$0xff]  ;;  %v698_v61 = vadd.f32 %v666_v59, %v501_v9  ;;  %v6471_v9 = vld [vmem:[#allocation30_spill] sm:$0xff] }
 0x16c   :  { %v788_v43 = vpop.permute.xlu1 %787  ;;  %v808_v48 = vpop.permute.xlu0 %807  ;;  %v272_v44 = vmul.f32 %v4655_v15, %v6462_v7  ;;  %v6465_v22 = vld [vmem:[#allocation31_spill] sm:$0xff]  ;;  %v473_v49 = vmul.f32 %v4715_v46, %v6466_v40  ;;  %v503_v30 = vadd.f32 %v471_v63, %v4896_v18  ;;  %v697_v47 = vadd.f32 %v665_v42, %v500_v53  ;;  %v6470_v38 = vld [vmem:[#allocation48_spill] sm:$0xff]  ;;  %v6472_v41 = vld [vmem:[#allocation45_spill] sm:$0xff] }
 0x16d   :  { %v920_v28 = vmax.f32 %v888_v14, 0.0  ;;  %v858_v29 = vmul.f32 %v4769_v37, %v788_v43  ;;  %3694 = vmatprep.mubr.bf16.mxu1 %v942_v25  ;;  %v863_v33 = vmul.f32 %v4769_v37, %v808_v48  ;;  %v667_v2 = vmul.f32 %v4743_v36, %v6467_v13  ;;  %v6469_v18 = vld [vmem:[#allocation27_spill] sm:$0xff]  ;;  %v6473_v42 = vld [vmem:[#allocation29_spill] sm:$0xff]  ;;  %v3969_v7 = vld [vmem:[%s6339_s5 + $0x18] sm:$0xff]  }
 0x16e   :  { %v925_v11 = vmax.f32 %v893_v45, 0.0  ;;  %v271_v39 = vmul.f32 %v4655_v15, %v6468_v58  ;;  %v502_v43 = vadd.f32 %v470_v12, %v4911_v31  ;;  %v472_v48 = vmul.f32 %v4715_v46, %v6469_v18  ;;  %v6474_v45 = vld [vmem:[#allocation52_spill] sm:$0xff]  ;;  %v6475_v53 = vld [vmem:[#allocation47_spill] sm:$0xff]  ;;  %v5047_v58 = vld [vmem:[%s6334_s0] sm:$0xff] }
 0x16f   :  { %v890_v1 = vadd.f32 %v858_v29, %v693_v35  ;;  %v943_v23 = vpack.c.bf16 %v921_v17, %v920_v28  ;;  %v895_v6 = vadd.f32 %v863_v33, %v698_v61  ;;  %v700_v17 = vadd.f32 %v668_v20, %v503_v30  ;;  %v5065_v18 = vld [vmem:[%s6334_s0 + $0x20] sm:$0xff] }
 0x170   :  { %v796_v50 = vpop.permute.xlu1 %795  ;;  %v816_v24 = vpop.permute.xlu0 %815  ;;  %v505_v28 = vadd.f32 %v473_v49, %v308_v56  ;;  %v670_v29 = vmul.f32 %v4743_v36, %v6470_v38  ;;  %v475_v15 = vmul.f32 %v4715_v46, %v6471_v9  ;;  %v699_v31 = vadd.f32 %v667_v2, %v502_v43  ;;  %v5059_v43 = vld [vmem:[%s6334_s0 + $0x10] sm:$0xff]  ;;  %v5089_v38 = vld [vmem:[%s6334_s0 + $0x40] sm:$0xff]  ;;  %v5119_v9 = vld [vmem:[%s6334_s0 + $0x58] sm:$0xff] }
 0x171   :  { %v922_v5 = vmax.f32 %v890_v1, 0.0  ;;  %v860_v8 = vmul.f32 %v4769_v37, %v796_v50  ;;  %3695 = vmatmul.mubr.bf16.vlgmr.msra.gmra.mxu1 %v943_v23  ;;  %v865_v0 = vmul.f32 %v4769_v37, %v816_v24  ;;  %v669_v52 = vmul.f32 %v4743_v36, %v6472_v41  ;;  %v5137_v41 = vld [vmem:[%s6334_s0 + $0x80] sm:$0xff] }
 0x172   :  { %3711 = vmatpush3.bf16.msra.mxu1 %v6465_v22  ;;  %v927_v56 = vmax.f32 %v895_v6, 0.0  ;;  %v310_v63 = vadd.f32 %v4666_v10, %v272_v44  ;;  %v504_v26 = vadd.f32 %v472_v48, %v4967_v55  ;;  %v702_v24 = vadd.f32 %v670_v29, %v505_v28  ;;  %v3970_v6 = vld [vmem:[%s6339_s5 + $0x10] sm:$0xff]   ;;  %v5071_v48 = vld [vmem:[%s6334_s0 + $0x18] sm:$0xff]  ;;  %v5083_v28 = vld [vmem:[%s6334_s0 + $0x28] sm:$0xff] }
 0x173   :  { %v892_v27 = vadd.f32 %v860_v8, %v695_v62  ;;  %v944_v4 = vpack.c.bf16 %v923_v57, %v922_v5  ;;  %3712 = vmatprep.subr.bf16.mxu1 %v3966_v19  ;;  %v897_v59 = vadd.f32 %v865_v0, %v700_v17  ;;  %v309_v62 = vadd.f32 %v4666_v10, %v271_v39  ;;  %v5053_v39 = vld [vmem:[%s6334_s0 + $0x8] sm:$0xff]  ;;  %v5077_v17 = vld [vmem:[%s6334_s0 + $0x30] sm:$0xff]  ;;  %v5095_v29 = vld [vmem:[%s6334_s0 + $0x38] sm:$0xff] }
 0x174   :  { %v804_v14 = vpop.permute.xlu1 %803  ;;  %v824_v25 = vpop.permute.xlu0 %823  ;;  %v474_v57 = vmul.f32 %v4715_v46, %v6473_v42  ;;  %v672_v5 = vmul.f32 %v4743_v36, %v6474_v45  ;;  %v507_v44 = vadd.f32 %v475_v15, %v310_v63  ;;  %v701_v10 = vadd.f32 %v669_v52, %v504_v26  ;;  %v5125_v15 = vld [vmem:[%s6334_s0 + $0x70] sm:$0xff]  ;;  %v5143_v52 = vld [vmem:[%s6334_s0 + $0x78] sm:$0xff]  ;;  %v4004_v63 = vld [vmem:[%s6334_s0 + $0xc0] sm:$0xff] }
 0x175   :  { %v924_v35 = vmax.f32 %v892_v27, 0.0  ;;  %v862_v21 = vmul.f32 %v4769_v37, %v804_v14  ;;  %3698 = vmatprep.mubr.bf16.mxu1 %v944_v4  ;;  %v671_v55 = vmul.f32 %v4743_v36, %v6475_v53  ;;  %v929_v54 = vmax.f32 %v897_v59, 0.0  ;;  %v5149_v59 = vld [vmem:[%s6334_s0 + $0x90] sm:$0xff]  ;;  %v4007_v42 = vld [vmem:[%s6334_s0 + $0xc8] sm:$0xff] }
 0x176   :  { %3713 = vmatpush3.bf16.msra.mxu1 %v3966_v19  ;;  %v867_v19 = vmul.f32 %v4769_v37, %v824_v25  ;;  %v506_v40 = vadd.f32 %v474_v57, %v309_v62  ;;  %v704_v49 = vadd.f32 %v672_v5, %v507_v44  ;;  %v5185_v62 = vld [vmem:[%s6334_s0 + $0xb8] sm:$0xff]  ;;  %v4006_v26 = vld [vmem:[%s6334_s0 + $0xd0] sm:$0xff]  ;;  %v4008_v57 = vld [vmem:[%s6334_s0 + $0xe0] sm:$0xff]  ;;  %v6476_v5 = vmov 0  }
 0x177   :  { %v894_v51 = vadd.f32 %v862_v21, %v697_v47  ;;  %v945_v60 = vpack.c.bf16 %v925_v11, %v924_v35  ;;  %3714 = vmatprep.subr.bf16.mxu1 %v3967_v16  ;;  %v3971_v35 = vld [vmem:[%s6339_s5 + $0x8] sm:$0xff]   ;;  %v6356_v21 = vmov 4   ;;  %v5214_v44 = vld [vmem:[%s6338_s4] ss:$0 sm:$0xff] }
 0x178   :  { %v812_v1 = vpop.permute.xlu1 %811  ;;  %v832_v50 = vpop.permute.xlu0 %831  ;;  %v899_v12 = vadd.f32 %v867_v19, %v702_v24  ;;  %v703_v4 = vadd.f32 %v671_v55, %v506_v40  ;;  %3838 = vset.pattern.permute.xlu1 %v6356_v21  ;;  %3839 = vset.pattern.permute.xlu0 %v6356_v21  ;;  %v5173_v19 = vld [vmem:[%s6334_s0 + $0xb0] sm:$0xff]  ;;  %v4011_v45 = vld [vmem:[%s6334_s0 + $0xe8] sm:$0xff] }
 0x179   :  { %v926_v23 = vmax.f32 %v894_v51, 0.0  ;;  %v864_v3 = vmul.f32 %v4769_v37, %v812_v1  ;;  %3699 = vmatmul.mubr.bf16.gmra.mxu1 %v945_v60  ;;  %v869_v20 = vmul.f32 %v4769_v37, %v832_v50  ;;  %1495 = vperm.xlu1 %3838, %v5047_v58   ;;  %v5101_v51 = vld [vmem:[%s6334_s0 + $0x50] sm:$0xff]  ;;  %v5107_v60 = vld [vmem:[%s6334_s0 + $0x48] sm:$0xff]  ;;  %v4009_v50 = vld [vmem:[%s6334_s0 + $0xd8] sm:$0xff] }
 0x17a   :  { %3715 = vmatpush3.bf16.msra.mxu1 %v3967_v16  ;;  %v931_v30 = vmax.f32 %v899_v12, 0.0  ;;  %1499 = vperm.xlu0 %3839, %v5053_v39   ;;  %v5155_v1 = vld [vmem:[%s6334_s0 + $0x88] sm:$0xff]  ;;  %v4010_v24 = vld [vmem:[%s6334_s0 + $0xf0] sm:$0xff] }
 0x17b   :  { %v896_v33 = vadd.f32 %v864_v3, %v699_v31  ;;  %v946_v8 = vpack.c.bf16 %v927_v56, %v926_v23  ;;  %3716 = vmatprep.subr.bf16.mxu1 %v3968_v32  ;;  %v901_v47 = vadd.f32 %v869_v20, %v704_v49  ;;  %v5131_v31 = vld [vmem:[%s6334_s0 + $0x68] sm:$0xff]  ;;  %v5161_v56 = vld [vmem:[%s6334_s0 + $0xa0] sm:$0xff]  ;;  %v5167_v23 = vld [vmem:[%s6334_s0 + $0x98] sm:$0xff] }
 0x17c   :  { %v820_v46 = vpop.permute.xlu1 %819  ;;  %v4003_v3 = vld [vmem:[%s6334_s0 + $0xa8] sm:$0xff] }
 0x17d   :  { %v928_v34 = vmax.f32 %v896_v33, 0.0  ;;  %v866_v22 = vmul.f32 %v4769_v37, %v820_v46  ;;  %3702 = vmatprep.mubr.bf16.mxu1 %v946_v8  ;;  %v933_v14 = vmax.f32 %v901_v47, 0.0  ;;  %1503 = vperm.xlu1 %3838, %v5059_v43   ;;  %v4012_v33 = vld [vmem:[%s6334_s0 + $0xf8] sm:$0xff] }
 0x17e   :  { %3717 = vmatpush3.bf16.msra.mxu1 %v3968_v32  ;;  %1511 = vperm.xlu0 %3839, %v5065_v18   ;;  %v5113_v32 = vld [vmem:[%s6334_s0 + $0x60] sm:$0xff] }
 0x17f   :  { %v898_v61 = vadd.f32 %v866_v22, %v701_v10  ;;  %v947_v27 = vpack.c.bf16 %v929_v54, %v928_v34  ;;  %3718 = vmatprep.subr.bf16.mxu1 %v3969_v7 }
 0x180   :  { %v828_v16 = vpop.permute.xlu1 %827 }
 0x181   :  { %v930_v36 = vmax.f32 %v898_v61, 0.0  ;;  %v868_v13 = vmul.f32 %v4769_v37, %v828_v16  ;;  %3703 = vmatmul.mubr.bf16.gmra.mxu1 %v947_v27  ;;  %v3972_v37 = vld [vmem:[%s6339_s5] sm:$0xff]   ;;  %1507 = vperm.xlu1 %3838, %v5071_v48  }
 0x182   :  { %3719 = vmatpush3.bf16.msra.mxu1 %v3969_v7  ;;  %1519 = vperm.xlu0 %3839, %v5077_v17  }
 0x183   :  { %v900_v2 = vadd.f32 %v868_v13, %v703_v4  ;;  %v948_v0 = vpack.c.bf16 %v931_v30, %v930_v36  ;;  %3720 = vmatprep.subr.bf16.mxu1 %v3970_v6 }
 0x185   :  { %v932_v25 = vmax.f32 %v900_v2, 0.0  ;;  %3706 = vmatprep.mubr.bf16.mxu1 %v948_v0  ;;  %1515 = vperm.xlu1 %3838, %v5083_v28  }
 0x186   :  { %3721 = vmatpush3.bf16.msra.mxu1 %v3970_v6  ;;  %1527 = vperm.xlu0 %3839, %v5089_v38  }
 0x187   :  { %v949_v11 = vpack.c.bf16 %v933_v14, %v932_v25  ;;  %3722 = vmatprep.subr.bf16.mxu1 %v3971_v35 }
 0x189   :  { %3707 = vmatmul.mubr.bf16.gmra.mxu1 %v949_v11  ;;  %1523 = vperm.xlu1 %3838, %v5095_v29  }
 0x18a   :  { %3723 = vmatpush3.bf16.msra.mxu1 %v3971_v35  ;;  %1535 = vperm.xlu0 %3839, %v5101_v51  }
 0x18b   :  { %3724 = vmatprep.subr.bf16.mxu1 %v3972_v37 }
 0x18d   :  { %1531 = vperm.xlu1 %3838, %v5107_v60  }
 0x18e   :  { %3725 = vmatpush3.bf16.msra.mxu1 %v3972_v37  ;;  %1543 = vperm.xlu0 %3839, %v5113_v32  }
 0x191   :  { %1539 = vperm.xlu1 %3838, %v5119_v9  }
 0x192   :  { %1551 = vperm.xlu0 %3839, %v5125_v15  }
 0x195   :  { %1547 = vperm.xlu1 %3838, %v5131_v31  }
 0x196   :  { %1559 = vperm.xlu0 %3839, %v5137_v41  }
 0x199   :  { %1555 = vperm.xlu1 %3838, %v5143_v52  }
 0x19a   :  { %1567 = vperm.xlu0 %3839, %v5149_v59  }
 0x19d   :  { %1563 = vperm.xlu1 %3838, %v5155_v1  }
 0x19e   :  { %1575 = vperm.xlu0 %3839, %v5161_v56  }
 0x1a1   :  { %1571 = vperm.xlu1 %3838, %v5167_v23  }
 0x1a2   :  { %1583 = vperm.xlu0 %3839, %v5173_v19  }
 0x1a5   :  { %1579 = vperm.xlu1 %3838, %v4003_v3  }
 0x1a6   :  { %1591 = vperm.xlu0 %3839, %v4004_v63  }
 0x1a9   :  { %1587 = vperm.xlu1 %3838, %v5185_v62  }
 0x1aa   :  { %1599 = vperm.xlu0 %3839, %v4006_v26  }
 0x1ad   :  { %1595 = vperm.xlu1 %3838, %v4007_v42  }
 0x1ae   :  { %1607 = vperm.xlu0 %3839, %v4008_v57  }
 0x1b1   :  { %1603 = vperm.xlu1 %3838, %v4009_v50  }
 0x1b2   :  { %1615 = vperm.xlu0 %3839, %v4010_v24  }
 0x1b5   :  { %1611 = vperm.xlu1 %3838, %v4011_v45  }
 0x1b6   :  { %3844 = vset.pattern.permute.xlu0 %v6476_v5 }
 0x1b9   :  { %1619 = vperm.xlu1 %3838, %v4012_v33  }
 0x1bd   :  { %3840 = vset.pattern.permute.xlu1 %v6476_v5 }
 0x211   :  { %v3680_v8 = vpop.f32.mrf.mxu0 }
 0x212   :  { %v1064_v54 = vadd.f32 %v3680_v8, %v5214_v44 }
 0x213   :  { %v1055_v7 = vpop.f32.mrf.mxu0 }
 0x214   :  { %v1056_v53 = vadd.f32 %v5214_v44, %v1055_v7  ;;  %v1184_v49 = vmax.f32 %v1064_v54, 0.0 }
 0x215   :  { %v3681_v10 = vpop.f32.mrf.mxu0 }
 0x216   :  { %v1067_v55 = vadd.f32 %v3681_v10, %v5214_v44  ;;  %v1182_v22 = vmax.f32 %v1056_v53, 0.0 }
 0x217   :  { %v1058_v46 = vpop.f32.mrf.mxu0 }
 0x218   :  { %v1059_v12 = vadd.f32 %v5214_v44, %v1058_v46  ;;  %v1185_v34 = vmax.f32 %v1067_v55, 0.0 }
 0x219   :  { %v3684_v20 = vpop.f32.mrf.mxu0 }
 0x21a   :  { %v1183_v40 = vmax.f32 %v1059_v12, 0.0  ;;  %v1215_v4 = vpack.c.bf16 %v1185_v34, %v1184_v49  ;;  %v1080_v36 = vadd.f32 %v3684_v20, %v5214_v44 }
 0x21b   :  { %v1071_v61 = vpop.f32.mrf.mxu0 }
 0x21c   :  { %v1214_v27 = vpack.c.bf16 %v1183_v40, %v1182_v22  ;;  %v1072_v30 = vadd.f32 %v5214_v44, %v1071_v61  ;;  %v1188_v6 = vmax.f32 %v1080_v36, 0.0 }
 0x21d   :  { %v3685_v16 = vpop.f32.mrf.mxu0 }
 0x21e   :  { %v1083_v47 = vadd.f32 %v3685_v16, %v5214_v44  ;;  %3726 = vmatprep.mubr.bf16.mxu1 %v1214_v27  ;;  %v1186_v25 = vmax.f32 %v1072_v30, 0.0 }
 0x21f   :  { %v1074_v13 = vpop.f32.mrf.mxu0  ;;  %3727 = vmatmul.mubr.bf16.vlgmr.msra.gmra.mxu1 %v1215_v4 }
 0x220   :  { %v1075_v2 = vadd.f32 %v5214_v44, %v1074_v13  ;;  %v1189_v0 = vmax.f32 %v1083_v47, 0.0 }
 0x221   :  { %v3688_v14 = vpop.f32.mrf.mxu0 }
 0x222   :  { %v1187_v11 = vmax.f32 %v1075_v2, 0.0  ;;  %v1217_v3 = vpack.c.bf16 %v1189_v0, %v1188_v6  ;;  %v1096_v57 = vadd.f32 %v3688_v14, %v5214_v44 }
 0x223   :  { %v1087_v35 = vpop.f32.mrf.mxu0 }
 0x224   :  { %v1216_v37 = vpack.c.bf16 %v1187_v11, %v1186_v25  ;;  %v1088_v26 = vadd.f32 %v5214_v44, %v1087_v35  ;;  %v1192_v10 = vmax.f32 %v1096_v57, 0.0 }
 0x225   :  { %v3689_v63 = vpop.f32.mrf.mxu0 }
 0x226   :  { %v1099_v42 = vadd.f32 %v3689_v63, %v5214_v44  ;;  %3730 = vmatprep.mubr.bf16.mxu1 %v1216_v37  ;;  %v1190_v8 = vmax.f32 %v1088_v26, 0.0 }
 0x227   :  { %v1090_v50 = vpop.f32.mrf.mxu0  ;;  %3731 = vmatmul.mubr.bf16.gmra.mxu1 %v1217_v3 }
 0x228   :  { %v1091_v24 = vadd.f32 %v5214_v44, %v1090_v50  ;;  %v1193_v45 = vmax.f32 %v1099_v42, 0.0 }
 0x229   :  { %v3692_v33 = vpop.f32.mrf.mxu0 }
 0x22a   :  { %v1191_v7 = vmax.f32 %v1091_v24, 0.0  ;;  %v1219_v54 = vpack.c.bf16 %v1193_v45, %v1192_v10  ;;  %v1112_v20 = vadd.f32 %v3692_v33, %v5214_v44 }
 0x22b   :  { %v1103_v53 = vpop.f32.mrf.mxu0 }
 0x22c   :  { %v1218_v55 = vpack.c.bf16 %v1191_v7, %v1190_v8  ;;  %v1104_v12 = vadd.f32 %v5214_v44, %v1103_v53  ;;  %v1196_v16 = vmax.f32 %v1112_v20, 0.0 }
 0x22d   :  { %v3693_v46 = vpop.f32.mrf.mxu0 }
 0x22e   :  { %v1115_v34 = vadd.f32 %v3693_v46, %v5214_v44  ;;  %3734 = vmatprep.mubr.bf16.mxu1 %v1218_v55  ;;  %v1194_v27 = vmax.f32 %v1104_v12, 0.0 }
 0x22f   :  { %v1106_v22 = vpop.f32.mrf.mxu0  ;;  %3735 = vmatmul.mubr.bf16.gmra.mxu1 %v1219_v54 }
 0x230   :  { %v1107_v40 = vadd.f32 %v5214_v44, %v1106_v22  ;;  %v1197_v49 = vmax.f32 %v1115_v34, 0.0 }
 0x231   :  { %v3696_v61 = vpop.f32.mrf.mxu1 }
 0x232   :  { %v1195_v4 = vmax.f32 %v1107_v40, 0.0  ;;  %v1221_v36 = vpack.c.bf16 %v1197_v49, %v1196_v16  ;;  %v1128_v14 = vadd.f32 %v3696_v61, %v5214_v44 }
 0x233   :  { %v1119_v30 = vpop.f32.mrf.mxu1 }
 0x234   :  { %v1220_v47 = vpack.c.bf16 %v1195_v4, %v1194_v27  ;;  %v1120_v2 = vadd.f32 %v5214_v44, %v1119_v30  ;;  %v1200_v63 = vmax.f32 %v1128_v14, 0.0 }
 0x235   :  { %v3697_v13 = vpop.f32.mrf.mxu1 }
 0x236   :  { %v1131_v0 = vadd.f32 %v3697_v13, %v5214_v44  ;;  %3738 = vmatprep.mubr.bf16.mxu1 %v1220_v47  ;;  %v1198_v37 = vmax.f32 %v1120_v2, 0.0 }
 0x237   :  { %v1122_v25 = vpop.f32.mrf.mxu1  ;;  %3739 = vmatmul.mubr.bf16.gmra.mxu1 %v1221_v36 }
 0x238   :  { %v1123_v11 = vadd.f32 %v5214_v44, %v1122_v25  ;;  %v1201_v6 = vmax.f32 %v1131_v0, 0.0 }
 0x239   :  { %v3700_v35 = vpop.f32.mrf.mxu1 }
 0x23a   :  { %v1199_v3 = vmax.f32 %v1123_v11, 0.0  ;;  %v1223_v57 = vpack.c.bf16 %v1201_v6, %v1200_v63  ;;  %v1144_v33 = vadd.f32 %v3700_v35, %v5214_v44 }
 0x23b   :  { %v1135_v26 = vpop.f32.mrf.mxu1 }
 0x23c   :  { %v1222_v42 = vpack.c.bf16 %v1199_v3, %v1198_v37  ;;  %v1136_v24 = vadd.f32 %v5214_v44, %v1135_v26  ;;  %v1204_v46 = vmax.f32 %v1144_v33, 0.0  ;;  %v5251_v33 = vld [vmem:[%s6340_s6] ss:$0 sm:$0xff] }
 0x23d   :  { %v3701_v50 = vpop.f32.mrf.mxu1 }
 0x23e   :  { %v1147_v45 = vadd.f32 %v3701_v50, %v5214_v44  ;;  %3742 = vmatprep.mubr.bf16.mxu1 %v1222_v42  ;;  %v1202_v55 = vmax.f32 %v1136_v24, 0.0 }
 0x23f   :  { %v1138_v8 = vpop.f32.mrf.mxu1  ;;  %3743 = vmatmul.mubr.bf16.gmra.mxu1 %v1223_v57 }
 0x240   :  { %v1139_v7 = vadd.f32 %v5214_v44, %v1138_v8  ;;  %v1205_v10 = vmax.f32 %v1147_v45, 0.0  ;;  %v1496_v45 = vpop.permute.xlu1 %1495 }
 0x241   :  { %v3704_v53 = vpop.f32.mrf.mxu1 }
 0x242   :  { %v1203_v54 = vmax.f32 %v1139_v7, 0.0  ;;  %v1225_v20 = vpack.c.bf16 %v1205_v10, %v1204_v46  ;;  %v1160_v61 = vadd.f32 %v3704_v53, %v5214_v44 }
 0x243   :  { %v1151_v12 = vpop.f32.mrf.mxu1 }
 0x244   :  { %v1224_v34 = vpack.c.bf16 %v1203_v54, %v1202_v55  ;;  %v1152_v40 = vadd.f32 %v5214_v44, %v1151_v12  ;;  %v1208_v13 = vmax.f32 %v1160_v61, 0.0  ;;  %v1504_v55 = vpop.permute.xlu1 %1503 }
 0x245   :  { %v3705_v22 = vpop.f32.mrf.mxu1 }
 0x246   :  { %v1163_v49 = vadd.f32 %v3705_v22, %v5214_v44  ;;  %3746 = vmatprep.mubr.bf16.mxu1 %v1224_v34  ;;  %v1206_v47 = vmax.f32 %v1152_v40, 0.0  ;;  %v6478_v22 = vmov 2  }
 0x247   :  { %v1154_v27 = vpop.f32.mrf.mxu1  ;;  %3747 = vmatmul.mubr.bf16.gmra.mxu1 %v1225_v20  ;;  %v6477_v20 = vmov 1  }
 0x248   :  { %v1155_v4 = vadd.f32 %v5214_v44, %v1154_v27  ;;  %v1209_v16 = vmax.f32 %v1163_v49, 0.0  ;;  %v6479_v49 = vmov 3   ;;  %v1508_v61 = vpop.permute.xlu1 %1507  ;;  %v3974_v27 = vld [vmem:[%s6343_s9 + $0x30] sm:$0xff]  }
 0x249   :  { %v3708_v30 = vpop.f32.mrf.mxu1 }
 0x24a   :  { %v1207_v36 = vmax.f32 %v1155_v4, 0.0  ;;  %v1227_v14 = vpack.c.bf16 %v1209_v16, %v1208_v13  ;;  %v1176_v35 = vadd.f32 %v3708_v30, %v5214_v44 }
 0x24b   :  { %v1167_v2 = vpop.f32.mrf.mxu1 }
 0x24c   :  { %v1226_v0 = vpack.c.bf16 %v1207_v36, %v1206_v47  ;;  %v1168_v11 = vadd.f32 %v5214_v44, %v1167_v2  ;;  %v1212_v57 = vmax.f32 %v1176_v35, 0.0  ;;  %v1500_v47 = vpop.permute.xlu0 %1499  ;;  %v3976_v36 = vld [vmem:[%s6343_s9 + $0x20] sm:$0xff]  }
 0x24d   :  { %v3709_v25 = vpop.f32.mrf.mxu1 }
 0x24e   :  { %v1179_v6 = vadd.f32 %v3709_v25, %v5214_v44  ;;  %3750 = vmatprep.mubr.bf16.mxu1 %v1226_v0  ;;  %v1210_v26 = vmax.f32 %v1168_v11, 0.0 }
 0x24f   :  { %v1170_v37 = vpop.f32.mrf.mxu1  ;;  %3751 = vmatmul.mubr.bf16.gmra.mxu1 %v1227_v14  ;;  %v3977_v14 = vld [vmem:[%s6343_s9 + $0x18] sm:$0xff]  }
 0x250   :  { %v1171_v3 = vadd.f32 %v5214_v44, %v1170_v37  ;;  %v1213_v63 = vmax.f32 %v1179_v6, 0.0  ;;  %v1512_v25 = vpop.permute.xlu0 %1511  ;;  %v3978_v37 = vld [vmem:[%s6343_s9 + $0x10] sm:$0xff]  }
 0x252   :  { %v1211_v42 = vmax.f32 %v1171_v3, 0.0  ;;  %v1229_v24 = vpack.c.bf16 %v1213_v63, %v1212_v57 }
 0x254   :  { %v1228_v50 = vpack.c.bf16 %v1211_v42, %v1210_v26  ;;  %v1520_v63 = vpop.permute.xlu0 %1519  ;;  %v3979_v42 = vld [vmem:[%s6343_s9 + $0x8] sm:$0xff]  }
 0x256   :  { %3754 = vmatprep.mubr.bf16.mxu1 %v1228_v50  ;;  %v1516_v50 = vpop.permute.xlu1 %1515 }
 0x257   :  { %3755 = vmatmul.mubr.bf16.gmra.mxu1 %v1229_v24 }
 0x2df   :  { %v3728_v8 = vpop.f32.mrf.mxu1 }
 0x2e0   :  { %v1344_v7 = vadd.f32 %v3728_v8, %v5251_v33  ;;  %v1524_v8 = vpop.permute.xlu1 %1523 }
 0x2e1   :  { %v1335_v10 = vpop.f32.mrf.mxu1 }
 0x2e2   :  { %v1464_v44 = vsub.f32 %v5059_v43, %v1344_v7  ;;  %v1336_v53 = vadd.f32 %v5251_v33, %v1335_v10 }
 0x2e3   :  { %v3729_v34 = vpop.f32.mrf.mxu1 }
 0x2e4   :  { %v5256_v54 = vmul.f32 %v1504_v55, %v1464_v44  ;;  %v1462_v46 = vsub.f32 %v5047_v58, %v1336_v53  ;;  %v1347_v43 = vadd.f32 %v3729_v34, %v5251_v33  ;;  %v3973_v58 = vld [vmem:[%s6343_s9 + $0x38] sm:$0xff]   ;;  %v5345_v44 = vpop.permute.xlu1 %1531  ;;  %v1528_v55 = vpop.permute.xlu0 %1527 }
 0x2e5   :  { %3758 = vmatprep.subr.bf16.mxu0 %v3973_v58  ;;  %v1338_v16 = vpop.f32.mrf.mxu1 }
 0x2e6   :  { %v5259_v12 = vmul.f32 %v1496_v45, %v1462_v46  ;;  %1668 = vperm.xlu1 %3840, %v5256_v54   ;;  %v1465_v40 = vsub.f32 %v5071_v48, %v1347_v43  ;;  %3759 = vmatpush3.bf16.msra.mxu0 %v3973_v58  ;;  %v3975_v48 = vld [vmem:[%s6343_s9 + $0x28] sm:$0xff]   ;;  %v1339_v30 = vadd.f32 %v5251_v33, %v1338_v16 }
 0x2e7   :  { %3760 = vmatprep.subr.bf16.mxu0 %v3974_v27  ;;  %v3732_v2 = vpop.f32.mrf.mxu1 }
 0x2e8   :  { %1658 = vperm.xlu0 %3844, %v5259_v12   ;;  %v5280_v4 = vmul.f32 %v1508_v61, %v1465_v40  ;;  %v1463_v13 = vsub.f32 %v5053_v39, %v1339_v30  ;;  %v1360_v0 = vadd.f32 %v3732_v2, %v5251_v33  ;;  %v1540_v34 = vpop.permute.xlu1 %1539  ;;  %v1536_v43 = vpop.permute.xlu0 %1535 }
 0x2e9   :  { %v1351_v6 = vpop.f32.mrf.mxu1 }
 0x2ea   :  { %3841 = vset.pattern.permute.xlu1 %v6477_v20  ;;  %3761 = vmatpush3.bf16.msra.mxu0 %v3974_v27  ;;  %v5303_v11 = vmul.f32 %v1500_v47, %v1463_v13  ;;  %v1468_v39 = vsub.f32 %v5077_v17, %v1360_v0  ;;  %v1352_v35 = vadd.f32 %v5251_v33, %v1351_v6 }
 0x2eb   :  { %1900 = vperm.xlu1 %3841, %v5256_v54   ;;  %3762 = vmatprep.subr.bf16.mxu0 %v3975_v48  ;;  %v3733_v3 = vpop.f32.mrf.mxu1 }
 0x2ec   :  { %3846 = vset.pattern.permute.xlu0 %v6478_v22  ;;  %v5316_v26 = vmul.f32 %v1520_v63, %v1468_v39  ;;  %v1466_v17 = vsub.f32 %v5065_v18, %v1352_v35  ;;  %v1363_v57 = vadd.f32 %v3733_v3, %v5251_v33  ;;  %v3980_v18 = vld [vmem:[%s6343_s9] sm:$0xff]   ;;  %v5361_v58 = vpop.permute.xlu1 %1547  ;;  %v5365_v27 = vpop.permute.xlu0 %1543 }
 0x2ed   :  { %2089 = vperm.xlu0 %3846, %v5259_v12   ;;  %v1354_v10 = vpop.f32.mrf.mxu1 }
 0x2ee   :  { %3763 = vmatpush3.bf16.msra.mxu0 %v3975_v48  ;;  %v5325_v24 = vmul.f32 %v1512_v25, %v1466_v17  ;;  %v1469_v45 = vsub.f32 %v5095_v29, %v1363_v57  ;;  %v1355_v29 = vadd.f32 %v5251_v33, %v1354_v10 }
 0x2ef   :  { %3842 = vset.pattern.permute.xlu1 %v6478_v22  ;;  %3764 = vmatprep.subr.bf16.mxu0 %v3976_v36 }
 0x2f0   :  { %2097 = vperm.xlu1 %3842, %v5256_v54   ;;  %v5334_v7 = vmul.f32 %v1524_v8, %v1469_v45  ;;  %v1467_v53 = vsub.f32 %v5083_v28, %v1355_v29  ;;  %v3736_v28 = vpop.f32.mrf.mxu1  ;;  %v5373_v30 = vpop.permute.xlu1 %1555 }
 0x2f1   :  { %3847 = vset.pattern.permute.xlu0 %v6479_v49  ;;  %v1376_v40 = vadd.f32 %v3736_v28, %v5251_v33 }
 0x2f2   :  { %2286 = vperm.xlu0 %3847, %v5259_v12   ;;  %3765 = vmatpush3.bf16.msra.mxu0 %v3976_v36  ;;  %v5352_v46 = vmul.f32 %v1516_v50, %v1467_v53  ;;  %v1367_v61 = vpop.f32.mrf.mxu1  ;;  %v1552_v36 = vpop.permute.xlu0 %1551 }
 0x2f3   :  { %3766 = vmatprep.subr.bf16.mxu0 %v3977_v14  ;;  %v1472_v16 = vsub.f32 %v5101_v51, %v1376_v40  ;;  %v1368_v48 = vadd.f32 %v5251_v33, %v1367_v61 }
 0x2f4   :  { %3843 = vset.pattern.permute.xlu1 %v6479_v49  ;;  %v3737_v47 = vpop.f32.mrf.mxu1  ;;  %v5383_v0 = vpop.permute.xlu1 %1563 }
 0x2f5   :  { %2294 = vperm.xlu1 %3843, %v5256_v54   ;;  %v5375_v13 = vmul.f32 %v1536_v43, %v1472_v16  ;;  %v1470_v2 = vsub.f32 %v5089_v38, %v1368_v48  ;;  %v1379_v51 = vadd.f32 %v3737_v47, %v5251_v33 }
 0x2f6   :  { %3848 = vset.pattern.permute.xlu0 %v6476_v5  ;;  %3767 = vmatpush3.bf16.msra.mxu0 %v3977_v14  ;;  %v5389_v6 = vpop.permute.xlu0 %1559 }
 0x2f7   :  { %1673 = vperm.xlu0 %3848, %v5280_v4   ;;  %3768 = vmatprep.subr.bf16.mxu0 %v3978_v37  ;;  %6480 = vst [vmem:[#allocation5_spill] sm:$0xff] %v5375_v13  ;;  %v5385_v14 = vmul.f32 %v1528_v55, %v1470_v2  ;;  %v1473_v25 = vsub.f32 %v5119_v9, %v1379_v51  ;;  %v1370_v9 = vpop.f32.mrf.mxu1 }
 0x2f8   :  { %v5395_v39 = vpop.permute.xlu1 %1571  ;;  %v1371_v3 = vadd.f32 %v5251_v33, %v1370_v9 }
 0x2f9   :  { %3845 = vset.pattern.permute.xlu1 %v6477_v20  ;;  %6481 = vst [vmem:[#allocation14_spill] sm:$0xff] %v5385_v14  ;;  %v5392_v38 = vmul.f32 %v1540_v34, %v1473_v25 }
 0x2fa   :  { %1892 = vperm.xlu1 %3845, %v5259_v12   ;;  %3769 = vmatpush3.bf16.msra.mxu0 %v3978_v37  ;;  %v5400_v35 = vpop.permute.xlu0 %1567  ;;  %v1471_v17 = vsub.f32 %v5107_v60, %v1371_v3 }
 0x2fb   :  { %3849 = vset.pattern.permute.xlu0 %v6478_v22  ;;  %3770 = vmatprep.subr.bf16.mxu0 %v3979_v42  ;;  %6482 = vst [vmem:[#allocation6_spill] sm:$0xff] %v5392_v38 }
 0x2fc   :  { %2101 = vperm.xlu0 %3849, %v5280_v4   ;;  %v5405_v37 = vpop.permute.xlu1 %1579  ;;  %v5421_v50 = vmul.f32 %v5345_v44, %v1471_v17 }
 0x2fe   :  { %1904 = vperm.xlu1 %3845, %v5280_v4   ;;  %3771 = vmatpush3.bf16.msra.mxu0 %v3979_v42  ;;  %v5409_v63 = vpop.permute.xlu0 %1575  ;;  %6483 = vst [vmem:[#allocation7_spill] sm:$0xff] %v5421_v50 }
 0x2ff   :  { %3772 = vmatprep.subr.bf16.mxu0 %v3980_v18 }
 0x300   :  { %3850 = vset.pattern.permute.xlu0 %v6479_v49  ;;  %v5416_v42 = vpop.permute.xlu1 %1587 }
 0x301   :  { %2298 = vperm.xlu0 %3850, %v5280_v4  }
 0x302   :  { %3851 = vset.pattern.permute.xlu1 %v6476_v5  ;;  %3773 = vmatpush3.bf16.msra.mxu0 %v3980_v18  ;;  %v5418_v57 = vpop.permute.xlu0 %1583  ;;  %v3740_v18 = vpop.f32.mrf.mxu1 }
 0x303   :  { %1663 = vperm.xlu1 %3851, %v5303_v11   ;;  %v1392_v8 = vadd.f32 %v3740_v18, %v5251_v33 }
 0x304   :  { %v5427_v60 = vpop.permute.xlu1 %1595  ;;  %v1383_v53 = vpop.f32.mrf.mxu1 }
 0x305   :  { %3852 = vset.pattern.permute.xlu0 %v6477_v20  ;;  %v1476_v29 = vsub.f32 %v5125_v15, %v1392_v8  ;;  %v1384_v15 = vadd.f32 %v5251_v33, %v1383_v53 }
 0x306   :  { %1896 = vperm.xlu0 %3852, %v5303_v11   ;;  %v5430_v45 = vpop.permute.xlu0 %1591  ;;  %v3741_v28 = vpop.f32.mrf.mxu1 }
 0x307   :  { %3853 = vset.pattern.permute.xlu1 %v6478_v22  ;;  %v5445_v55 = vmul.f32 %v1552_v36, %v1476_v29  ;;  %v1474_v40 = vsub.f32 %v5113_v32, %v1384_v15  ;;  %v1395_v16 = vadd.f32 %v3741_v28, %v5251_v33 }
 0x308   :  { %2093 = vperm.xlu1 %3853, %v5303_v11   ;;  %v5436_v10 = vpop.permute.xlu1 %1603  ;;  %v1386_v48 = vpop.f32.mrf.mxu1 }
 0x309   :  { %6484 = vst [vmem:[#allocation8_spill] sm:$0xff] %v5445_v55  ;;  %v5467_v36 = vmul.f32 %v5365_v27, %v1474_v40  ;;  %v1477_v32 = vsub.f32 %v5143_v52, %v1395_v16  ;;  %v1387_v2 = vadd.f32 %v5251_v33, %v1386_v48 }
 0x30a   :  { %1916 = vperm.xlu0 %3852, %v5316_v26   ;;  %v5442_v44 = vpop.permute.xlu0 %1599  ;;  %v3744_v52 = vpop.f32.mrf.mxu1 }
 0x30b   :  { %6485 = vst [vmem:[#allocation34_spill] sm:$0xff] %v5467_v36  ;;  %v5478_v9 = vmul.f32 %v5373_v30, %v1477_v32  ;;  %v1475_v27 = vsub.f32 %v5131_v31, %v1387_v2  ;;  %v1408_v30 = vadd.f32 %v3744_v52, %v5251_v33 }
 0x30c   :  { %3854 = vset.pattern.permute.xlu1 %v6479_v49  ;;  %v5448_v34 = vpop.permute.xlu1 %1611  ;;  %v1399_v31 = vpop.f32.mrf.mxu1 }
 0x30d   :  { %2290 = vperm.xlu1 %3854, %v5303_v11   ;;  %v5485_v18 = vmul.f32 %v5361_v58, %v1475_v27  ;;  %v1480_v53 = vsub.f32 %v5149_v59, %v1408_v30  ;;  %v1400_v58 = vadd.f32 %v5251_v33, %v1399_v31 }
 0x30e   :  { %1908 = vperm.xlu0 %3852, %v5325_v24   ;;  %v5454_v43 = vpop.permute.xlu0 %1607  ;;  %v3745_v48 = vpop.f32.mrf.mxu1 }
 0x30f   :  { %v5504_v40 = vmul.f32 %v5400_v35, %v1480_v53  ;;  %v1478_v16 = vsub.f32 %v5137_v41, %v1400_v58  ;;  %v1411_v35 = vadd.f32 %v3745_v48, %v5251_v33  ;;  %v5519_v41 = vld [vmem:[%s6341_s7] ss:$0 sm:$0xff] }
 0x310   :  { %v5459_v61 = vpop.permute.xlu1 %1619 }
 0x311   :  { %3855 = vset.pattern.permute.xlu1 %v6476_v5  ;;  %v5512_v32 = vmul.f32 %v5389_v6, %v1478_v16  ;;  %v5527_v6 = vld [vmem:[%s6341_s7 + $0x1] ss:$0 sm:$0xff]  ;;  %v1481_v58 = vsub.f32 %v5167_v23, %v1411_v35  ;;  %v5535_v16 = vld [vmem:[%s6342_s8] ss:$0 sm:$0xff]  ;;  %v5546_v23 = vld [vmem:[%s6341_s7 + $0x2] ss:$0 sm:$0xff]  ;;  %v1402_v35 = vpop.f32.mrf.mxu1 }
 0x312   :  { %3861 = vset.pattern.permute.xlu0 %v6476_v5  ;;  %1688 = vperm.xlu1 %3855, %v5316_v26   ;;  %v5463_v47 = vpop.permute.xlu0 %1615 }
 0x313   :  { %1693 = vperm.xlu0 %3861, %v5334_v7   ;;  %6486 = vst [vmem:[#allocation16_spill] sm:$0xff] %v5512_v32 }
 0x316   :  { %3856 = vset.pattern.permute.xlu1 %v6478_v22 }
 0x317   :  { %3863 = vset.pattern.permute.xlu0 %v6478_v22  ;;  %2113 = vperm.xlu1 %3856, %v5316_v26  }
 0x318   :  { %2117 = vperm.xlu0 %3863, %v5334_v7  }
 0x31b   :  { %3857 = vset.pattern.permute.xlu1 %v6479_v49 }
 0x31c   :  { %3864 = vset.pattern.permute.xlu0 %v6479_v49  ;;  %2310 = vperm.xlu1 %3857, %v5316_v26  }
 0x31d   :  { %2314 = vperm.xlu0 %3864, %v5334_v7  }
 0x320   :  { %3858 = vset.pattern.permute.xlu1 %v6476_v5 }
 0x321   :  { %3865 = vset.pattern.permute.xlu0 %v6476_v5  ;;  %1678 = vperm.xlu1 %3858, %v5325_v24  }
 0x322   :  { %1683 = vperm.xlu0 %3865, %v5352_v46  }
 0x325   :  { %3859 = vset.pattern.permute.xlu1 %v6478_v22 }
 0x326   :  { %3866 = vset.pattern.permute.xlu0 %v6478_v22  ;;  %2105 = vperm.xlu1 %3859, %v5325_v24  }
 0x327   :  { %2109 = vperm.xlu0 %3866, %v5352_v46  }
 0x32a   :  { %3860 = vset.pattern.permute.xlu1 %v6479_v49 }
 0x32b   :  { %3867 = vset.pattern.permute.xlu0 %v6479_v49  ;;  %2302 = vperm.xlu1 %3860, %v5325_v24  }
 0x32c   :  { %2306 = vperm.xlu0 %3867, %v5352_v46  }
 0x32f   :  { %3862 = vset.pattern.permute.xlu1 %v6477_v20 }
 0x330   :  { %3869 = vset.pattern.permute.xlu0 %v6477_v20  ;;  %1920 = vperm.xlu1 %3862, %v5334_v7  }
 0x331   :  { %1932 = vperm.xlu0 %3869, %v5375_v13  }
 0x334   :  { %1912 = vperm.xlu1 %3862, %v5352_v46  }
 0x335   :  { %1924 = vperm.xlu0 %3869, %v5385_v14  }
 0x338   :  { %3868 = vset.pattern.permute.xlu1 %v6476_v5 }
 0x339   :  { %3875 = vset.pattern.permute.xlu0 %v6476_v5  ;;  %1708 = vperm.xlu1 %3868, %v5375_v13  }
 0x33a   :  { %1713 = vperm.xlu0 %3875, %v5392_v38  }
 0x33d   :  { %3870 = vset.pattern.permute.xlu1 %v6478_v22 }
 0x33e   :  { %3877 = vset.pattern.permute.xlu0 %v6478_v22  ;;  %2129 = vperm.xlu1 %3870, %v5375_v13  }
 0x33f   :  { %2133 = vperm.xlu0 %3877, %v5392_v38  }
 0x342   :  { %3871 = vset.pattern.permute.xlu1 %v6479_v49 }
 0x343   :  { %3878 = vset.pattern.permute.xlu0 %v6479_v49  ;;  %2326 = vperm.xlu1 %3871, %v5375_v13  }
 0x344   :  { %2330 = vperm.xlu0 %3878, %v5392_v38  }
 0x347   :  { %3872 = vset.pattern.permute.xlu1 %v6476_v5 }
 0x348   :  { %3879 = vset.pattern.permute.xlu0 %v6476_v5  ;;  %1698 = vperm.xlu1 %3872, %v5385_v14  }
 0x349   :  { %1703 = vperm.xlu0 %3879, %v5421_v50  }
 0x34c   :  { %3873 = vset.pattern.permute.xlu1 %v6478_v22 }
 0x34d   :  { %3880 = vset.pattern.permute.xlu0 %v6478_v22  ;;  %2121 = vperm.xlu1 %3873, %v5385_v14  }
 0x34e   :  { %2125 = vperm.xlu0 %3880, %v5421_v50  }
 0x351   :  { %3874 = vset.pattern.permute.xlu1 %v6479_v49 }
 0x352   :  { %3881 = vset.pattern.permute.xlu0 %v6479_v49  ;;  %2318 = vperm.xlu1 %3874, %v5385_v14  }
 0x353   :  { %2322 = vperm.xlu0 %3881, %v5421_v50  }
 0x356   :  { %3876 = vset.pattern.permute.xlu1 %v6477_v20 }
 0x357   :  { %3883 = vset.pattern.permute.xlu0 %v6477_v20  ;;  %1936 = vperm.xlu1 %3876, %v5392_v38  }
 0x358   :  { %1948 = vperm.xlu0 %3883, %v5445_v55  }
 0x35b   :  { %1928 = vperm.xlu1 %3876, %v5421_v50  }
 0x35c   :  { %3884 = vset.pattern.permute.xlu0 %v6478_v22 }
 0x35d   :  { %2145 = vperm.xlu0 %3884, %v5445_v55  }
 0x35f   :  { %3882 = vset.pattern.permute.xlu1 %v6476_v5 }
 0x360   :  { %1728 = vperm.xlu1 %3882, %v5445_v55  }
 0x361   :  { %v5472_v51 = vpop.permute.xlu1 %1668  ;;  %3887 = vset.pattern.permute.xlu0 %v6477_v20 }
 0x362   :  { %1940 = vperm.xlu0 %3887, %v5467_v36  }
 0x363   :  { %v1659_v25 = vpop.permute.xlu0 %1658 }
 0x364   :  { %3885 = vset.pattern.permute.xlu1 %v6479_v49  ;;  %v1820_v52 = vmul.f32 %v5519_v41, %v1659_v25 }
 0x365   :  { %2342 = vperm.xlu1 %3885, %v5445_v55  }
 0x366   :  { %v1901_v3 = vpop.permute.xlu1 %1900  ;;  %3890 = vset.pattern.permute.xlu0 %v6476_v5  ;;  %v1858_v25 = vadd.f32 %v5535_v16, %v1820_v52  ;;  %v5553_v52 = vmul.f32 %v5395_v39, %v1481_v58 }
 0x367   :  { %1733 = vperm.xlu0 %3890, %v5478_v9   ;;  %v2025_v50 = vmul.f32 %v5527_v6, %v1901_v3 }
 0x368   :  { %v2090_v17 = vpop.permute.xlu0 %2089 }
 0x369   :  { %3886 = vset.pattern.permute.xlu1 %v6476_v5  ;;  %v2220_v14 = vmul.f32 %v5546_v23, %v2090_v17 }
 0x36a   :  { %1718 = vperm.xlu1 %3886, %v5467_v36  }
 0x36b   :  { %v5490_v8 = vpop.permute.xlu1 %2097  ;;  %1723 = vperm.xlu0 %3890, %v5485_v18  }
 0x36c   :  { %v2222_v3 = vmul.f32 %v5546_v23, %v5490_v8 }
 0x36d   :  { %v5493_v29 = vpop.permute.xlu0 %2286 }
 0x36e   :  { %3888 = vset.pattern.permute.xlu1 %v6478_v22 }
 0x36f   :  { %3896 = vset.pattern.permute.xlu0 %v6479_v49  ;;  %2137 = vperm.xlu1 %3888, %v5467_v36  }
 0x370   :  { %v5500_v15 = vpop.permute.xlu1 %2294  ;;  %2338 = vperm.xlu0 %3896, %v5485_v18  }
 0x372   :  { %v1674_v28 = vpop.permute.xlu0 %1673 }
 0x373   :  { %3889 = vset.pattern.permute.xlu1 %v6479_v49  ;;  %v1823_v30 = vmul.f32 %v5519_v41, %v1674_v28 }
 0x374   :  { %3898 = vset.pattern.permute.xlu0 %v6477_v20  ;;  %2334 = vperm.xlu1 %3889, %v5467_v36  }
 0x375   :  { %v1893_v59 = vpop.permute.xlu1 %1892  ;;  %1964 = vperm.xlu0 %3898, %v5504_v40   ;;  %v1861_v28 = vadd.f32 %v5535_v16, %v1823_v30 }
 0x376   :  { %v2023_v31 = vmul.f32 %v5527_v6, %v1893_v59 }
 0x377   :  { %v2102_v2 = vpop.permute.xlu0 %2101 }
 0x378   :  { %3891 = vset.pattern.permute.xlu1 %v6477_v20  ;;  %v2055_v55 = vadd.f32 %v2023_v31, %v1858_v25 }
 0x379   :  { %v1905_v27 = vpop.permute.xlu1 %1904  ;;  %1952 = vperm.xlu1 %3891, %v5478_v9   ;;  %1956 = vperm.xlu0 %3898, %v5512_v32  }
 0x37a   :  { %v2026_v48 = vmul.f32 %v5527_v6, %v1905_v27  ;;  %v1822_v27 = vmul.f32 %v5519_v41, %v5472_v51  ;;  %v2223_v51 = vmul.f32 %v5546_v23, %v2102_v2  ;;  %v2252_v17 = vadd.f32 %v2220_v14, %v2055_v55 }
 0x37c   :  { %v2299_v53 = vpop.permute.xlu0 %2298  ;;  %v2058_v36 = vadd.f32 %v2026_v48, %v1861_v28  ;;  %v1860_v31 = vadd.f32 %v5535_v16, %v1822_v27 }
 0x37d   :  { %3892 = vset.pattern.permute.xlu1 %v6478_v22  ;;  %3902 = vset.pattern.permute.xlu0 %v6478_v22 }
 0x37e   :  { %v1664_v21 = vpop.permute.xlu1 %1663  ;;  %2149 = vperm.xlu1 %3892, %v5478_v9   ;;  %2153 = vperm.xlu0 %3902, %v5512_v32   ;;  %v2255_v58 = vadd.f32 %v2223_v51, %v2058_v36 }
 0x37f   :  { %v1821_v59 = vmul.f32 %v5519_v41, %v1664_v21  ;;  %v1403_v21 = vadd.f32 %v5251_v33, %v1402_v35 }
 0x381   :  { %v1859_v38 = vadd.f32 %v5535_v16, %v1821_v59  ;;  %v1897_v13 = vpop.permute.xlu0 %1896  ;;  %v2057_v59 = vadd.f32 %v2025_v50, %v1860_v31  ;;  %v1479_v35 = vsub.f32 %v5155_v1, %v1403_v21 }
 0x382   :  { %v2024_v30 = vmul.f32 %v5527_v6, %v1897_v13  ;;  %3893 = vset.pattern.permute.xlu1 %v6479_v49  ;;  %3904 = vset.pattern.permute.xlu0 %v6476_v5  ;;  %v5571_v13 = vld [vmem:[%s6341_s7 + $0x3] ss:$0 sm:$0xff] }
 0x383   :  { %v2094_v39 = vpop.permute.xlu1 %2093  ;;  %2346 = vperm.xlu1 %3893, %v5478_v9   ;;  %1753 = vperm.xlu0 %3904, %v5553_v52   ;;  %v2420_v48 = vmul.f32 %v5571_v13, %v2299_v53  ;;  %v2417_v8 = vmul.f32 %v5571_v13, %v5493_v29  ;;  %v2419_v27 = vmul.f32 %v5571_v13, %v5500_v15  ;;  %v3748_v53 = vpop.f32.mrf.mxu1 }
 0x384   :  { %v2056_v2 = vadd.f32 %v2024_v30, %v1859_v38  ;;  %v2221_v25 = vmul.f32 %v5546_v23, %v2094_v39  ;;  %v2254_v14 = vadd.f32 %v2222_v3, %v2057_v59  ;;  %v5590_v15 = vmul.f32 %v5383_v0, %v1479_v35 }
 0x385   :  { %v5575_v28 = vpop.permute.xlu0 %1916  ;;  %v2452_v38 = vadd.f32 %v2420_v48, %v2255_v58  ;;  %v2449_v29 = vadd.f32 %v2417_v8, %v2252_v17  ;;  %v1424_v51 = vadd.f32 %v3748_v53, %v5251_v33  ;;  %v1415_v58 = vpop.f32.mrf.mxu1 }
 0x386   :  { %v2253_v50 = vadd.f32 %v2221_v25, %v2056_v2  ;;  %6487 = vst [vmem:[#allocation49_spill] sm:$0xff] %v5590_v15  ;;  %v2451_v30 = vadd.f32 %v2419_v27, %v2254_v14  ;;  %v1416_v59 = vadd.f32 %v5251_v33, %v1415_v58 }
 0x387   :  { %3894 = vset.pattern.permute.xlu1 %v6477_v20  ;;  %3906 = vset.pattern.permute.xlu0 %v6478_v22  ;;  %v2484_v39 = vmax.f32 %v2452_v38, 0.0  ;;  %v2481_v17 = vmax.f32 %v2449_v29, 0.0  ;;  %v1484_v25 = vsub.f32 %v5173_v19, %v1424_v51  ;;  %v3749_v38 = vpop.f32.mrf.mxu1 }
 0x388   :  { %v2291_v55 = vpop.permute.xlu1 %2290  ;;  %1944 = vperm.xlu1 %3894, %v5485_v18   ;;  %2165 = vperm.xlu0 %3906, %v5553_v52   ;;  %v2483_v0 = vmax.f32 %v2451_v30, 0.0  ;;  %v1482_v19 = vsub.f32 %v5161_v56, %v1416_v59 }
 0x389   :  { %v2418_v1 = vmul.f32 %v5571_v13, %v2291_v55  ;;  %v5587_v36 = vpop.permute.xlu0 %1908  ;;  %v5606_v14 = vmul.f32 %v5418_v57, %v1484_v25  ;;  %v1427_v57 = vadd.f32 %v3749_v38, %v5251_v33  ;;  %v1418_v30 = vpop.f32.mrf.mxu1 }
 0x38a   :  { %v2514_v35 = vpack.c.bf16 %v2484_v39, %v2483_v0  ;;  %v1419_v39 = vadd.f32 %v5251_v33, %v1418_v30 }
 0x38b   :  { %v2450_v21 = vadd.f32 %v2418_v1, %v2253_v50  ;;  %6488 = vst [vmem:[#allocation32_spill] sm:$0xff] %v5606_v14  ;;  %v5616_v1 = vmul.f32 %v5409_v63, %v1482_v19  ;;  %v1485_v53 = vsub.f32 %v5185_v62, %v1427_v57 }
 0x38c   :  { %3895 = vset.pattern.permute.xlu1 %v6478_v22  ;;  %3908 = vset.pattern.permute.xlu0 %v6476_v5 }
 0x38d   :  { %v2482_v31 = vmax.f32 %v2450_v21, 0.0  ;;  %v1689_v3 = vpop.permute.xlu1 %1688  ;;  %2141 = vperm.xlu1 %3895, %v5485_v18   ;;  %1743 = vperm.xlu0 %3908, %v5590_v15   ;;  %6489 = vst [vmem:[#allocation50_spill] sm:$0xff] %v5616_v1  ;;  %v5628_v51 = vmul.f32 %v5416_v42, %v1485_v53  ;;  %v5641_v42 = vld [vmem:[%s6334_s0 + $0xa8] sm:$0xff]  ;;  %v2029_v53 = vmul.f32 %v5527_v6, %v5575_v28 }
 0x38e   :  { %v1694_v48 = vpop.permute.xlu0 %1693  ;;  %vm2782_vm10 = vcmp.gt.f32.partialorder %v5641_v42, 0.0 }
 0x38f   :  { %v2513_v2 = vpack.c.bf16 %v2482_v31, %v2481_v17  ;;  %v1826_v17 = vmul.f32 %v5519_v41, %v1689_v3  ;;  %v1827_v58 = vmul.f32 %v5519_v41, %v1694_v48  ;;  %v3752_v48 = vpop.f32.mrf.mxu1 }
 0x391   :  { %3897 = vset.pattern.permute.xlu1 %v6476_v5  ;;  %3911 = vset.pattern.permute.xlu0 %v6479_v49  ;;  %v1864_v3 = vadd.f32 %v5535_v16, %v1826_v17  ;;  %v1865_v19 = vadd.f32 %v5535_v16, %v1827_v58  ;;  %v1431_v28 = vpop.f32.mrf.mxu1 }
 0x392   :  { %3774 = vmatprep.mubr.bf16.mxu0 %v2513_v2  ;;  %v5601_v8 = vpop.permute.xlu1 %2113  ;;  %2354 = vperm.xlu0 %3911, %v5590_v15   ;;  %v1483_v2 = vsub.f32 %v5641_v42, %v1419_v39 }
 0x393   :  { %1748 = vperm.xlu1 %3897, %v5504_v40   ;;  %3775 = vmatmul.mubr.bf16.vlgmr.msra.gmra.mxu0 %v2514_v35  ;;  %v2118_v27 = vpop.permute.xlu0 %2117  ;;  %v2027_v35 = vmul.f32 %v5527_v6, %v5587_v36  ;;  %v2061_v58 = vadd.f32 %v2029_v53, %v1864_v3 }
 0x394   :  { %v2227_v30 = vmul.f32 %v5546_v23, %v2118_v27 }
 0x396   :  { %3913 = vset.pattern.permute.xlu0 %v6477_v20 }
 0x397   :  { %3899 = vset.pattern.permute.xlu1 %v6478_v22  ;;  %v5611_v55 = vpop.permute.xlu1 %2310  ;;  %1980 = vperm.xlu0 %3913, %v5606_v14  }
 0x398   :  { %2161 = vperm.xlu1 %3899, %v5504_v40   ;;  %v2315_v50 = vpop.permute.xlu0 %2314 }
 0x399   :  { %v2424_v3 = vmul.f32 %v5571_v13, %v2315_v50 }
 0x39b   :  { %1972 = vperm.xlu0 %3913, %v5616_v1  }
 0x39c   :  { %3900 = vset.pattern.permute.xlu1 %v6479_v49  ;;  %v1679_v56 = vpop.permute.xlu1 %1678 }
 0x39d   :  { %2358 = vperm.xlu1 %3900, %v5504_v40   ;;  %v1684_v29 = vpop.permute.xlu0 %1683  ;;  %v1824_v62 = vmul.f32 %v5519_v41, %v1679_v56  ;;  %v5656_v56 = vmul.f32 %v5405_v37, %v1483_v2  ;;  %v2226_v37 = vmul.f32 %v5546_v23, %v5601_v8 }
 0x39e   :  { %v1825_v38 = vmul.f32 %v5519_v41, %v1684_v29  ;;  %v1440_v29 = vadd.f32 %v3752_v48, %v5251_v33  ;;  %v2423_v48 = vmul.f32 %v5571_v13, %v5611_v55 }
 0x39f   :  { %3917 = vset.pattern.permute.xlu0 %v6478_v22  ;;  %v1862_v25 = vadd.f32 %v5535_v16, %v1824_v62  ;;  %6490 = vst [vmem:[#allocation15_spill] sm:$0xff] %v5656_v56  ;;  %v2258_v53 = vadd.f32 %v2226_v37, %v2061_v58  ;;  %v5698_v37 = vld [vmem:[%s6334_s0 + $0xc0] sm:$0xff] }
 0x3a0   :  { %2169 = vperm.xlu0 %3917, %v5616_v1   ;;  %v1863_v27 = vadd.f32 %v5535_v16, %v1825_v38 }
 0x3a1   :  { %3901 = vset.pattern.permute.xlu1 %v6476_v5  ;;  %v2106_v63 = vpop.permute.xlu1 %2105  ;;  %v2059_v39 = vadd.f32 %v2027_v35, %v1862_v25 }
 0x3a2   :  { %1738 = vperm.xlu1 %3901, %v5512_v32   ;;  %v2110_v21 = vpop.permute.xlu0 %2109  ;;  %v2224_v62 = vmul.f32 %v5546_v23, %v2106_v63 }
 0x3a3   :  { %v2225_v35 = vmul.f32 %v5546_v23, %v2110_v21 }
 0x3a4   :  { %3919 = vset.pattern.permute.xlu0 %v6476_v5  ;;  %v2256_v8 = vadd.f32 %v2224_v62, %v2059_v39 }
 0x3a5   :  { %1773 = vperm.xlu0 %3919, %v5628_v51  }
 0x3a6   :  { %3903 = vset.pattern.permute.xlu1 %v6479_v49  ;;  %v2303_v31 = vpop.permute.xlu1 %2302 }
 0x3a7   :  { %2350 = vperm.xlu1 %3903, %v5512_v32   ;;  %v2307_v0 = vpop.permute.xlu0 %2306  ;;  %v2421_v25 = vmul.f32 %v5571_v13, %v2303_v31  ;;  %v5681_v31 = vld [vmem:[%s6334_s0 + $0xd0] sm:$0xff] }
 0x3a8   :  { %v1488_v38 = vsub.f32 %v5681_v31, %v1440_v29 }
 0x3a9   :  { %3921 = vset.pattern.permute.xlu0 %v6478_v22  ;;  %v2453_v50 = vadd.f32 %v2421_v25, %v2256_v8 }
 0x3aa   :  { %2181 = vperm.xlu0 %3921, %v5628_v51   ;;  %v5693_v58 = vmul.f32 %v5442_v44, %v1488_v38 }
 0x3ab   :  { %3905 = vset.pattern.permute.xlu1 %v6477_v20  ;;  %v1921_v59 = vpop.permute.xlu1 %1920 }
 0x3ac   :  { %v2030_v57 = vmul.f32 %v5527_v6, %v1921_v59  ;;  %1968 = vperm.xlu1 %3905, %v5553_v52   ;;  %v5662_v17 = vpop.permute.xlu0 %1932  ;;  %6491 = vst [vmem:[#allocation51_spill] sm:$0xff] %v5693_v58 }
 0x3ae   :  { %v2062_v36 = vadd.f32 %v2030_v57, %v1865_v19  ;;  %3923 = vset.pattern.permute.xlu0 %v6476_v5  ;;  %v1432_v57 = vadd.f32 %v5251_v33, %v1431_v28  ;;  %v2485_v28 = vmax.f32 %v2453_v50, 0.0 }
 0x3af   :  { %v1913_v2 = vpop.permute.xlu1 %1912  ;;  %1763 = vperm.xlu0 %3923, %v5656_v56  }
 0x3b0   :  { %v2259_v63 = vadd.f32 %v2227_v30, %v2062_v36  ;;  %v2028_v59 = vmul.f32 %v5527_v6, %v1913_v2  ;;  %3907 = vset.pattern.permute.xlu1 %v6479_v49  ;;  %v2422_v30 = vmul.f32 %v5571_v13, %v2307_v0  ;;  %v5687_v62 = vpop.permute.xlu0 %1924  ;;  %v2455_v36 = vadd.f32 %v2423_v48, %v2258_v53 }
 0x3b1   :  { %2362 = vperm.xlu1 %3907, %v5553_v52   ;;  %v1486_v0 = vsub.f32 %v5698_v37, %v1432_v57 }
 0x3b2   :  { %v2060_v19 = vadd.f32 %v2028_v59, %v1863_v27  ;;  %v2456_v55 = vadd.f32 %v2424_v3, %v2259_v63  ;;  %v2487_v25 = vmax.f32 %v2455_v36, 0.0  ;;  %v3753_v59 = vpop.f32.mrf.mxu1 }
 0x3b3   :  { %3926 = vset.pattern.permute.xlu0 %v6479_v49  ;;  %v5707_v3 = vmul.f32 %v5430_v45, %v1486_v0  ;;  %v5719_v45 = vld [vmem:[%s6334_s0 + $0xd8] sm:$0xff] }
 0x3b4   :  { %v2257_v39 = vadd.f32 %v2225_v35, %v2060_v19  ;;  %v1709_v21 = vpop.permute.xlu1 %1708  ;;  %2370 = vperm.xlu0 %3926, %v5656_v56   ;;  %v2488_v2 = vmax.f32 %v2456_v55, 0.0  ;;  %v1443_v35 = vadd.f32 %v3753_v59, %v5251_v33  ;;  %v1434_v55 = vpop.f32.mrf.mxu1 }
 0x3b5   :  { %3909 = vset.pattern.permute.xlu1 %v6477_v20  ;;  %v1714_v44 = vpop.permute.xlu0 %1713  ;;  %6492 = vst [vmem:[#allocation36_spill] sm:$0xff] %v5707_v3 }
 0x3b6   :  { %1960 = vperm.xlu1 %3909, %v5590_v15   ;;  %v2454_v29 = vadd.f32 %v2422_v30, %v2257_v39  ;;  %v2516_v8 = vpack.c.bf16 %v2488_v2, %v2487_v25  ;;  %v1489_v57 = vsub.f32 %v5719_v45, %v1443_v35  ;;  %v1435_v39 = vadd.f32 %v5251_v33, %v1434_v55  ;;  %v3756_v2 = vpop.f32.mrf.mxu1 }
 0x3b7   :  { %v1830_v25 = vmul.f32 %v5519_v41, %v1709_v21 }
 0x3b8   :  { %3928 = vset.pattern.permute.xlu0 %v6477_v20  ;;  %v2486_v27 = vmax.f32 %v2454_v29, 0.0  ;;  %v5726_v50 = vmul.f32 %v5436_v10, %v1489_v57  ;;  %v5737_v29 = vld [vmem:[%s6334_s0 + $0xc8] sm:$0xff]  ;;  %v1447_v35 = vpop.f32.mrf.mxu1 }
 0x3b9   :  { %v5702_v63 = vpop.permute.xlu1 %2129  ;;  %1996 = vperm.xlu0 %3928, %v5693_v58   ;;  %v1487_v10 = vsub.f32 %v5737_v29, %v1435_v39  ;;  %v1868_v21 = vadd.f32 %v5535_v16, %v1830_v25  ;;  %v1448_v25 = vadd.f32 %v5251_v33, %v1447_v35  ;;  %vm2786_vm14 = vcmp.gt.f32.partialorder %v5737_v29, 0.0 }
 0x3ba   :  { %3910 = vset.pattern.permute.xlu1 %v6478_v22  ;;  %v2515_v48 = vpack.c.bf16 %v2486_v27, %v2485_v28  ;;  %v2134_v38 = vpop.permute.xlu0 %2133  ;;  %v2230_v32 = vmul.f32 %v5546_v23, %v5702_v63 }
 0x3bb   :  { %2157 = vperm.xlu1 %3910, %v5590_v15   ;;  %v5746_v59 = vmul.f32 %v5427_v60, %v1487_v10  ;;  %v2031_v60 = vmul.f32 %v5527_v6, %v5687_v62  ;;  %v2033_v62 = vmul.f32 %v5527_v6, %v5662_v17 }
 0x3bc   :  { %3778 = vmatprep.mubr.bf16.mxu0 %v2515_v48  ;;  %v1831_v48 = vmul.f32 %v5519_v41, %v1714_v44 }
 0x3bd   :  { %1988 = vperm.xlu0 %3928, %v5707_v3   ;;  %3779 = vmatmul.mubr.bf16.gmra.mxu0 %v2516_v8  ;;  %v1456_v8 = vadd.f32 %v3756_v2, %v5251_v33  ;;  %v5764_v2 = vld [vmem:[%s6334_s0 + $0xf0] sm:$0xff]  ;;  %v2065_v15 = vadd.f32 %v2033_v62, %v1868_v21 }
 0x3be   :  { %v5712_v19 = vpop.permute.xlu1 %2326  ;;  %v1869_v44 = vadd.f32 %v5535_v16, %v1831_v48 }
 0x3bf   :  { %3912 = vset.pattern.permute.xlu1 %v6476_v5  ;;  %v2331_v30 = vpop.permute.xlu0 %2330  ;;  %v2427_v21 = vmul.f32 %v5571_v13, %v5712_v19 }
 0x3c0   :  { %1768 = vperm.xlu1 %3912, %v5606_v14  }
 0x3c1   :  { %3932 = vset.pattern.permute.xlu0 %v6478_v22 }
 0x3c2   :  { %2185 = vperm.xlu0 %3932, %v5707_v3  }
 0x3c3   :  { %v1699_v53 = vpop.permute.xlu1 %1698 }
 0x3c4   :  { %3914 = vset.pattern.permute.xlu1 %v6478_v22  ;;  %v1704_v0 = vpop.permute.xlu0 %1703  ;;  %v1828_v28 = vmul.f32 %v5519_v41, %v1699_v53 }
 0x3c5   :  { %2177 = vperm.xlu1 %3914, %v5606_v14   ;;  %v1829_v39 = vmul.f32 %v5519_v41, %v1704_v0  ;;  %v2231_v0 = vmul.f32 %v5546_v23, %v2134_v38 }
 0x3c6   :  { %3934 = vset.pattern.permute.xlu0 %v6476_v5  ;;  %v1866_v57 = vadd.f32 %v5535_v16, %v1828_v28  ;;  %v1492_v28 = vsub.f32 %v5764_v2, %v1456_v8 }
 0x3c7   :  { %1793 = vperm.xlu0 %3934, %v5726_v50   ;;  %v1867_v33 = vadd.f32 %v5535_v16, %v1829_v39  ;;  %v2262_v39 = vadd.f32 %v2230_v32, %v2065_v15  ;;  %v4020_v32 = vld [vmem:[%s6340_s6] ss:$0 sm:$0xff] }
 0x3c8   :  { %v2122_v36 = vpop.permute.xlu1 %2121  ;;  %v2063_v48 = vadd.f32 %v2031_v60, %v1866_v57  ;;  %v5781_v57 = vmul.f32 %v5463_v47, %v1492_v28 }
 0x3c9   :  { %3915 = vset.pattern.permute.xlu1 %v6479_v49  ;;  %v2126_v53 = vpop.permute.xlu0 %2125 }
 0x3ca   :  { %2374 = vperm.xlu1 %3915, %v5606_v14  }
 0x3cb   :  { %3936 = vset.pattern.permute.xlu0 %v6478_v22 }
 0x3cc   :  { %2197 = vperm.xlu0 %3936, %v5726_v50  }
 0x3cd   :  { %v2319_v27 = vpop.permute.xlu1 %2318 }
 0x3ce   :  { %3916 = vset.pattern.permute.xlu1 %v6476_v5  ;;  %v2425_v17 = vmul.f32 %v5571_v13, %v2319_v27  ;;  %v2323_v60 = vpop.permute.xlu0 %2322 }
 0x3cf   :  { %1758 = vperm.xlu1 %3916, %v5616_v1   ;;  %v2426_v28 = vmul.f32 %v5571_v13, %v2323_v60 }
 0x3d0   :  { %3938 = vset.pattern.permute.xlu0 %v6476_v5 }
 0x3d1   :  { %1783 = vperm.xlu0 %3938, %v5746_v59  }
 0x3d2   :  { %v1937_v55 = vpop.permute.xlu1 %1936 }
 0x3d3   :  { %v2034_v10 = vmul.f32 %v5527_v6, %v1937_v55  ;;  %3918 = vset.pattern.permute.xlu1 %v6479_v49  ;;  %v2228_v55 = vmul.f32 %v5546_v23, %v2122_v36  ;;  %v5786_v36 = vld [vmem:[%s6334_s0 + $0xe0] sm:$0xff]  ;;  %v1949_v60 = vpop.permute.xlu0 %1948 }
 0x3d4   :  { %2366 = vperm.xlu1 %3918, %v5616_v1   ;;  %v1490_v63 = vsub.f32 %v5786_v36, %v1448_v25 }
 0x3d5   :  { %v2066_v14 = vadd.f32 %v2034_v10, %v1869_v44  ;;  %3941 = vset.pattern.permute.xlu0 %v6479_v49  ;;  %v2260_v27 = vadd.f32 %v2228_v55, %v2063_v48  ;;  %v2229_v44 = vmul.f32 %v5546_v23, %v2126_v53  ;;  %v2459_v53 = vadd.f32 %v2427_v21, %v2262_v39 }
 0x3d6   :  { %v1929_v8 = vpop.permute.xlu1 %1928  ;;  %2386 = vperm.xlu0 %3941, %v5746_v59  }
 0x3d7   :  { %v2263_v35 = vadd.f32 %v2231_v0, %v2066_v14  ;;  %v2032_v38 = vmul.f32 %v5527_v6, %v1929_v8  ;;  %v2428_v14 = vmul.f32 %v5571_v13, %v2331_v30  ;;  %v2457_v10 = vadd.f32 %v2425_v17, %v2260_v27  ;;  %v3757_v0 = vpop.f32.mrf.mxu1 }
 0x3d8   :  { %3920 = vset.pattern.permute.xlu1 %v6477_v20  ;;  %v5801_v30 = vmul.f32 %v5454_v43, %v1490_v63  ;;  %v1459_v15 = vadd.f32 %v4020_v32, %v3757_v0  ;;  %v2491_v43 = vmax.f32 %v2459_v53, 0.0 }
 0x3d9   :  { %v2064_v47 = vadd.f32 %v2032_v38, %v1867_v33  ;;  %1984 = vperm.xlu1 %3920, %v5628_v51   ;;  %v2460_v19 = vadd.f32 %v2428_v14, %v2263_v35  ;;  %v2489_v55 = vmax.f32 %v2457_v10, 0.0  ;;  %v5815_v38 = vld [vmem:[%s6334_s0 + $0xf8] sm:$0xff]  ;;  %v1450_v27 = vpop.f32.mrf.mxu1  ;;  %v2146_v10 = vpop.permute.xlu0 %2145 }
 0x3da   :  { %3943 = vset.pattern.permute.xlu0 %v6477_v20  ;;  %v1493_v63 = vsub.f32 %v5815_v38, %v1459_v15 }
 0x3db   :  { %v2261_v25 = vadd.f32 %v2229_v44, %v2064_v47  ;;  %v5797_v62 = vpop.permute.xlu1 %1728  ;;  %2012 = vperm.xlu0 %3943, %v5781_v57   ;;  %v2492_v33 = vmax.f32 %v2460_v19, 0.0  ;;  %v1451_v47 = vadd.f32 %v4020_v32, %v1450_v27  ;;  %v4025_v27 = vld [vmem:[%s6334_s0 + $0x28] sm:$0xff] }
 0x3dc   :  { %v5822_v44 = vmul.f32 %v5459_v61, %v1493_v63  ;;  %vm2766_vm2 = vcmp.gt.f32.partialorder %v4025_v27, 0.0 }
 0x3dd   :  { %3922 = vset.pattern.permute.xlu1 %v6479_v49  ;;  %v2458_v48 = vadd.f32 %v2426_v28, %v2261_v25  ;;  %v2518_v21 = vpack.c.bf16 %v2492_v33, %v2491_v43  ;;  %v5832_v28 = vld [vmem:[%s6334_s0 + $0xe8] sm:$0xff]  ;;  %v1941_v0 = vpop.permute.xlu0 %1940  ;;  %v6493_v33 = vmov 4  }
 0x3de   :  { %2378 = vperm.xlu1 %3922, %v5628_v51   ;;  %v1491_v61 = vsub.f32 %v5832_v28, %v1451_v47 }
 0x3df   :  { %2004 = vperm.xlu0 %3943, %v5801_v30   ;;  %v2490_v8 = vmax.f32 %v2458_v48, 0.0 }
 0x3e0   :  { %v5809_v17 = vpop.permute.xlu1 %2342  ;;  %v5839_v19 = vmul.f32 %v5448_v34, %v1491_v61  ;;  %v4023_v34 = vld [vmem:[%s6334_s0] sm:$0xff] }
 0x3e1   :  { %v2517_v35 = vpack.c.bf16 %v2490_v8, %v2489_v55  ;;  %vm2761_vm0 = vcmp.gt.f32.partialorder %v4023_v34, 0.0  ;;  %v4024_v55 = vld [vmem:[%s6334_s0 + $0x18] sm:$0xff]  ;;  %v1834_v8 = vmul.f32 %v5519_v41, %v5797_v62 }
 0x3e2   :  { %3924 = vset.pattern.permute.xlu1 %v6477_v20  ;;  %v1734_v48 = vpop.permute.xlu0 %1733  ;;  %v2794_v15 = vsel %vm2761_vm0, 1, %v6476_v5  ;;  %vm2764_vm1 = vcmp.gt.f32.partialorder %v4024_v55, 0.0  ;;  %v2035_v55 = vmul.f32 %v5527_v6, %v1941_v0  ;;  %v2234_v0 = vmul.f32 %v5546_v23, %v2146_v10 }
 0x3e3   :  { %1976 = vperm.xlu1 %3924, %v5656_v56   ;;  %3946 = vset.pattern.permute.xlu0 %v6478_v22  ;;  %v1872_v47 = vadd.f32 %v5535_v16, %v1834_v8  ;;  %v1835_v62 = vmul.f32 %v5519_v41, %v1734_v48  ;;  %v4026_v48 = vld [vmem:[%s6334_s0 + $0x38] sm:$0xff]  ;;  %v2431_v10 = vmul.f32 %v5571_v13, %v5809_v17  ;;  %vm2788_vm0 = vcmp.gt.f32.partialorder %v5719_v45, 0.0 }
 0x3e4   :  { %3782 = vmatprep.mubr.bf16.mxu0 %v2517_v35  ;;  %2201 = vperm.xlu0 %3946, %v5801_v30   ;;  %vm2768_vm3 = vcmp.gt.f32.partialorder %v4026_v48, 0.0  ;;  %v2821_v29 = vsel %vm2788_vm0, 1, %v6476_v5 }
 0x3e5   :  { %3783 = vmatmul.mubr.bf16.gmra.mxu0 %v2518_v21  ;;  %v1719_v14 = vpop.permute.xlu1 %1718  ;;  %v2797_v21 = vsel %vm2764_vm1, 1, %v6476_v5 }
 0x3e6   :  { %v1832_v43 = vmul.f32 %v5519_v41, %v1719_v14  ;;  %v1724_v35 = vpop.permute.xlu0 %1723  ;;  %v2037_v14 = vmul.f32 %v5527_v6, %v1949_v60 }
 0x3e7   :  { %3925 = vset.pattern.permute.xlu1 %v6478_v22  ;;  %v1833_v27 = vmul.f32 %v5519_v41, %v1724_v35 }
 0x3e8   :  { %2173 = vperm.xlu1 %3925, %v5656_v56   ;;  %3948 = vset.pattern.permute.xlu0 %v6476_v5  ;;  %v1870_v61 = vadd.f32 %v5535_v16, %v1832_v43  ;;  %v2069_v43 = vadd.f32 %v2037_v14, %v1872_v47  ;;  %v2801_v47 = vsel %vm2768_vm3, 1, %v6476_v5 }
 0x3e9   :  { %1813 = vperm.xlu0 %3948, %v5822_v44  }
 0x3ea   :  { %v2138_v39 = vpop.permute.xlu1 %2137 }
 0x3eb   :  { %v2339_v8 = vpop.permute.xlu0 %2338 }
 0x3ec   :  { %3927 = vset.pattern.permute.xlu1 %v6476_v5  ;;  %v2430_v48 = vmul.f32 %v5571_v13, %v2339_v8 }
 0x3ed   :  { %1788 = vperm.xlu1 %3927, %v5693_v58   ;;  %3950 = vset.pattern.permute.xlu0 %v6478_v22 }
 0x3ee   :  { %2213 = vperm.xlu0 %3950, %v5822_v44  }
 0x3ef   :  { %v2335_v25 = vpop.permute.xlu1 %2334 }
 0x3f1   :  { %3929 = vset.pattern.permute.xlu1 %v6478_v22 }
 0x3f2   :  { %2193 = vperm.xlu1 %3929, %v5693_v58   ;;  %3951 = vset.pattern.permute.xlu0 %v6476_v5 }
 0x3f3   :  { %1803 = vperm.xlu0 %3951, %v5839_v19  }
 0x3f4   :  { %v1953_v53 = vpop.permute.xlu1 %1952 }
 0x3f5   :  { %v2038_v34 = vmul.f32 %v5527_v6, %v1953_v53  ;;  %v2232_v53 = vmul.f32 %v5546_v23, %v2138_v39  ;;  %v2266_v39 = vadd.f32 %v2234_v0, %v2069_v43 }
 0x3f6   :  { %3930 = vset.pattern.permute.xlu1 %v6479_v49 }
 0x3f7   :  { %2390 = vperm.xlu1 %3930, %v5693_v58   ;;  %3953 = vset.pattern.permute.xlu0 %v6479_v49 }
 0x3f8   :  { %2402 = vperm.xlu0 %3953, %v5839_v19  }
 0x3f9   :  { %v2150_v32 = vpop.permute.xlu1 %2149 }
 0x3fa   :  { %v2235_v60 = vmul.f32 %v5546_v23, %v2150_v32  ;;  %v2429_v32 = vmul.f32 %v5571_v13, %v2335_v25 }
 0x3fb   :  { %3931 = vset.pattern.permute.xlu1 %v6476_v5 }
 0x3fc   :  { %1778 = vperm.xlu1 %3931, %v5707_v3   ;;  %3955 = vset.pattern.permute.xlu0 %v6493_v33 }
 0x3fd   :  { %2827 = vperm.xlu0 %3955, %v2794_v15   ;;  %v2799_v15 = vsel %vm2766_vm2, 1, %v6476_v5  ;;  %vm2790_vm2 = vcmp.gt.f32.partialorder %v5832_v28, 0.0 }
 0x3fe   :  { %v2347_v63 = vpop.permute.xlu1 %2346  ;;  %v2823_v45 = vsel %vm2790_vm2, 1, %v6476_v5 }
 0x3ff   :  { %v2432_v1 = vmul.f32 %v5571_v13, %v2347_v63 }
 0x400   :  { %3933 = vset.pattern.permute.xlu1 %v6479_v49 }
 0x401   :  { %2382 = vperm.xlu1 %3933, %v5707_v3   ;;  %2836 = vperm.xlu0 %3955, %v2797_v21   ;;  %v1873_v21 = vadd.f32 %v5535_v16, %v1835_v62  ;;  %v2067_v3 = vadd.f32 %v2035_v55, %v1870_v61  ;;  %v1871_v62 = vadd.f32 %v5535_v16, %v1833_v27 }
 0x403   :  { %v1945_v58 = vpop.permute.xlu1 %1944  ;;  %v2070_v35 = vadd.f32 %v2038_v34, %v1873_v21  ;;  %v2264_v63 = vadd.f32 %v2232_v53, %v2067_v3  ;;  %v5895_v34 = vpop.permute.xlu0 %1964  ;;  %v4028_v3 = vld [vmem:[%s6334_s0 + $0x58] sm:$0xff] }
 0x404   :  { %v2036_v56 = vmul.f32 %v5527_v6, %v1945_v58  ;;  %v4027_v58 = vld [vmem:[%s6334_s0 + $0x48] sm:$0xff]  ;;  %vm2772_vm5 = vcmp.gt.f32.partialorder %v4028_v3, 0.0 }
 0x405   :  { %3935 = vset.pattern.permute.xlu1 %v6477_v20  ;;  %2842 = vperm.xlu0 %3955, %v2799_v15   ;;  %vm2770_vm4 = vcmp.gt.f32.partialorder %v4027_v58, 0.0  ;;  %v2267_v61 = vadd.f32 %v2235_v60, %v2070_v35  ;;  %v2461_v43 = vadd.f32 %v2429_v32, %v2264_v63  ;;  %v2805_v53 = vsel %vm2772_vm5, 1, %v6476_v5 }
 0x406   :  { %2000 = vperm.xlu1 %3935, %v5726_v50   ;;  %v2068_v15 = vadd.f32 %v2036_v56, %v1871_v62  ;;  %v2803_v25 = vsel %vm2770_vm4, 1, %v6476_v5  ;;  %v2463_v56 = vadd.f32 %v2431_v10, %v2266_v39  ;;  %vm2792_vm4 = vcmp.gt.f32.partialorder %v5815_v38, 0.0 }
 0x407   :  { %v2464_v27 = vadd.f32 %v2432_v1, %v2267_v61  ;;  %v2493_v0 = vmax.f32 %v2461_v43, 0.0  ;;  %v1957_v35 = vpop.permute.xlu0 %1956  ;;  %v4030_v61 = vld [vmem:[%s6334_s0 + $0x78] sm:$0xff]  ;;  %v2825_v28 = vsel %vm2792_vm4, 1, %v6476_v5 }
 0x408   :  { %v2142_v14 = vpop.permute.xlu1 %2141  ;;  %v2495_v62 = vmax.f32 %v2463_v56, 0.0  ;;  %vm2776_vm7 = vcmp.gt.f32.partialorder %v4030_v61, 0.0  ;;  %v2039_v61 = vmul.f32 %v5527_v6, %v1957_v35 }
 0x409   :  { %v2233_v55 = vmul.f32 %v5546_v23, %v2142_v14  ;;  %2848 = vperm.xlu0 %3955, %v2801_v47   ;;  %v2496_v60 = vmax.f32 %v2464_v27, 0.0  ;;  %v4029_v47 = vld [vmem:[%s6334_s0 + $0x68] sm:$0xff]  ;;  %v2809_v63 = vsel %vm2776_vm7, 1, %v6476_v5 }
 0x40a   :  { %3937 = vset.pattern.permute.xlu1 %v6479_v49  ;;  %vm2774_vm6 = vcmp.gt.f32.partialorder %v4029_v47, 0.0 }
 0x40b   :  { %v2265_v21 = vadd.f32 %v2233_v55, %v2068_v15  ;;  %2394 = vperm.xlu1 %3937, %v5726_v50   ;;  %v2520_v58 = vpack.c.bf16 %v2496_v60, %v2495_v62  ;;  %v2807_v39 = vsel %vm2774_vm6, 1, %v6476_v5  ;;  %v2154_v14 = vpop.permute.xlu0 %2153  ;;  %v4031_v15 = vld [vmem:[%s6334_s0 + $0x88] sm:$0xff] }
 0x40c   :  { %vm2778_vm8 = vcmp.gt.f32.partialorder %v4031_v15, 0.0 }
 0x40d   :  { %v2462_v17 = vadd.f32 %v2430_v48, %v2265_v21  ;;  %2854 = vperm.xlu0 %3955, %v2803_v25   ;;  %v2811_v27 = vsel %vm2778_vm8, 1, %v6476_v5  ;;  %v4032_v48 = vld [vmem:[%s6334_s0 + $0x98] sm:$0xff] }
 0x40e   :  { %v1749_v1 = vpop.permute.xlu1 %1748  ;;  %vm2780_vm9 = vcmp.gt.f32.partialorder %v4032_v48, 0.0 }
 0x40f   :  { %3939 = vset.pattern.permute.xlu1 %v6477_v20  ;;  %v2494_v8 = vmax.f32 %v2462_v17, 0.0  ;;  %v1754_v25 = vpop.permute.xlu0 %1753  ;;  %v2813_v21 = vsel %vm2780_vm9, 1, %v6476_v5 }
 0x410   :  { %1992 = vperm.xlu1 %3939, %v5746_v59  }
 0x411   :  { %v2519_v32 = vpack.c.bf16 %v2494_v8, %v2493_v0  ;;  %2860 = vperm.xlu0 %3955, %v2805_v53   ;;  %v1839_v0 = vmul.f32 %v5519_v41, %v1754_v25  ;;  %v1838_v8 = vmul.f32 %v5519_v41, %v1749_v1  ;;  %v2041_v1 = vmul.f32 %v5527_v6, %v5895_v34 }
 0x413   :  { %v2162_v10 = vpop.permute.xlu1 %2161  ;;  %3786 = vmatprep.mubr.bf16.mxu0 %v2519_v32  ;;  %v2166_v3 = vpop.permute.xlu0 %2165 }
 0x414   :  { %3940 = vset.pattern.permute.xlu1 %v6478_v22  ;;  %3787 = vmatmul.mubr.bf16.gmra.mxu0 %v2520_v58 }
 0x415   :  { %2189 = vperm.xlu1 %3940, %v5746_v59   ;;  %2866 = vperm.xlu0 %3955, %v2807_v39   ;;  %v1877_v39 = vadd.f32 %v5535_v16, %v1839_v0 }
 0x417   :  { %v1744_v17 = vpop.permute.xlu0 %1743 }
 0x418   :  { %v2359_v55 = vpop.permute.xlu1 %2358 }
 0x419   :  { %3942 = vset.pattern.permute.xlu1 %v6476_v5  ;;  %2872 = vperm.xlu0 %3955, %v2809_v63   ;;  %v1876_v63 = vadd.f32 %v5535_v16, %v1838_v8 }
 0x41a   :  { %1808 = vperm.xlu1 %3942, %v5781_v57  }
 0x41b   :  { %v2355_v32 = vpop.permute.xlu0 %2354 }
 0x41d   :  { %v1739_v43 = vpop.permute.xlu1 %1738  ;;  %2878 = vperm.xlu0 %3955, %v2811_v27   ;;  %v1837_v27 = vmul.f32 %v5519_v41, %v1744_v17  ;;  %v2815_v17 = vsel %vm2782_vm10, 1, %v6476_v5 }
 0x41e   :  { %3944 = vset.pattern.permute.xlu1 %v6478_v22  ;;  %v1836_v53 = vmul.f32 %v5519_v41, %v1739_v43  ;;  %v2239_v43 = vmul.f32 %v5546_v23, %v2166_v3 }
 0x41f   :  { %2209 = vperm.xlu1 %3944, %v5781_v57   ;;  %v1875_v3 = vadd.f32 %v5535_v16, %v1837_v27 }
 0x420   :  { %v1874_v58 = vadd.f32 %v5535_v16, %v1836_v53  ;;  %v2238_v53 = vmul.f32 %v5546_v23, %v2162_v10  ;;  %v4033_v10 = vld [vmem:[%s6334_s0 + $0xb8] sm:$0xff] }
 0x421   :  { %2884 = vperm.xlu0 %3955, %v2813_v21   ;;  %v2073_v21 = vadd.f32 %v2041_v1, %v1876_v63  ;;  %vm2784_vm11 = vcmp.gt.f32.partialorder %v4033_v10, 0.0 }
 0x422   :  { %v2351_v56 = vpop.permute.xlu1 %2350  ;;  %v2071_v25 = vadd.f32 %v2039_v61, %v1874_v58  ;;  %v2434_v58 = vmul.f32 %v5571_v13, %v2355_v32  ;;  %v4034_v32 = vld [vmem:[%s6334_s0 + $0x8] sm:$0xff] }
 0x423   :  { %3945 = vset.pattern.permute.xlu1 %v6476_v5  ;;  %v2433_v8 = vmul.f32 %v5571_v13, %v2351_v56  ;;  %v2270_v16 = vadd.f32 %v2238_v53, %v2073_v21  ;;  %v2817_v56 = vsel %vm2784_vm11, 1, %v6476_v5  ;;  %vm2762_vm12 = vcmp.gt.f32.partialorder %v4034_v32, 0.0  ;;  %v4035_v21 = vld [vmem:[%s6334_s0 + $0x10] sm:$0xff] }
 0x424   :  { %1798 = vperm.xlu1 %3945, %v5801_v30   ;;  %vm2763_vm13 = vcmp.gt.f32.partialorder %v4035_v21, 0.0 }
 0x425   :  { %2890 = vperm.xlu0 %3955, %v2815_v17   ;;  %v2819_v17 = vsel %vm2786_vm14, 1, %v6476_v5  ;;  %vm2789_vm14 = vcmp.gt.f32.partialorder %v5786_v36, 0.0 }
 0x427   :  { %v1969_v60 = vpop.permute.xlu1 %1968 }
 0x428   :  { %3947 = vset.pattern.permute.xlu1 %v6479_v49  ;;  %v2042_v47 = vmul.f32 %v5527_v6, %v1969_v60  ;;  %v5950_v60 = vpop.permute.xlu0 %1980 }
 0x429   :  { %2398 = vperm.xlu1 %3947, %v5801_v30   ;;  %2896 = vperm.xlu0 %3955, %v2817_v56   ;;  %v6016_v56 = vld [vmem:[%s6341_s7] ss:$0 sm:$0xff] }
 0x42a   :  { %v2074_v15 = vadd.f32 %v2042_v47, %v1877_v39 }
 0x42c   :  { %v2363_v62 = vpop.permute.xlu1 %2362  ;;  %v2271_v34 = vadd.f32 %v2239_v43, %v2074_v15 }
 0x42d   :  { %3949 = vset.pattern.permute.xlu1 %v6477_v20  ;;  %v2236_v20 = vmul.f32 %v5546_v23, %v2154_v14  ;;  %v2436_v41 = vmul.f32 %v5571_v13, %v2363_v62  ;;  %v2435_v14 = vmul.f32 %v5571_v13, %v2359_v55  ;;  %v5968_v55 = vpop.permute.xlu0 %1972  ;;  %2902 = vperm.xlu0 %3955, %v2819_v17  }
 0x42e   :  { %2016 = vperm.xlu1 %3949, %v5822_v44  }
 0x42f   :  { %v2268_v0 = vadd.f32 %v2236_v20, %v2071_v25  ;;  %v2468_v62 = vadd.f32 %v2436_v41, %v2271_v34  ;;  %v2467_v61 = vadd.f32 %v2435_v14, %v2270_v16  ;;  %v2796_v34 = vsel %vm2763_vm13, 1, %v6476_v5  ;;  %v4036_v41 = vld [vmem:[%s6334_s0 + $0x20] sm:$0xff]  ;;  %v4039_v16 = vld [vmem:[%s6334_s0 + $0x50] sm:$0xff] }
 0x430   :  { %vm2765_vm15 = vcmp.gt.f32.partialorder %v4036_v41, 0.0  ;;  %vm2771_vm5 = vcmp.gt.f32.partialorder %v4039_v16, 0.0  ;;  %v6069_v16 = vld [vmem:[%s6341_s7 + $0x3] ss:$0 sm:$0xff]  ;;  %vm2787_vm13 = vcmp.gt.f32.partialorder %v5681_v31, 0.0 }
 0x431   :  { %v1961_v48 = vpop.permute.xlu1 %1960  ;;  %v2465_v39 = vadd.f32 %v2433_v8, %v2268_v0  ;;  %v2500_v15 = vmax.f32 %v2468_v62, 0.0  ;;  %v2499_v25 = vmax.f32 %v2467_v61, 0.0  ;;  %v4037_v8 = vld [vmem:[%s6334_s0 + $0x30] sm:$0xff]  ;;  %2908 = vperm.xlu0 %3955, %v2821_v29   ;;  %v4041_v61 = vld [vmem:[%s6334_s0 + $0x60] sm:$0xff] }
 0x432   :  { %2008 = vperm.xlu1 %3949, %v5839_v19   ;;  %v2040_v35 = vmul.f32 %v5527_v6, %v1961_v48  ;;  %v5974_v48 = vpop.permute.xlu0 %2169  ;;  %vm2767_vm1 = vcmp.gt.f32.partialorder %v4037_v8, 0.0  ;;  %vm2773_vm6 = vcmp.gt.f32.partialorder %v4041_v61, 0.0  ;;  %v6055_v29 = vld [vmem:[%s6341_s7 + $0x2] ss:$0 sm:$0xff]  ;;  %v4048_v61 = vld [vmem:[%s6334_s0 + $0x90] sm:$0xff] }
 0x433   :  { %v2497_v1 = vmax.f32 %v2465_v39, 0.0  ;;  %v2522_v20 = vpack.c.bf16 %v2500_v15, %v2499_v25  ;;  %v2800_v14 = vsel %vm2767_vm1, 1, %v6476_v5  ;;  %v2804_v39 = vsel %vm2771_vm5, 1, %v6476_v5  ;;  %v6029_v15 = vld [vmem:[%s6341_s7 + $0x1] ss:$0 sm:$0xff] }
 0x434   :  { %v2072_v6 = vadd.f32 %v2040_v35, %v1875_v3  ;;  %v6035_v25 = vld [vmem:[%s6342_s8] ss:$0 sm:$0xff]  ;;  %v2806_v32 = vsel %vm2773_vm6, 1, %v6476_v5  ;;  %v2045_v8 = vmul.f32 %v6029_v15, %v5950_v60  ;;  %vm2779_vm9 = vcmp.gt.f32.partialorder %v4048_v61, 0.0 }
 0x435   :  { %2914 = vperm.xlu0 %3955, %v2823_v45  }
 0x436   :  { %v2158_v47 = vpop.permute.xlu1 %2157  ;;  %3952 = vset.pattern.permute.xlu1 %v6478_v22  ;;  %v1774_v35 = vpop.permute.xlu0 %1773 }
 0x437   :  { %v2237_v42 = vmul.f32 %v5546_v23, %v2158_v47  ;;  %2205 = vperm.xlu1 %3952, %v5839_v19   ;;  %v1843_v38 = vmul.f32 %v6016_v56, %v1774_v35 }
 0x439   :  { %v2269_v22 = vadd.f32 %v2237_v42, %v2072_v6  ;;  %v4038_v6 = vld [vmem:[%s6334_s0 + $0x40] sm:$0xff]  ;;  %2920 = vperm.xlu0 %3955, %v2825_v28  }
 0x43a   :  { %v2182_v0 = vpop.permute.xlu0 %2181  ;;  %vm2769_vm3 = vcmp.gt.f32.partialorder %v4038_v6, 0.0  ;;  %v2240_v6 = vmul.f32 %v6055_v29, %v5974_v48 }
 0x43b   :  { %v2466_v23 = vadd.f32 %v2434_v58, %v2269_v22  ;;  %v5970_v63 = vpop.permute.xlu1 %1768  ;;  %3954 = vset.pattern.permute.xlu1 %v6479_v49  ;;  %v2795_v49 = vsel %vm2762_vm12, 1, %v6476_v5  ;;  %v2802_v10 = vsel %vm2769_vm3, 1, %v6476_v5  ;;  %vm2785_vm12 = vcmp.gt.f32.partialorder %v5698_v37, 0.0 }
 0x43c   :  { %2406 = vperm.xlu1 %3954, %v5781_v57   ;;  %vm3280_vm3 = vcmask 27648  }
 0x43d   :  { %v2498_v27 = vmax.f32 %v2466_v23, 0.0  ;;  %v1842_v23 = vmul.f32 %v6016_v56, %v5970_v63  ;;  %v1881_v63 = vadd.f32 %v6035_v25, %v1843_v38 }
 0x43e   :  { %v1764_v42 = vpop.permute.xlu0 %1763 }
 0x43f   :  { %v2521_v13 = vpack.c.bf16 %v2498_v27, %v2497_v1  ;;  %v1880_v35 = vadd.f32 %v6035_v25, %v1842_v23  ;;  %v1841_v41 = vmul.f32 %v6016_v56, %v1764_v42 }
 0x440   :  { %v5979_v43 = vpop.permute.xlu1 %2177  ;;  %2410 = vperm.xlu1 %3954, %v5822_v44  }
 0x441   :  { %3790 = vmatprep.mubr.bf16.mxu0 %v2521_v13  ;;  %v2077_v42 = vadd.f32 %v2045_v8, %v1880_v35  ;;  %v2242_v60 = vmul.f32 %v6055_v29, %v5979_v43  ;;  %v1879_v28 = vadd.f32 %v6035_v25, %v1841_v41 }
 0x442   :  { %3791 = vmatmul.mubr.bf16.gmra.mxu0 %v2522_v20  ;;  %v2371_v22 = vpop.permute.xlu0 %2370  ;;  %v4044_v20 = vld [vmem:[%s6334_s0 + $0x70] sm:$0xff] }
 0x443   :  { %vm2775_vm7 = vcmp.gt.f32.partialorder %v4044_v20, 0.0  ;;  %v2812_v20 = vsel %vm2779_vm9, 1, %v6476_v5 }
 0x444   :  { %3956 = vset.pattern.permute.xlu1 %v6493_v33  ;;  %v2798_v33 = vsel %vm2765_vm15, 1, %v6476_v5  ;;  %vm2791_vm15 = vcmp.gt.f32.partialorder %v5764_v2, 0.0 }
 0x445   :  { %v5987_v53 = vpop.permute.xlu1 %2374  ;;  %2830 = vperm.xlu1 %3956, %v2795_v49   ;;  %v2043_v49 = vmul.f32 %v6029_v15, %v5968_v55  ;;  %v2243_v55 = vmul.f32 %v6055_v29, %v2182_v0 }
 0x446   :  { %v6045_v21 = vpop.permute.xlu0 %1996  ;;  %v2439_v43 = vmul.f32 %v6069_v16, %v5987_v53  ;;  %v4049_v53 = vld [vmem:[%s6334_s0 + $0xa0] sm:$0xff] }
 0x447   :  { %vm2781_vm10 = vcmp.gt.f32.partialorder %v4049_v53, 0.0 }
 0x448   :  { %v2814_v8 = vsel %vm2781_vm10, 1, %v6476_v5 }
 0x449   :  { %2833 = vperm.xlu1 %3956, %v2796_v34  }
 0x44a   :  { %v1759_v3 = vpop.permute.xlu1 %1758 }
 0x44b   :  { %v1840_v58 = vmul.f32 %v6016_v56, %v1759_v3 }
 0x44d   :  { %2839 = vperm.xlu1 %3956, %v2798_v33   ;;  %v1878_v13 = vadd.f32 %v6035_v25, %v1840_v58  ;;  %v2808_v33 = vsel %vm2775_vm7, 1, %v6476_v5 }
 0x44f   :  { %v2367_v47 = vpop.permute.xlu1 %2366  ;;  %v2075_v17 = vadd.f32 %v2043_v49, %v1878_v13 }
 0x450   :  { %v2437_v48 = vmul.f32 %v6069_v16, %v2367_v47  ;;  %v2438_v47 = vmul.f32 %v6069_v16, %v2371_v22 }
 0x451   :  { %2845 = vperm.xlu1 %3956, %v2800_v14   ;;  %v4046_v14 = vld [vmem:[%s6334_s0 + $0x80] sm:$0xff] }
 0x452   :  { %vm2777_vm8 = vcmp.gt.f32.partialorder %v4046_v14, 0.0 }
 0x453   :  { %v2810_v58 = vsel %vm2777_vm8, 1, %v6476_v5 }
 0x454   :  { %v1985_v62 = vpop.permute.xlu1 %1984 }
 0x455   :  { %2851 = vperm.xlu1 %3956, %v2802_v10   ;;  %v2046_v1 = vmul.f32 %v6029_v15, %v1985_v62  ;;  %v2272_v62 = vadd.f32 %v2240_v6, %v2075_v17 }
 0x457   :  { %v2078_v34 = vadd.f32 %v2046_v1, %v1881_v63 }
 0x459   :  { %v2379_v27 = vpop.permute.xlu1 %2378  ;;  %2857 = vperm.xlu1 %3956, %v2804_v39   ;;  %v2275_v10 = vadd.f32 %v2243_v55, %v2078_v34  ;;  %v6075_v39 = vpop.permute.xlu0 %1988  ;;  %v4050_v55 = vld [vmem:[%s6334_s0 + $0xb0] sm:$0xff] }
 0x45a   :  { %v2440_v0 = vmul.f32 %v6069_v16, %v2379_v27  ;;  %v2274_v27 = vadd.f32 %v2242_v60, %v2077_v42  ;;  %vm2783_vm11 = vcmp.gt.f32.partialorder %v4050_v55, 0.0 }
 0x45b   :  { %v2816_v42 = vsel %vm2783_vm11, 1, %v6476_v5 }
 0x45c   :  { %v2472_v13 = vadd.f32 %v2440_v0, %v2275_v10  ;;  %v2471_v49 = vadd.f32 %v2439_v43, %v2274_v27  ;;  %v2818_v0 = vsel %vm2785_vm12, 1, %v6476_v5 }
 0x45d   :  { %2863 = vperm.xlu1 %3956, %v2806_v32   ;;  %v2469_v32 = vadd.f32 %v2437_v48, %v2272_v62  ;;  %v2186_v41 = vpop.permute.xlu0 %2185  ;;  %v2820_v62 = vsel %vm2787_vm13, 1, %v6476_v5 }
 0x45e   :  { %v1977_v3 = vpop.permute.xlu1 %1976  ;;  %v2504_v17 = vmax.f32 %v2472_v13, 0.0  ;;  %v2503_v22 = vmax.f32 %v2471_v49, 0.0 }
 0x45f   :  { %v2044_v45 = vmul.f32 %v6029_v15, %v1977_v3  ;;  %v2501_v3 = vmax.f32 %v2469_v32, 0.0 }
 0x461   :  { %2869 = vperm.xlu1 %3956, %v2808_v33   ;;  %v2076_v23 = vadd.f32 %v2044_v45, %v1879_v28  ;;  %v2524_v45 = vpack.c.bf16 %v2504_v17, %v2503_v22  ;;  %v1794_v60 = vpop.permute.xlu0 %1793 }
 0x463   :  { %v2174_v38 = vpop.permute.xlu1 %2173 }
 0x464   :  { %v2241_v1 = vmul.f32 %v6055_v29, %v2174_v38  ;;  %v2824_v38 = vsel %vm2791_vm15, 1, %v6476_v5 }
 0x465   :  { %2875 = vperm.xlu1 %3956, %v2810_v58   ;;  %v2198_v28 = vpop.permute.xlu0 %2197  ;;  %v2822_v58 = vsel %vm2789_vm14, 1, %v6476_v5  ;;  %v2047_v5 = vmul.f32 %v6029_v15, %v6075_v39 }
 0x466   :  { %v2273_v63 = vadd.f32 %v2241_v1, %v2076_v23  ;;  %v1847_v1 = vmul.f32 %v6016_v56, %v1794_v60  ;;  %v2247_v17 = vmul.f32 %v6055_v29, %v2198_v28 }
 0x468   :  { %v2470_v35 = vadd.f32 %v2438_v47, %v2273_v63  ;;  %v1789_v34 = vpop.permute.xlu1 %1788  ;;  %v1885_v32 = vadd.f32 %v6035_v25, %v1847_v1 }
 0x469   :  { %2881 = vperm.xlu1 %3956, %v2812_v20   ;;  %v1784_v43 = vpop.permute.xlu0 %1783  ;;  %v1846_v27 = vmul.f32 %v6016_v56, %v1789_v34  ;;  %v2049_v34 = vmul.f32 %v6029_v15, %v6045_v21 }
 0x46a   :  { %v2502_v33 = vmax.f32 %v2470_v35, 0.0  ;;  %v1845_v49 = vmul.f32 %v6016_v56, %v1784_v43 }
 0x46b   :  { %v1884_v63 = vadd.f32 %v6035_v25, %v1846_v27 }
 0x46c   :  { %v2523_v14 = vpack.c.bf16 %v2502_v33, %v2501_v3  ;;  %v2244_v3 = vmul.f32 %v6055_v29, %v2186_v41 }
 0x46d   :  { %v2194_v6 = vpop.permute.xlu1 %2193  ;;  %2887 = vperm.xlu1 %3956, %v2814_v8   ;;  %v2387_v61 = vpop.permute.xlu0 %2386  ;;  %v2081_v22 = vadd.f32 %v2049_v34, %v1884_v63 }
 0x46e   :  { %3794 = vmatprep.mubr.bf16.mxu0 %v2523_v14  ;;  %v2246_v39 = vmul.f32 %v6055_v29, %v2194_v6 }
 0x46f   :  { %3795 = vmatmul.mubr.bf16.gmra.mxu0 %v2524_v45  ;;  %v1883_v45 = vadd.f32 %v6035_v25, %v1845_v49  ;;  %v6125_v49 = vpop.f32.mrf.mxu0 }
 0x471   :  { %2893 = vperm.xlu1 %3956, %v2816_v42   ;;  %v6105_v47 = vpop.permute.xlu0 %2012  ;;  %v2634_v34 = vpop.f32.mrf.mxu0 }
 0x472   :  { %v2391_v10 = vpop.permute.xlu1 %2390 }
 0x473   :  { %v2443_v21 = vmul.f32 %v6069_v16, %v2391_v10 }
 0x475   :  { %2899 = vperm.xlu1 %3956, %v2818_v0   ;;  %v2005_v33 = vpop.permute.xlu0 %2004 }
 0x477   :  { %v1779_v48 = vpop.permute.xlu1 %1778 }
 0x478   :  { %v1844_v31 = vmul.f32 %v6016_v56, %v1779_v48 }
 0x479   :  { %2905 = vperm.xlu1 %3956, %v2820_v62   ;;  %v2278_v62 = vadd.f32 %v2246_v39, %v2081_v22  ;;  %v2202_v43 = vpop.permute.xlu0 %2201  ;;  %v2051_v22 = vmul.f32 %v6029_v15, %v2005_v33 }
 0x47a   :  { %v1882_v2 = vadd.f32 %v6035_v25, %v1844_v31 }
 0x47c   :  { %v2383_v37 = vpop.permute.xlu1 %2382  ;;  %v2079_v53 = vadd.f32 %v2047_v5, %v1882_v2 }
 0x47d   :  { %2911 = vperm.xlu1 %3956, %v2822_v58   ;;  %v2441_v60 = vmul.f32 %v6069_v16, %v2383_v37  ;;  %v2442_v58 = vmul.f32 %v6069_v16, %v2387_v61  ;;  %v1814_v2 = vpop.permute.xlu0 %1813 }
 0x47e   :  { %v2276_v42 = vadd.f32 %v2244_v3, %v2079_v53 }
 0x480   :  { %v2473_v6 = vadd.f32 %v2441_v60, %v2276_v42 }
 0x481   :  { %v2001_v23 = vpop.permute.xlu1 %2000  ;;  %2917 = vperm.xlu1 %3956, %v2824_v38   ;;  %v2214_v63 = vpop.permute.xlu0 %2213 }
 0x482   :  { %v2050_v36 = vmul.f32 %v6029_v15, %v2001_v23  ;;  %v2475_v23 = vadd.f32 %v2443_v21, %v2278_v62  ;;  %v2248_v21 = vmul.f32 %v6055_v29, %v2202_v43  ;;  %v2053_v43 = vmul.f32 %v6029_v15, %v6105_v47 }
 0x484   :  { %v2082_v20 = vadd.f32 %v2050_v36, %v1885_v32  ;;  %v2505_v36 = vmax.f32 %v2473_v6, 0.0  ;;  %v2507_v37 = vmax.f32 %v2475_v23, 0.0 }
 0x485   :  { %v1804_v53 = vpop.permute.xlu0 %1803 }
 0x486   :  { %v2395_v13 = vpop.permute.xlu1 %2394  ;;  %v2279_v55 = vadd.f32 %v2247_v17, %v2082_v20 }
 0x487   :  { %v2444_v14 = vmul.f32 %v6069_v16, %v2395_v13 }
 0x489   :  { %v2476_v48 = vadd.f32 %v2444_v14, %v2279_v55  ;;  %v2403_v39 = vpop.permute.xlu0 %2402  ;;  %v1849_v55 = vmul.f32 %v6016_v56, %v1804_v53 }
 0x48b   :  { %v1993_v35 = vpop.permute.xlu1 %1992  ;;  %v2508_v27 = vmax.f32 %v2476_v48, 0.0 }
 0x48c   :  { %v2048_v8 = vmul.f32 %v6029_v15, %v1993_v35 }
 0x48d   :  { %v2526_v5 = vpack.c.bf16 %v2508_v27, %v2507_v37  ;;  %v2446_v27 = vmul.f32 %v6069_v16, %v2403_v39 }
 0x48e   :  { %v2080_v28 = vadd.f32 %v2048_v8, %v1883_v45  ;;  %v6129_v8 = vpop.f32.mrf.mxu0 }
 0x490   :  { %v2190_v0 = vpop.permute.xlu1 %2189  ;;  %v2637_v60 = vpop.f32.mrf.mxu0 }
 0x491   :  { %v2245_v41 = vmul.f32 %v6055_v29, %v2190_v0 }
 0x492   :  { %v6137_v62 = vpop.f32.mrf.mxu0 }
 0x493   :  { %v2277_v38 = vadd.f32 %v2245_v41, %v2080_v28  ;;  %v1887_v28 = vadd.f32 %v6035_v25, %v1849_v55  ;;  %v2828_v41 = vpop.permute.xlu0 %2827 }
 0x494   :  { %vm2922_vm0 = vcmp.eq.s32.totalorder %v2828_v41, 1 }
 0x495   :  { %v2474_v31 = vadd.f32 %v2442_v58, %v2277_v38  ;;  %v1809_v1 = vpop.permute.xlu1 %1808  ;;  %v1851_v58 = vmul.f32 %v6016_v56, %v1814_v2 }
 0x496   :  { %v1850_v42 = vmul.f32 %v6016_v56, %v1809_v1 }
 0x497   :  { %v2506_v13 = vmax.f32 %v2474_v31, 0.0  ;;  %v2837_v2 = vpop.permute.xlu0 %2836 }
 0x498   :  { %v1888_v6 = vadd.f32 %v6035_v25, %v1850_v42  ;;  %vm2925_vm2 = vcmp.eq.s32.totalorder %v2837_v2, 1  ;;  %v3466_v2 = vpack.c.bf16 %v5280_v4, %v5280_v4 }
 0x499   :  { %v2525_v10 = vpack.c.bf16 %v2506_v13, %v2505_v36  ;;  %v2650_v36 = vpop.f32.mrf.mxu0 }
 0x49a   :  { %v2210_v32 = vpop.permute.xlu1 %2209 }
 0x49b   :  { %3798 = vmatprep.mubr.bf16.mxu0 %v2525_v10  ;;  %v1889_v10 = vadd.f32 %v6035_v25, %v1851_v58 }
 0x49c   :  { %3799 = vmatmul.mubr.bf16.gmra.mxu0 %v2526_v5  ;;  %v2085_v5 = vadd.f32 %v2053_v43, %v1888_v6 }
 0x49f   :  { %v1799_v20 = vpop.permute.xlu1 %1798 }
 0x4a0   :  { %v1848_v35 = vmul.f32 %v6016_v56, %v1799_v20  ;;  %v2250_v56 = vmul.f32 %v6055_v29, %v2210_v32  ;;  %v2843_v32 = vpop.permute.xlu0 %2842 }
 0x4a1   :  { %vm2927_vm5 = vcmp.eq.s32.totalorder %v2843_v32, 1 }
 0x4a2   :  { %v1886_v17 = vadd.f32 %v6035_v25, %v1848_v35 }
 0x4a4   :  { %v2399_v61 = vpop.permute.xlu1 %2398  ;;  %v2083_v14 = vadd.f32 %v2051_v22, %v1886_v17  ;;  %v6150_v17 = vpop.f32.mrf.mxu0  ;;  %v2282_v22 = vadd.f32 %v2250_v56, %v2085_v5  ;;  %v3465_v56 = vpack.c.bf16 %v5256_v54, %v5256_v54 }
 0x4a5   :  { %v2445_v33 = vmul.f32 %v6069_v16, %v2399_v61 }
 0x4a6   :  { %v2280_v48 = vadd.f32 %v2248_v21, %v2083_v14  ;;  %v2653_v42 = vpop.f32.mrf.mxu0 }
 0x4a8   :  { %v2477_v13 = vadd.f32 %v2445_v33, %v2280_v48 }
 0x4a9   :  { %v2017_v3 = vpop.permute.xlu1 %2016 }
 0x4aa   :  { %v2054_v1 = vmul.f32 %v6029_v15, %v2017_v3  ;;  %v2509_v47 = vmax.f32 %v2477_v13, 0.0  ;;  %v2251_v3 = vmul.f32 %v6055_v29, %v2214_v63  ;;  %v6164_v63 = vpop.f32.mrf.mxu0 }
 0x4ac   :  { %v2086_v53 = vadd.f32 %v2054_v1, %v1889_v10  ;;  %v2666_v43 = vpop.f32.mrf.mxu0 }
 0x4ad   :  { %v2009_v45 = vpop.permute.xlu1 %2008 }
 0x4ae   :  { %v2052_v0 = vmul.f32 %v6029_v15, %v2009_v45  ;;  %v2283_v25 = vadd.f32 %v2251_v3, %v2086_v53 }
 0x4b0   :  { %v2084_v23 = vadd.f32 %v2052_v0, %v1887_v28  ;;  %v6157_v0 = vld [vmem:[%s6344_s10] ss:$0 sm:$0xff]  ;;  %s4078_s10 = smov [#allocation2]  }
 0x4b1   :  { %v2635_v28 = vadd.f32 %v6157_v0, %v2634_v34  ;;  %v2643_v1 = vadd.f32 %v6125_v49, %v6157_v0  ;;  %v2646_v34 = vadd.f32 %v6129_v8, %v6157_v0  ;;  %v2654_v10 = vadd.f32 %v6157_v0, %v2653_v42 }
 0x4b2   :  { %v2206_v38 = vpop.permute.xlu1 %2205  ;;  %v2659_v54 = vadd.f32 %v6137_v62, %v6157_v0  ;;  %v2662_v4 = vadd.f32 %v6150_v17, %v6157_v0 }
 0x4b3   :  { %v2249_v31 = vmul.f32 %v6055_v29, %v2206_v38  ;;  %v6162_v29 = vld [vmem:[%s6345_s11] ss:$0 sm:$0xff]  ;;  %s3318_s11 = sshll.u32 %s4078_s10, 4  ;;  %s3319_s11 = int_to_ptr.vmem [resolvable:$true] %s3318_s11 }
 0x4b4   :  { %v2960_v6 = vsel %vm2922_vm0, %v2635_v28, %v6162_v29  ;;  %v2965_v53 = vsel %vm2927_vm5, %v2654_v10, %v6162_v29  ;;  %s4051_s18 = scalar_lea.vmem %s3319_s11, 2048  ;;  %p4056_p1 = scmp.lt.s32.totalorder %s3319_s11, %s3319_s11 }
 0x4b5   :  { %v2281_v37 = vadd.f32 %v2249_v31, %v2084_v23  ;;  %v2849_v31 = vpop.permute.xlu0 %2848  ;;  %p4052_p0 = scmp.ne.s32.totalorder %s3319_s11, %s4051_s18  ;;  %p4057_p2 = scmp.lt.s32.totalorder %s4051_s18, %s4051_s18 }
 0x4b6   :  { %vm2929_vm7 = vcmp.eq.s32.totalorder %v2849_v31, 1 }
 0x4b7   :  { %v2478_v20 = vadd.f32 %v2446_v27, %v2281_v37  ;;  %v2407_v61 = vpop.permute.xlu1 %2406  ;;  %v3464_v27 = vpack.c.bf16 %v5303_v11, %v5303_v11  ;;  %v2963_v37 = vsel %vm2925_vm2, %v2646_v34, %v6162_v29  ;;  %v2651_v11 = vadd.f32 %v6157_v0, %v2650_v36  ;;  %v6497_v34 = vld [vmem:[#allocation6_spill] sm:$0xff]  ;;  %p4058_p3 = por %p4057_p2, %p4056_p1 }
 0x4b8   :  { %v2447_v35 = vmul.f32 %v6069_v16, %v2407_v61 }
 0x4b9   :  { %v2510_v15 = vmax.f32 %v2478_v20, 0.0  ;;  %v2855_v8 = vpop.permute.xlu0 %2854  ;;  %p4059_p4 = pnand %p4058_p3, %p4052_p0 }
 0x4ba   :  { %v2479_v14 = vadd.f32 %v2447_v35, %v2282_v22  ;;  %vm2931_vm9 = vcmp.eq.s32.totalorder %v2855_v8, 1 }
 0x4bb   :  { %v2411_v39 = vpop.permute.xlu1 %2410  ;;  %v2527_v55 = vpack.c.bf16 %v2510_v15, %v2509_v47  ;;  %v3467_v47 = vpack.c.bf16 %v5325_v24, %v5325_v24  ;;  %v3468_v15 = vpack.c.bf16 %v5352_v46, %v5352_v46  ;;  %v2667_v24 = vadd.f32 %v6157_v0, %v2666_v43 }
 0x4bc   :  { %v2448_v45 = vmul.f32 %v6069_v16, %v2411_v39  ;;  %v2638_v16 = vadd.f32 %v6157_v0, %v2637_v60  ;;  %v2511_v48 = vmax.f32 %v2479_v14, 0.0  ;;  %v3463_v60 = vpack.c.bf16 %v5259_v12, %v5259_v12  ;;  %v3785_v12 = vpop.f32.mrf.mxu0 }
 0x4bd   :  { %3802 = vmatprep.mubr.bf16.mxu0 %v2527_v55  ;;  %v2861_v22 = vpop.permute.xlu0 %2860  ;;  %v2967_v39 = vsel %vm2929_vm7, %v2662_v4, %v6162_v29  ;;  %v3469_v46 = vpack.c.bf16 %v5316_v26, %v5316_v26  ;;  %v3470_v14 = vpack.c.bf16 %v5334_v7, %v5334_v7  ;;  %v2678_v32 = vadd.f32 %v3785_v12, %v6157_v0  ;;  %v6494_v7 = vld [vmem:[#allocation14_spill] sm:$0xff]  ;;  %v6499_v4 = vld [vmem:[#allocation8_spill] sm:$0xff] }
 0x4be   :  { %v2480_v21 = vadd.f32 %v2448_v45, %v2283_v25  ;;  %v2669_v35 = vpop.f32.mrf.mxu0  ;;  %vm2933_vm11 = vcmp.eq.s32.totalorder %v2861_v22, 1  ;;  %v2675_v26 = vadd.f32 %v6164_v63, %v6157_v0 }
 0x4bf   :  { %v2670_v55 = vadd.f32 %v6157_v0, %v2669_v35 }
 0x4c0   :  { %v2512_v33 = vmax.f32 %v2480_v21, 0.0  ;;  %v2831_v58 = vpop.permute.xlu1 %2830 }
 0x4c1   :  { %vm2923_vm1 = vcmp.eq.s32.totalorder %v2831_v58, 1  ;;  %v2867_v45 = vpop.permute.xlu0 %2866  ;;  %v2969_v21 = vsel %vm2931_vm9, %v2670_v55, %v6162_v29 }
 0x4c2   :  { %v2961_v38 = vsel %vm2923_vm1, %v2638_v16, %v6162_v29  ;;  %v2528_v23 = vpack.c.bf16 %v2512_v33, %v2511_v48  ;;  %v3471_v16 = vpack.c.bf16 %v6494_v7, %v6494_v7  ;;  %v6495_v48 = vld [vmem:[#allocation7_spill] sm:$0xff]  ;;  %vm2935_vm13 = vcmp.eq.s32.totalorder %v2867_v45, 1 }
 0x4c3   :  { %v3498_v41 = vpack.c.bf16 %v2961_v38, %v2960_v6  ;;  %v3472_v33 = vpack.c.bf16 %v6495_v48, %v6495_v48  ;;  %v2971_v38 = vsel %vm2933_vm11, %v2678_v32, %v6162_v29  ;;  %v6500_v48 = vld [vmem:[#allocation16_spill] sm:$0xff] }
 0x4c4   :  { %v2834_v13 = vpop.permute.xlu1 %2833  ;;  %3803 = vmatmul.mubr.bf16.gmra.mxu0 %v2528_v23 }
 0x4c5   :  { %3499 = vst [vmem:[#allocation2] sm:$0xff] %v3498_v41   ;;  %vm2924_vm4 = vcmp.eq.s32.totalorder %v2834_v13, 1  ;;  %v2873_v43 = vpop.permute.xlu0 %2872  ;;  %v6496_v41 = vld [vmem:[#allocation5_spill] sm:$0xff] }
 0x4c6   :  { %3281 = vst.msk [vmem:[#allocation2] sm:$0xf] %vm3280_vm3, %v3463_v60  ;;  %3282 = vst.msk [vmem:[#allocation2 + $0x4] sm:$0xf] %vm3280_vm3, %v3464_v27  ;;  %v2962_v49 = vsel %vm2924_vm4, %v2643_v1, %v6162_v29  ;;  %v3473_v1 = vpack.c.bf16 %v6496_v41, %v6496_v41  ;;  %v3474_v60 = vpack.c.bf16 %v6497_v34, %v6497_v34  ;;  %vm2937_vm15 = vcmp.eq.s32.totalorder %v2873_v43, 1 }
 0x4c7   :  { %v3503_v5 = vpack.c.bf16 %v2963_v37, %v2962_v49 }
 0x4c8   :  { %v2840_v20 = vpop.permute.xlu1 %2839 }
 0x4c9   :  { %3575 = vst [vmem:[#allocation2 + $0x8] sm:$0xff] %v3503_v5   ;;  %vm2926_vm6 = vcmp.eq.s32.totalorder %v2840_v20, 1  ;;  %v2879_v22 = vpop.permute.xlu0 %2878 }
 0x4ca   :  { %3283 = vst.msk [vmem:[#allocation2 + $0x8] sm:$0xf] %vm3280_vm3, %v3465_v56  ;;  %3284 = vst.msk [vmem:[#allocation2 + $0xc] sm:$0xf] %vm3280_vm3, %v3466_v2  ;;  %v2964_v61 = vsel %vm2926_vm6, %v2651_v11, %v6162_v29  ;;  %vm2939_vm5 = vcmp.eq.s32.totalorder %v2879_v22, 1 }
 0x4cb   :  { %v3508_v36 = vpack.c.bf16 %v2965_v53, %v2964_v61  ;;  %v6498_v53 = vld [vmem:[#allocation34_spill] sm:$0xff] }
 0x4cc   :  { %v2846_v3 = vpop.permute.xlu1 %2845  ;;  %v3475_v35 = vpack.c.bf16 %v6498_v53, %v6498_v53 }
 0x4cd   :  { %3576 = vst [vmem:[#allocation2 + $0x10] sm:$0xff] %v3508_v36   ;;  %vm2928_vm8 = vcmp.eq.s32.totalorder %v2846_v3, 1  ;;  %v3476_v36 = vpack.c.bf16 %v5485_v18, %v5485_v18  ;;  %v2885_v55 = vpop.permute.xlu0 %2884 }
 0x4ce   :  { %3285 = vst.msk [vmem:[#allocation2 + $0x10] sm:$0xf] %vm3280_vm3, %v3467_v47  ;;  %3286 = vst.msk [vmem:[#allocation2 + $0x14] sm:$0xf] %vm3280_vm3, %v3468_v15  ;;  %v2966_v62 = vsel %vm2928_vm8, %v2659_v54, %v6162_v29  ;;  %v3477_v47 = vpack.c.bf16 %v6499_v4, %v6499_v4  ;;  %v3478_v15 = vpack.c.bf16 %v5478_v9, %v5478_v9  ;;  %vm2941_vm2 = vcmp.eq.s32.totalorder %v2885_v55, 1 }
 0x4cf   :  { %v3513_v17 = vpack.c.bf16 %v2967_v39, %v2966_v62 }
 0x4d0   :  { %v2852_v25 = vpop.permute.xlu1 %2851 }
 0x4d1   :  { %3577 = vst [vmem:[#allocation2 + $0x18] sm:$0xff] %v3513_v17   ;;  %vm2930_vm10 = vcmp.eq.s32.totalorder %v2852_v25, 1 }
 0x4d2   :  { %3287 = vst.msk [vmem:[#allocation2 + $0x18] sm:$0xf] %vm3280_vm3, %v3469_v46  ;;  %3288 = vst.msk [vmem:[#allocation2 + $0x1c] sm:$0xf] %vm3280_vm3, %v3470_v14  ;;  %v2968_v42 = vsel %vm2930_vm10, %v2667_v24, %v6162_v29 }
 0x4d3   :  { %v3518_v28 = vpack.c.bf16 %v2969_v21, %v2968_v42 }
 0x4d4   :  { %v2858_v58 = vpop.permute.xlu1 %2857  ;;  %v3788_v6 = vpop.f32.mrf.mxu0 }
 0x4d5   :  { %3578 = vst [vmem:[#allocation2 + $0x20] sm:$0xff] %v3518_v28   ;;  %vm2932_vm12 = vcmp.eq.s32.totalorder %v2858_v58, 1  ;;  %v2691_v12 = vadd.f32 %v3788_v6, %v6157_v0  ;;  %v3481_v28 = vpack.c.bf16 %v5504_v40, %v5504_v40  ;;  %v6501_v58 = vld [vmem:[#allocation49_spill] sm:$0xff] }
 0x4d6   :  { %3289 = vst.msk [vmem:[#allocation2 + $0x20] sm:$0xf] %vm3280_vm3, %v3471_v16  ;;  %3290 = vst.msk [vmem:[#allocation2 + $0x24] sm:$0xf] %vm3280_vm3, %v3472_v33  ;;  %v2970_v23 = vsel %vm2932_vm12, %v2675_v26, %v6162_v29  ;;  %v2682_v31 = vpop.f32.mrf.mxu0  ;;  %v3482_v26 = vpack.c.bf16 %v5553_v52, %v5553_v52  ;;  %v3479_v33 = vpack.c.bf16 %v6500_v48, %v6500_v48  ;;  %v2891_v52 = vpop.permute.xlu0 %2890 }
 0x4d7   :  { %v3523_v63 = vpack.c.bf16 %v2971_v38, %v2970_v23  ;;  %v2683_v37 = vadd.f32 %v6157_v0, %v2682_v31  ;;  %v3480_v6 = vpack.c.bf16 %v6501_v58, %v6501_v58  ;;  %vm2943_vm9 = vcmp.eq.s32.totalorder %v2891_v52, 1 }
 0x4d8   :  { %v2864_v27 = vpop.permute.xlu1 %2863  ;;  %v3789_v13 = vpop.f32.mrf.mxu0 }
 0x4d9   :  { %3579 = vst [vmem:[#allocation2 + $0x28] sm:$0xff] %v3523_v63   ;;  %vm2934_vm14 = vcmp.eq.s32.totalorder %v2864_v27, 1  ;;  %v2694_v10 = vadd.f32 %v3789_v13, %v6157_v0 }
 0x4da   :  { %3291 = vst.msk [vmem:[#allocation2 + $0x28] sm:$0xf] %vm3280_vm3, %v3473_v1  ;;  %3292 = vst.msk [vmem:[#allocation2 + $0x2c] sm:$0xf] %vm3280_vm3, %v3474_v60  ;;  %v2685_v49 = vpop.f32.mrf.mxu0  ;;  %v2972_v11 = vsel %vm2934_vm14, %v2683_v37, %v6162_v29  ;;  %v2897_v31 = vpop.permute.xlu0 %2896 }
 0x4db   :  { %v2686_v8 = vadd.f32 %v6157_v0, %v2685_v49  ;;  %v2975_v2 = vsel %vm2937_vm15, %v2694_v10, %v6162_v29  ;;  %vm2945_vm7 = vcmp.eq.s32.totalorder %v2897_v31, 1 }
 0x4dc   :  { %v2870_v5 = vpop.permute.xlu1 %2869 }
 0x4dd   :  { %v2973_v56 = vsel %vm2935_vm13, %v2686_v8, %v6162_v29  ;;  %vm2936_vm0 = vcmp.eq.s32.totalorder %v2870_v5, 1  ;;  %v6502_v8 = vld [vmem:[#allocation32_spill] sm:$0xff]  ;;  %v3486_v5 = vpack.c.bf16 %v5628_v51, %v5628_v51 }
 0x4de   :  { %v3528_v20 = vpack.c.bf16 %v2973_v56, %v2972_v11  ;;  %v2974_v61 = vsel %vm2936_vm0, %v2691_v12, %v6162_v29  ;;  %v3485_v12 = vpack.c.bf16 %v6502_v8, %v6502_v8 }
 0x4df   :  { %v3533_v54 = vpack.c.bf16 %v2975_v2, %v2974_v61  ;;  %v6503_v2 = vld [vmem:[#allocation50_spill] sm:$0xff]  ;;  %v6504_v61 = vld [vmem:[#allocation15_spill] sm:$0xff] }
 0x4e0   :  { %3580 = vst [vmem:[#allocation2 + $0x30] sm:$0xff] %v3528_v20   ;;  %v2876_v3 = vpop.permute.xlu1 %2875  ;;  %v3483_v20 = vpack.c.bf16 %v6503_v2, %v6503_v2  ;;  %v3484_v53 = vpack.c.bf16 %v6504_v61, %v6504_v61 }
 0x4e1   :  { %3293 = vst.msk [vmem:[#allocation2 + $0x30] sm:$0xf] %vm3280_vm3, %v3475_v35  ;;  %3294 = vst.msk [vmem:[#allocation2 + $0x34] sm:$0xf] %vm3280_vm3, %v3476_v36  ;;  %vm2938_vm4 = vcmp.eq.s32.totalorder %v2876_v3, 1  ;;  %v2903_v35 = vpop.permute.xlu0 %2902 }
 0x4e2   :  { %3581 = vst [vmem:[#allocation2 + $0x38] sm:$0xff] %v3533_v54   ;;  %vm2947_vm13 = vcmp.eq.s32.totalorder %v2903_v35, 1 }
 0x4e3   :  { %3295 = vst.msk [vmem:[#allocation2 + $0x38] sm:$0xf] %vm3280_vm3, %v3477_v47  ;;  %3296 = vst.msk [vmem:[#allocation2 + $0x3c] sm:$0xf] %vm3280_vm3, %v3478_v15 }
 0x4e4   :  { %v2882_v39 = vpop.permute.xlu1 %2881 }
 0x4e5   :  { %vm2940_vm1 = vcmp.eq.s32.totalorder %v2882_v39, 1  ;;  %v2909_v3 = vpop.permute.xlu0 %2908 }
 0x4e6   :  { %vm2949_vm11 = vcmp.eq.s32.totalorder %v2909_v3, 1 }
 0x4e8   :  { %v2888_v40 = vpop.permute.xlu1 %2887 }
 0x4e9   :  { %vm2942_vm8 = vcmp.eq.s32.totalorder %v2888_v40, 1 }
 0x4ec   :  { %v2894_v23 = vpop.permute.xlu1 %2893 }
 0x4ed   :  { %vm2944_vm6 = vcmp.eq.s32.totalorder %v2894_v23, 1 }
 0x4f0   :  { %v2900_v51 = vpop.permute.xlu1 %2899 }
 0x4f1   :  { %vm2946_vm12 = vcmp.eq.s32.totalorder %v2900_v51, 1 }
 0x4f4   :  { %v2906_v15 = vpop.permute.xlu1 %2905 }
 0x4f5   :  { %vm2948_vm10 = vcmp.eq.s32.totalorder %v2906_v15, 1 }
 0x502   :  { %v3792_v18 = vpop.f32.mrf.mxu0 }
 0x503   :  { %v2707_v17 = vadd.f32 %v3792_v18, %v6157_v0 }
 0x504   :  { %v2698_v62 = vpop.f32.mrf.mxu0 }
 0x505   :  { %v2699_v9 = vadd.f32 %v6157_v0, %v2698_v62  ;;  %v2978_v25 = vsel %vm2940_vm1, %v2707_v17, %v6162_v29 }
 0x506   :  { %v3793_v24 = vpop.f32.mrf.mxu0 }
 0x507   :  { %v2710_v46 = vadd.f32 %v3793_v24, %v6157_v0  ;;  %v2976_v21 = vsel %vm2938_vm4, %v2699_v9, %v6162_v29 }
 0x508   :  { %v2701_v14 = vpop.f32.mrf.mxu0 }
 0x509   :  { %v2979_v45 = vsel %vm2941_vm2, %v2710_v46, %v6162_v29  ;;  %v2702_v32 = vadd.f32 %v6157_v0, %v2701_v14  ;;  %v6505_v46 = vld [vmem:[#allocation51_spill] sm:$0xff] }
 0x50a   :  { %v3543_v42 = vpack.c.bf16 %v2979_v45, %v2978_v25  ;;  %v3489_v14 = vpack.c.bf16 %v6505_v46, %v6505_v46  ;;  %v3490_v25 = vpack.c.bf16 %v5726_v50, %v5726_v50  ;;  %v2912_v50 = vpop.permute.xlu1 %2911 }
 0x50b   :  { %v2977_v7 = vsel %vm2939_vm5, %v2702_v32, %v6162_v29  ;;  %vm2950_vm0 = vcmp.eq.s32.totalorder %v2912_v50, 1 }
 0x50c   :  { %3583 = vst [vmem:[#allocation2 + $0x48] sm:$0xff] %v3543_v42   ;;  %v3538_v16 = vpack.c.bf16 %v2977_v7, %v2976_v21  ;;  %v6506_v42 = vld [vmem:[#allocation36_spill] sm:$0xff] }
 0x50d   :  { %3299 = vst.msk [vmem:[#allocation2 + $0x48] sm:$0xf] %vm3280_vm3, %v3481_v28  ;;  %3300 = vst.msk [vmem:[#allocation2 + $0x4c] sm:$0xf] %vm3280_vm3, %v3482_v26  ;;  %v3487_v21 = vpack.c.bf16 %v6506_v42, %v6506_v42  ;;  %v3488_v28 = vpack.c.bf16 %v5746_v59, %v5746_v59  ;;  %v2915_v26 = vpop.permute.xlu0 %2914 }
 0x50e   :  { %3582 = vst [vmem:[#allocation2 + $0x40] sm:$0xff] %v3538_v16   ;;  %v2918_v48 = vpop.permute.xlu1 %2917  ;;  %vm2951_vm1 = vcmp.eq.s32.totalorder %v2915_v26, 1 }
 0x50f   :  { %3297 = vst.msk [vmem:[#allocation2 + $0x40] sm:$0xf] %vm3280_vm3, %v3479_v33  ;;  %3298 = vst.msk [vmem:[#allocation2 + $0x44] sm:$0xf] %vm3280_vm3, %v3480_v6  ;;  %vm2952_vm14 = vcmp.eq.s32.totalorder %v2918_v48, 1 }
 0x511   :  { %v2921_v33 = vpop.permute.xlu0 %2920 }
 0x512   :  { %vm2953_vm15 = vcmp.eq.s32.totalorder %v2921_v33, 1 }
 0x52f   :  { %v3796_v38 = vpop.f32.mrf.mxu0 }
 0x530   :  { %v2723_v43 = vadd.f32 %v3796_v38, %v6157_v0 }
 0x531   :  { %v2714_v63 = vpop.f32.mrf.mxu0 }
 0x532   :  { %v2715_v1 = vadd.f32 %v6157_v0, %v2714_v63  ;;  %v2982_v27 = vsel %vm2944_vm6, %v2723_v43, %v6162_v29 }
 0x533   :  { %v3797_v41 = vpop.f32.mrf.mxu0 }
 0x534   :  { %v2726_v34 = vadd.f32 %v3797_v41, %v6157_v0  ;;  %v2980_v49 = vsel %vm2942_vm8, %v2715_v1, %v6162_v29  ;;  %v3493_v41 = vpack.c.bf16 %v5781_v57, %v5781_v57  ;;  %v3494_v1 = vpack.c.bf16 %v5822_v44, %v5822_v44 }
 0x535   :  { %v2717_v60 = vpop.f32.mrf.mxu0 }
 0x536   :  { %v2983_v13 = vsel %vm2945_vm7, %v2726_v34, %v6162_v29  ;;  %v2718_v37 = vadd.f32 %v6157_v0, %v2717_v60 }
 0x537   :  { %v3553_v10 = vpack.c.bf16 %v2983_v13, %v2982_v27  ;;  %v3492_v27 = vpack.c.bf16 %v5839_v19, %v5839_v19 }
 0x538   :  { %v2981_v11 = vsel %vm2943_vm9, %v2718_v37, %v6162_v29 }
 0x539   :  { %3585 = vst [vmem:[#allocation2 + $0x58] sm:$0xff] %v3553_v10   ;;  %v3548_v56 = vpack.c.bf16 %v2981_v11, %v2980_v49 }
 0x53a   :  { %3303 = vst.msk [vmem:[#allocation2 + $0x58] sm:$0xf] %vm3280_vm3, %v3485_v12  ;;  %3304 = vst.msk [vmem:[#allocation2 + $0x5c] sm:$0xf] %vm3280_vm3, %v3486_v5 }
 0x53b   :  { %3584 = vst [vmem:[#allocation2 + $0x50] sm:$0xff] %v3548_v56  }
 0x53c   :  { %3301 = vst.msk [vmem:[#allocation2 + $0x50] sm:$0xf] %vm3280_vm3, %v3483_v20  ;;  %3302 = vst.msk [vmem:[#allocation2 + $0x54] sm:$0xf] %vm3280_vm3, %v3484_v53 }
 0x55c   :  { %v3800_v36 = vpop.f32.mrf.mxu0 }
 0x55d   :  { %v2739_v4 = vadd.f32 %v3800_v36, %v6157_v0 }
 0x55e   :  { %v2730_v54 = vpop.f32.mrf.mxu0 }
 0x55f   :  { %v2731_v22 = vadd.f32 %v6157_v0, %v2730_v54  ;;  %v2986_v55 = vsel %vm2948_vm10, %v2739_v4, %v6162_v29 }
 0x560   :  { %v3801_v47 = vpop.f32.mrf.mxu0 }
 0x561   :  { %v2742_v18 = vadd.f32 %v3801_v47, %v6157_v0  ;;  %v2984_v9 = vsel %vm2946_vm12, %v2731_v22, %v6162_v29 }
 0x562   :  { %v2733_v39 = vpop.f32.mrf.mxu0 }
 0x563   :  { %v2987_v62 = vsel %vm2949_vm11, %v2742_v18, %v6162_v29  ;;  %v2734_v17 = vadd.f32 %v6157_v0, %v2733_v39 }
 0x564   :  { %v3563_v24 = vpack.c.bf16 %v2987_v62, %v2986_v55 }
 0x565   :  { %v2985_v45 = vsel %vm2947_vm13, %v2734_v17, %v6162_v29 }
 0x566   :  { %3587 = vst [vmem:[#allocation2 + $0x68] sm:$0xff] %v3563_v24   ;;  %v3558_v32 = vpack.c.bf16 %v2985_v45, %v2984_v9 }
 0x567   :  { %3307 = vst.msk [vmem:[#allocation2 + $0x68] sm:$0xf] %vm3280_vm3, %v3489_v14  ;;  %3308 = vst.msk [vmem:[#allocation2 + $0x6c] sm:$0xf] %vm3280_vm3, %v3490_v25 }
 0x568   :  { %3586 = vst [vmem:[#allocation2 + $0x60] sm:$0xff] %v3558_v32  }
 0x569   :  { %3305 = vst.msk [vmem:[#allocation2 + $0x60] sm:$0xf] %vm3280_vm3, %v3487_v21  ;;  %3306 = vst.msk [vmem:[#allocation2 + $0x64] sm:$0xf] %vm3280_vm3, %v3488_v28 }
 0x584   :  { %v3804_v7 = vpop.f32.mrf.mxu0 }
 0x585   :  { %v2755_v58 = vadd.f32 %v3804_v7, %v6157_v0 }
 0x586   :  { %v2746_v16 = vpop.f32.mrf.mxu0 }
 0x587   :  { %v2747_v40 = vadd.f32 %v6157_v0, %v2746_v16  ;;  %v2990_v38 = vsel %vm2952_vm14, %v2755_v58, %v6162_v29 }
 0x588   :  { %v3805_v6 = vpop.f32.mrf.mxu0 }
 0x589   :  { %v2758_v52 = vadd.f32 %v3805_v6, %v6157_v0  ;;  %v2988_v43 = vsel %vm2950_vm0, %v2747_v40, %v6162_v29 }
 0x58a   :  { %v2749_v59 = vpop.f32.mrf.mxu0 }
 0x58b   :  { %v2991_v23 = vsel %vm2953_vm15, %v2758_v52, %v6162_v29  ;;  %v2750_v31 = vadd.f32 %v6157_v0, %v2749_v59  ;;  %v3491_v0 = vpack.c.bf16 %v5801_v30, %v5801_v30 }
 0x58c   :  { %v3573_v63 = vpack.c.bf16 %v2991_v23, %v2990_v38 }
 0x58d   :  { %v2989_v34 = vsel %vm2951_vm1, %v2750_v31, %v6162_v29 }
 0x58e   :  { %3589 = vst [vmem:[#allocation2 + $0x78] sm:$0xff] %v3573_v63   ;;  %v3568_v60 = vpack.c.bf16 %v2989_v34, %v2988_v43 }
 0x58f   :  { %3311 = vst.msk [vmem:[#allocation2 + $0x78] sm:$0xf] %vm3280_vm3, %v3493_v41  ;;  %3312 = vst.msk [vmem:[#allocation2 + $0x7c] sm:$0xf] %vm3280_vm3, %v3494_v1 }
 0x590   :  { %3588 = vst [vmem:[#allocation2 + $0x70] sm:$0xff] %v3568_v60  }
 0x591   :  { %3309 = vst.msk [vmem:[#allocation2 + $0x70] sm:$0xf] %vm3280_vm3, %v3491_v0  ;;  %3310 = vst.msk [vmem:[#allocation2 + $0x74] sm:$0xf] %vm3280_vm3, %v3492_v27 }
 0x592   :  { %4062 = shalt.err (!%p4059_p4)
}
 0x593   :  { %s4079_s19 = smov 64   ;;  %s4080_s20 = smov 4  }
 0x594   :  { %3324 = dma.vmem_to_hbm [thread:$0]  %s3319_s11, 2048, %s6346_s12, [#allocation3], %s4079_s19, %s4079_s19, %s4080_s20  }
 0x595   :  { %4071 = dma.done.wait [#allocation3], 2048  }
 0x596   :  { %4072 = vsyncadd [#allocation3], 4294965248 }
 0x597   :  { %3328 = vsyncpa [#allocation3], 1 }

</bundles_post_ra>
